<compile_context>
chip_gen: v7x
topology: tpu7x:2x2x1
jax: 0.10.0
libtpu: 0.0.40
codegen_flags: <defaults>
</compile_context>

<pallas_src>
import functools
import math

import jax
import jax.numpy as jnp
from jax import lax
from jax.experimental import pallas as pl
from jax.experimental.pallas import tpu as pltpu


# ----------------------------- small helpers -----------------------------

def _round_up(x, m):
    return (x + m - 1) // m * m


def _conv_geom(kh, kw, ws, oh):
    # mt:     true flattened output length (full-width rows, OH * Ws)
    # mt_pad: lane-dense (multiple-of-128) output length actually stored
    # ls:     flattened padded-image length needed so every tap slice is in bounds
    mt = oh * ws
    mt_pad = _round_up(mt, 128)
    ls = _round_up((kh - 1) * ws + (kw - 1) + mt_pad, 128)
    return mt, mt_pad, ls


# ----------------------------- Pallas kernels -----------------------------

def _conv_leaky_kernel(x_ref, w_ref, y_ref, *, kh, kw, ws, mt_pad, slope):
    # x_ref: (1, Ceff, Ls) flattened padded image (bf16), zero tail beyond real data
    # w_ref: (kh*kw, Cout, Ceff) bf16
    # y_ref: (1, Cout, mt_pad); columns beyond the true output are garbage and
    #        are cropped by the caller.
    cout = w_ref.shape[1]
    acc = jnp.zeros((cout, mt_pad), jnp.float32)
    for i in range(kh):
        for j in range(kw):
            start = i * ws + j
            tap = x_ref[0, :, start:start + mt_pad]                 # (Ceff, mt_pad)
            acc = acc + jnp.dot(w_ref[i * kw + j], tap,
                                preferred_element_type=jnp.float32)
    acc = jnp.where(acc >= 0.0, acc, slope * acc)
    y_ref[0] = acc.astype(y_ref.dtype)


def _conv_stats_kernel(x_ref, w_ref, y_ref, sum_ref, sq_ref,
                       *, kh, kw, ws, mt, mt_pad, ow):
    # Same direct conv, plus per-image per-channel sum / sum-of-squares computed
    # from the f32 accumulator (for the global BatchNorm batch statistics).
    # Wrap-around columns (q % ws >= ow) and the lane-padding tail (q >= mt) are
    # masked out of the statistics; they are cropped from y by the caller.
    cout = w_ref.shape[1]
    acc = jnp.zeros((cout, mt_pad), jnp.float32)
    for i in range(kh):
        for j in range(kw):
            start = i * ws + j
            tap = x_ref[0, :, start:start + mt_pad]                 # (Ceff, mt_pad)
            acc = acc + jnp.dot(w_ref[i * kw + j], tap,
                                preferred_element_type=jnp.float32)
    y_ref[0] = acc.astype(y_ref.dtype)
    q = lax.broadcasted_iota(jnp.int32, (1, mt_pad), 1)
    valid = (((q % ws) < ow) & (q < mt)).astype(jnp.float32)
    av = acc * valid
    sum_ref[0] = jnp.sum(av, axis=1, keepdims=True)                 # (Cout, 1)
    sq_ref[0] = jnp.sum(av * acc, axis=1, keepdims=True)            # (Cout, 1)


def _bn_leaky_kernel(y_ref, sc_ref, sh_ref, o_ref, *, slope):
    # y * scale + shift (per-channel, precomputed from global batch stats) + LeakyReLU.
    z = y_ref[0].astype(jnp.float32) * sc_ref[...] + sh_ref[...]
    o_ref[0] = jnp.where(z >= 0.0, z, slope * z).astype(o_ref.dtype)


def _final_dot_kernel(x_ref, w_ref, o_ref):
    # Final (1, C, F, F) conv == per-image dot product; tiny, no activation.
    prod = x_ref[...].astype(jnp.float32) * w_ref[...].astype(jnp.float32)
    o_ref[...] = jnp.sum(prod, axis=1, keepdims=True)


# ----------------------------- pallas_call wrappers -----------------------------

def _parallel():
    return pltpu.CompilerParams(dimension_semantics=("parallel",))


def conv_leaky(xf, w2, *, kh, kw, ws, oh, slope):
    n, ceff, ls = xf.shape
    taps, cout, _ = w2.shape
    mt, mt_pad, _ = _conv_geom(kh, kw, ws, oh)
    cost = pl.CostEstimate(
        flops=2 * n * taps * cout * ceff * mt_pad,
        transcendentals=0,
        bytes_accessed=2 * (int(xf.size) + int(w2.size) + n * cout * mt_pad))
    return pl.pallas_call(
        functools.partial(_conv_leaky_kernel, kh=kh, kw=kw, ws=ws,
                          mt_pad=mt_pad, slope=slope),
        grid=(n,),
        in_specs=[pl.BlockSpec((1, ceff, ls), lambda i: (i, 0, 0)),
                  pl.BlockSpec((taps, cout, ceff), lambda i: (0, 0, 0))],
        out_specs=pl.BlockSpec((1, cout, mt_pad), lambda i: (i, 0, 0)),
        out_shape=jax.ShapeDtypeStruct((n, cout, mt_pad), jnp.bfloat16),
        compiler_params=_parallel(),
        cost_estimate=cost,
    )(xf, w2)


def conv_stats(xf, w2, *, kh, kw, ws, oh, ow):
    n, ceff, ls = xf.shape
    taps, cout, _ = w2.shape
    mt, mt_pad, _ = _conv_geom(kh, kw, ws, oh)
    cost = pl.CostEstimate(
        flops=2 * n * taps * cout * ceff * mt_pad,
        transcendentals=0,
        bytes_accessed=2 * (int(xf.size) + int(w2.size) + n * cout * mt_pad)
        + 8 * n * cout)
    return pl.pallas_call(
        functools.partial(_conv_stats_kernel, kh=kh, kw=kw, ws=ws,
                          mt=mt, mt_pad=mt_pad, ow=ow),
        grid=(n,),
        in_specs=[pl.BlockSpec((1, ceff, ls), lambda i: (i, 0, 0)),
                  pl.BlockSpec((taps, cout, ceff), lambda i: (0, 0, 0))],
        out_specs=(pl.BlockSpec((1, cout, mt_pad), lambda i: (i, 0, 0)),
                   pl.BlockSpec((1, cout, 1), lambda i: (i, 0, 0)),
                   pl.BlockSpec((1, cout, 1), lambda i: (i, 0, 0))),
        out_shape=(jax.ShapeDtypeStruct((n, cout, mt_pad), jnp.bfloat16),
                   jax.ShapeDtypeStruct((n, cout, 1), jnp.float32),
                   jax.ShapeDtypeStruct((n, cout, 1), jnp.float32)),
        compiler_params=_parallel(),
        cost_estimate=cost,
    )(xf, w2)


def bn_leaky(y, scale, shift, *, slope):
    n, cout, mt_pad = y.shape
    return pl.pallas_call(
        functools.partial(_bn_leaky_kernel, slope=slope),
        grid=(n,),
        in_specs=[pl.BlockSpec((1, cout, mt_pad), lambda i: (i, 0, 0)),
                  pl.BlockSpec((cout, 1), lambda i: (0, 0)),
                  pl.BlockSpec((cout, 1), lambda i: (0, 0))],
        out_specs=pl.BlockSpec((1, cout, mt_pad), lambda i: (i, 0, 0)),
        out_shape=jax.ShapeDtypeStruct((n, cout, mt_pad), jnp.bfloat16),
        compiler_params=_parallel(),
    )(y, scale.astype(jnp.float32), shift.astype(jnp.float32))


def final_dot(x, w):
    # Tiny, overhead-dominated op: keep it as a single whole-array VMEM call.
    n, _ = x.shape
    vmem = pl.BlockSpec(memory_space=pltpu.MemorySpace.VMEM)
    return pl.pallas_call(
        _final_dot_kernel,
        in_specs=[vmem, vmem],
        out_specs=vmem,
        out_shape=jax.ShapeDtypeStruct((n, 1), jnp.float32),
    )(x, w)


# ----------------------------- layout helpers (cheap JAX glue) -----------------------------

def _space_to_depth(x):
    # (N, C, Hp, Wp) -> (N, 4C, Hp//2, Wp//2) with channel order e = c*4 + pi*2 + pj,
    # turning a 4x4/stride-2 conv into a 2x2/stride-1 conv (same bytes, no blowup).
    n, c, hp, wp = x.shape
    x = x.reshape(n, c, hp // 2, 2, wp // 2, 2)
    x = jnp.transpose(x, (0, 1, 3, 5, 2, 4))
    return x.reshape(n, c * 4, hp // 2, wp // 2)


def _flatten_rows(x, ls_target):
    # (N, C, Hs, Ws) -> (N, C, ls_target): row-major flatten + zero tail so every
    # in-kernel tap slice of length mt_pad stays in bounds (tail contributes 0).
    n, c, hs, ws = x.shape
    flat = x.reshape(n, c, hs * ws)
    return jnp.pad(flat, ((0, 0), (0, 0), (0, ls_target - hs * ws)))


def _crop_output(y, cout, oh, ws, ow):
    # (N, Cout, mt_pad) -> (N, Cout, OH, OW): drop lane padding + wrap columns.
    n = y.shape[0]
    return y[:, :, :oh * ws].reshape(n, cout, oh, ws)[:, :, :, :ow]


def _prep_w_s1(w):
    # torch (Cout, Cin, KH, KW) -> (KH*KW, Cout, Cin), tap t = i*KW + j.
    cout, cin, kh, kw = w.shape
    return jnp.transpose(w, (2, 3, 0, 1)).reshape(kh * kw, cout, cin).astype(jnp.bfloat16)


def _prep_w_s2(w):
    # torch (Cout, Cin, 4, 4) stride-2 weight -> space-to-depth form
    # (4 taps, Cout, 4*Cin) with tap t = di*2 + dj and channel e = c*4 + pi*2 + pj.
    cout, cin, _, _ = w.shape
    w6 = w.reshape(cout, cin, 2, 2, 2, 2)                 # (co, c, di, pi, dj, pj)
    w6 = jnp.transpose(w6, (2, 4, 0, 1, 3, 5))            # (di, dj, co, c, pi, pj)
    return w6.reshape(4, cout, cin * 4).astype(jnp.bfloat16)


# ----------------------------- parameters -----------------------------

def spectral_normalize(w, n_iter=50, eps=1e-12):
    # TODO(synk): torch.nn.utils.spectral_norm keeps a persistent random `u` with one
    # power iteration per forward; here we use a deterministic start vector iterated to
    # convergence (same normalization semantics, different stochastic state).
    cout = w.shape[0]
    w_mat = w.reshape(cout, -1)
    u = jnp.ones((cout,), w.dtype) / jnp.sqrt(jnp.asarray(cout, w.dtype))
    v = w_mat.T @ u
    for _ in range(n_iter):
        v = w_mat.T @ u
        v = v / (jnp.linalg.norm(v) + eps)
        u = w_mat @ v
        u = u / (jnp.linalg.norm(u) + eps)
    sigma = u @ (w_mat @ v)
    return w / sigma


def init_params(key, channels=3, ndf=8, img_size=32):
    num_down = int(math.log2(img_size / (img_size // 16)))          # 4 for img_size=32
    final_size = img_size // (2 ** num_down)                        # 2
    chs = [channels, ndf, ndf * 2, ndf * 4, ndf * 8, ndf * 16]
    keys = jax.random.split(key, num_down + 2)
    params = {
        "initial_w": spectral_normalize(
            0.1 * jax.random.normal(keys[0], (chs[1], chs[0], 3, 3), jnp.float32)),
        "down": [],
        "final_w": spectral_normalize(
            0.1 * jax.random.normal(keys[-1], (1, chs[-1], final_size, final_size),
                                    jnp.float32)),
    }
    for i in range(num_down):
        w = 0.1 * jax.random.normal(keys[1 + i], (chs[i + 2], chs[i + 1], 4, 4),
                                    jnp.float32)
        params["down"].append({
            "w": spectral_normalize(w),
            "gamma": jnp.ones((chs[i + 2],), jnp.float32),   # BatchNorm2d default init
            "beta": jnp.zeros((chs[i + 2],), jnp.float32),
        })
    return params, num_down, final_size


# ----------------------------- forward pass -----------------------------

def discriminator_forward(params, x_nchw, *, bn_eps=1e-5):
    n, _, h, w = x_nchw.shape
    x = x_nchw.astype(jnp.bfloat16)

    # initial: conv3x3 s1 p1 (no bias) + LeakyReLU(0.2)
    xp = jnp.pad(x, ((0, 0), (0, 0), (1, 1), (1, 1)))
    ws_ = w + 2
    _, _, ls0 = _conv_geom(3, 3, ws_, h)
    y = conv_leaky(_flatten_rows(xp, ls0), _prep_w_s1(params["initial_w"]),
                   kh=3, kw=3, ws=ws_, oh=h, slope=0.2)
    cout = params["initial_w"].shape[0]
    a = _crop_output(y, cout, h, ws_, w)                             # (N, ndf, H, W)

    # downsampling: conv4x4 s2 p1 + BatchNorm2d (batch stats) + LeakyReLU(0.1)
    for layer in params["down"]:
        sp = a.shape[2]
        ap = jnp.pad(a, ((0, 0), (0, 0), (1, 1), (1, 1)))
        asd = _space_to_depth(ap)                                    # stride-2 -> stride-1
        hs = (sp + 2) // 2
        oh = sp // 2
        _, _, ls = _conv_geom(2, 2, hs, oh)
        y, ssum, ssq = conv_stats(_flatten_rows(asd, ls), _prep_w_s2(layer["w"]),
                                  kh=2, kw=2, ws=hs, oh=oh, ow=oh)
        # combine per-image partial stats -> global batch statistics (tiny)
        count = n * oh * oh
        mean = jnp.sum(ssum, axis=0)[:, 0] / count
        var = jnp.maximum(jnp.sum(ssq, axis=0)[:, 0] / count - mean * mean, 0.0)
        scale = layer["gamma"] * lax.rsqrt(var + bn_eps)
        shift = layer["beta"] - mean * scale
        yb = bn_leaky(y, scale.reshape(-1, 1), shift.reshape(-1, 1), slope=0.1)
        cout = layer["w"].shape[0]
        a = _crop_output(yb, cout, oh, hs, oh)                       # (N, Cout, OH, OH)

    # final: conv(final_size x final_size) s1 p0, linear -> (N, 1)
    xfin = a.reshape(n, -1)
    wfin = params["final_w"].reshape(1, -1).astype(jnp.bfloat16)
    return final_dot(xfin, wfin)                                     # == squeeze(-1).squeeze(-1)


# ----------------------------- pure-JAX reference for sanity check -----------------------------

def _ref_conv(x, w, stride, pad):
    return lax.conv_general_dilated(
        x, w, (stride, stride), ((pad, pad), (pad, pad)),
        dimension_numbers=("NCHW", "OIHW", "NCHW"),
        precision=lax.Precision.HIGHEST)


def reference_forward(params, x_nchw):
    x = _ref_conv(x_nchw, params["initial_w"], 1, 1)
    x = jnp.where(x >= 0.0, x, 0.2 * x)
    for layer in params["down"]:
        x = _ref_conv(x, layer["w"], 2, 1)
        mean = jnp.mean(x, axis=(0, 2, 3), keepdims=True)
        var = jnp.mean(jnp.square(x - mean), axis=(0, 2, 3), keepdims=True)
        x = (x - mean) * lax.rsqrt(var + 1e-5)
        x = x * layer["gamma"].reshape(1, -1, 1, 1) + layer["beta"].reshape(1, -1, 1, 1)
        x = jnp.where(x >= 0.0, x, 0.1 * x)
    x = _ref_conv(x, params["final_w"], 1, 0)
    return x.reshape(x.shape[0], 1)


if __name__ == "__main__":
    key = jax.random.PRNGKey(0)
    pkey, xkey = jax.random.split(key)
    # Small but forward-consistent config: channels=3, ndf=8, img_size=32 -> 4 downsamples.
    params, num_down, final_size = init_params(pkey, channels=3, ndf=8, img_size=32)
    x = jax.random.normal(xkey, (2, 3, 32, 32), jnp.float32)         # NCHW, like PyTorch

    fwd = jax.jit(discriminator_forward)
    out = jax.block_until_ready(fwd(params, x))
    assert out.shape == (2, 1), out.shape

    ref = jax.block_until_ready(reference_forward(params, x))
    # bf16 matmuls / bf16 activations vs f32 HIGHEST reference -> loose tolerance.
    assert jnp.allclose(out, ref, rtol=5e-2, atol=5e-2), (out, ref)

    print("KERNEL_OK")
</pallas_src>

<mosaic_0001>
module attributes {stable_mosaic.version = 11 : i64} {
  func.func @_conv_leaky_kernel(%arg0: i32, %arg1: memref<1x3x1280xbf16, #tpu.memory_space<vmem>>, %arg2: memref<9x8x3xbf16, #tpu.memory_space<vmem>>, %arg3: memref<1x8x1152xbf16, #tpu.memory_space<vmem>>) attributes {dimension_semantics = [#tpu.dimension_semantics<parallel>], iteration_bounds = array<i64: 2>, scalar_prefetch = 0 : i64, scratch_operands = 0 : i64, tpu.core_type = #tpu.core_type<tc>, window_params = [{transform_indices = @transform_0, window_bounds = array<i64: 1, 3, 1280>}, {pipeline_mode = #tpu.pipeline_mode<synchronous>, transform_indices = @transform_1, window_bounds = array<i64: 9, 8, 3>}, {transform_indices = @transform_2, window_bounds = array<i64: 1, 8, 1152>}]} {
    %cst = arith.constant 0.000000e+00 : f32
    %0 = vector.broadcast %cst : f32 to vector<8x1152xf32>
    %c0 = arith.constant 0 : index
    %c0_0 = arith.constant 0 : index
    %c0_1 = arith.constant 0 : index
    %1 = vector.load %arg1[%c0, %c0_0, %c0_1] : memref<1x3x1280xbf16, #tpu.memory_space<vmem>>, vector<1x3x1152xbf16>
    %2 = vector.shape_cast %1 : vector<1x3x1152xbf16> to vector<3x1152xbf16>
    %c0_2 = arith.constant 0 : index
    %c0_3 = arith.constant 0 : index
    %c0_4 = arith.constant 0 : index
    %3 = vector.load %arg2[%c0_2, %c0_3, %c0_4] : memref<9x8x3xbf16, #tpu.memory_space<vmem>>, vector<1x8x3xbf16>
    %4 = vector.shape_cast %3 : vector<1x8x3xbf16> to vector<8x3xbf16>
    %cst_5 = arith.constant dense<0.000000e+00> : vector<8x1152xf32>
    %5 = tpu.matmul %4, %2, %cst_5 {dimension_numbers = #tpu.dot_dimension_numbers<[1], [0], [0], [1], [0, 0, 1, 1], [], []>} : vector<8x3xbf16>, vector<3x1152xbf16>, vector<8x1152xf32> -> vector<8x1152xf32>
    %6 = arith.addf %0, %5 : vector<8x1152xf32>
    %c0_6 = arith.constant 0 : index
    %c0_7 = arith.constant 0 : index
    %c1 = arith.constant 1 : index
    %7 = vector.load %arg1[%c0_6, %c0_7, %c1] : memref<1x3x1280xbf16, #tpu.memory_space<vmem>>, vector<1x3x1152xbf16>
    %8 = vector.shape_cast %7 : vector<1x3x1152xbf16> to vector<3x1152xbf16>
    %c1_8 = arith.constant 1 : index
    %c0_9 = arith.constant 0 : index
    %c0_10 = arith.constant 0 : index
    %9 = vector.load %arg2[%c1_8, %c0_9, %c0_10] : memref<9x8x3xbf16, #tpu.memory_space<vmem>>, vector<1x8x3xbf16>
    %10 = vector.shape_cast %9 : vector<1x8x3xbf16> to vector<8x3xbf16>
    %cst_11 = arith.constant dense<0.000000e+00> : vector<8x1152xf32>
    %11 = tpu.matmul %10, %8, %cst_11 {dimension_numbers = #tpu.dot_dimension_numbers<[1], [0], [0], [1], [0, 0, 1, 1], [], []>} : vector<8x3xbf16>, vector<3x1152xbf16>, vector<8x1152xf32> -> vector<8x1152xf32>
    %12 = arith.addf %6, %11 : vector<8x1152xf32>
    %c0_12 = arith.constant 0 : index
    %c0_13 = arith.constant 0 : index
    %c2 = arith.constant 2 : index
    %13 = vector.load %arg1[%c0_12, %c0_13, %c2] : memref<1x3x1280xbf16, #tpu.memory_space<vmem>>, vector<1x3x1152xbf16>
    %14 = vector.shape_cast %13 : vector<1x3x1152xbf16> to vector<3x1152xbf16>
    %c2_14 = arith.constant 2 : index
    %c0_15 = arith.constant 0 : index
    %c0_16 = arith.constant 0 : index
    %15 = vector.load %arg2[%c2_14, %c0_15, %c0_16] : memref<9x8x3xbf16, #tpu.memory_space<vmem>>, vector<1x8x3xbf16>
    %16 = vector.shape_cast %15 : vector<1x8x3xbf16> to vector<8x3xbf16>
    %cst_17 = arith.constant dense<0.000000e+00> : vector<8x1152xf32>
    %17 = tpu.matmul %16, %14, %cst_17 {dimension_numbers = #tpu.dot_dimension_numbers<[1], [0], [0], [1], [0, 0, 1, 1], [], []>} : vector<8x3xbf16>, vector<3x1152xbf16>, vector<8x1152xf32> -> vector<8x1152xf32>
    %18 = arith.addf %12, %17 : vector<8x1152xf32>
    %c0_18 = arith.constant 0 : index
    %c0_19 = arith.constant 0 : index
    %c34 = arith.constant 34 : index
    %19 = vector.load %arg1[%c0_18, %c0_19, %c34] : memref<1x3x1280xbf16, #tpu.memory_space<vmem>>, vector<1x3x1152xbf16>
    %20 = vector.shape_cast %19 : vector<1x3x1152xbf16> to vector<3x1152xbf16>
    %c3 = arith.constant 3 : index
    %c0_20 = arith.constant 0 : index
    %c0_21 = arith.constant 0 : index
    %21 = vector.load %arg2[%c3, %c0_20, %c0_21] : memref<9x8x3xbf16, #tpu.memory_space<vmem>>, vector<1x8x3xbf16>
    %22 = vector.shape_cast %21 : vector<1x8x3xbf16> to vector<8x3xbf16>
    %cst_22 = arith.constant dense<0.000000e+00> : vector<8x1152xf32>
    %23 = tpu.matmul %22, %20, %cst_22 {dimension_numbers = #tpu.dot_dimension_numbers<[1], [0], [0], [1], [0, 0, 1, 1], [], []>} : vector<8x3xbf16>, vector<3x1152xbf16>, vector<8x1152xf32> -> vector<8x1152xf32>
    %24 = arith.addf %18, %23 : vector<8x1152xf32>
    %c0_23 = arith.constant 0 : index
    %c0_24 = arith.constant 0 : index
    %c35 = arith.constant 35 : index
    %25 = vector.load %arg1[%c0_23, %c0_24, %c35] : memref<1x3x1280xbf16, #tpu.memory_space<vmem>>, vector<1x3x1152xbf16>
    %26 = vector.shape_cast %25 : vector<1x3x1152xbf16> to vector<3x1152xbf16>
    %c4 = arith.constant 4 : index
    %c0_25 = arith.constant 0 : index
    %c0_26 = arith.constant 0 : index
    %27 = vector.load %arg2[%c4, %c0_25, %c0_26] : memref<9x8x3xbf16, #tpu.memory_space<vmem>>, vector<1x8x3xbf16>
    %28 = vector.shape_cast %27 : vector<1x8x3xbf16> to vector<8x3xbf16>
    %cst_27 = arith.constant dense<0.000000e+00> : vector<8x1152xf32>
    %29 = tpu.matmul %28, %26, %cst_27 {dimension_numbers = #tpu.dot_dimension_numbers<[1], [0], [0], [1], [0, 0, 1, 1], [], []>} : vector<8x3xbf16>, vector<3x1152xbf16>, vector<8x1152xf32> -> vector<8x1152xf32>
    %30 = arith.addf %24, %29 : vector<8x1152xf32>
    %c0_28 = arith.constant 0 : index
    %c0_29 = arith.constant 0 : index
    %c36 = arith.constant 36 : index
    %31 = vector.load %arg1[%c0_28, %c0_29, %c36] : memref<1x3x1280xbf16, #tpu.memory_space<vmem>>, vector<1x3x1152xbf16>
    %32 = vector.shape_cast %31 : vector<1x3x1152xbf16> to vector<3x1152xbf16>
    %c5 = arith.constant 5 : index
    %c0_30 = arith.constant 0 : index
    %c0_31 = arith.constant 0 : index
    %33 = vector.load %arg2[%c5, %c0_30, %c0_31] : memref<9x8x3xbf16, #tpu.memory_space<vmem>>, vector<1x8x3xbf16>
    %34 = vector.shape_cast %33 : vector<1x8x3xbf16> to vector<8x3xbf16>
    %cst_32 = arith.constant dense<0.000000e+00> : vector<8x1152xf32>
    %35 = tpu.matmul %34, %32, %cst_32 {dimension_numbers = #tpu.dot_dimension_numbers<[1], [0], [0], [1], [0, 0, 1, 1], [], []>} : vector<8x3xbf16>, vector<3x1152xbf16>, vector<8x1152xf32> -> vector<8x1152xf32>
    %36 = arith.addf %30, %35 : vector<8x1152xf32>
    %c0_33 = arith.constant 0 : index
    %c0_34 = arith.constant 0 : index
    %c68 = arith.constant 68 : index
    %37 = vector.load %arg1[%c0_33, %c0_34, %c68] : memref<1x3x1280xbf16, #tpu.memory_space<vmem>>, vector<1x3x1152xbf16>
    %38 = vector.shape_cast %37 : vector<1x3x1152xbf16> to vector<3x1152xbf16>
    %c6 = arith.constant 6 : index
    %c0_35 = arith.constant 0 : index
    %c0_36 = arith.constant 0 : index
    %39 = vector.load %arg2[%c6, %c0_35, %c0_36] : memref<9x8x3xbf16, #tpu.memory_space<vmem>>, vector<1x8x3xbf16>
    %40 = vector.shape_cast %39 : vector<1x8x3xbf16> to vector<8x3xbf16>
    %cst_37 = arith.constant dense<0.000000e+00> : vector<8x1152xf32>
    %41 = tpu.matmul %40, %38, %cst_37 {dimension_numbers = #tpu.dot_dimension_numbers<[1], [0], [0], [1], [0, 0, 1, 1], [], []>} : vector<8x3xbf16>, vector<3x1152xbf16>, vector<8x1152xf32> -> vector<8x1152xf32>
    %42 = arith.addf %36, %41 : vector<8x1152xf32>
    %c0_38 = arith.constant 0 : index
    %c0_39 = arith.constant 0 : index
    %c69 = arith.constant 69 : index
    %43 = vector.load %arg1[%c0_38, %c0_39, %c69] : memref<1x3x1280xbf16, #tpu.memory_space<vmem>>, vector<1x3x1152xbf16>
    %44 = vector.shape_cast %43 : vector<1x3x1152xbf16> to vector<3x1152xbf16>
    %c7 = arith.constant 7 : index
    %c0_40 = arith.constant 0 : index
    %c0_41 = arith.constant 0 : index
    %45 = vector.load %arg2[%c7, %c0_40, %c0_41] : memref<9x8x3xbf16, #tpu.memory_space<vmem>>, vector<1x8x3xbf16>
    %46 = vector.shape_cast %45 : vector<1x8x3xbf16> to vector<8x3xbf16>
    %cst_42 = arith.constant dense<0.000000e+00> : vector<8x1152xf32>
    %47 = tpu.matmul %46, %44, %cst_42 {dimension_numbers = #tpu.dot_dimension_numbers<[1], [0], [0], [1], [0, 0, 1, 1], [], []>} : vector<8x3xbf16>, vector<3x1152xbf16>, vector<8x1152xf32> -> vector<8x1152xf32>
    %48 = arith.addf %42, %47 : vector<8x1152xf32>
    %c0_43 = arith.constant 0 : index
    %c0_44 = arith.constant 0 : index
    %c70 = arith.constant 70 : index
    %49 = vector.load %arg1[%c0_43, %c0_44, %c70] : memref<1x3x1280xbf16, #tpu.memory_space<vmem>>, vector<1x3x1152xbf16>
    %50 = vector.shape_cast %49 : vector<1x3x1152xbf16> to vector<3x1152xbf16>
    %c8 = arith.constant 8 : index
    %c0_45 = arith.constant 0 : index
    %c0_46 = arith.constant 0 : index
    %51 = vector.load %arg2[%c8, %c0_45, %c0_46] : memref<9x8x3xbf16, #tpu.memory_space<vmem>>, vector<1x8x3xbf16>
    %52 = vector.shape_cast %51 : vector<1x8x3xbf16> to vector<8x3xbf16>
    %cst_47 = arith.constant dense<0.000000e+00> : vector<8x1152xf32>
    %53 = tpu.matmul %52, %50, %cst_47 {dimension_numbers = #tpu.dot_dimension_numbers<[1], [0], [0], [1], [0, 0, 1, 1], [], []>} : vector<8x3xbf16>, vector<3x1152xbf16>, vector<8x1152xf32> -> vector<8x1152xf32>
    %54 = arith.addf %48, %53 : vector<8x1152xf32>
    %cst_48 = arith.constant 0.000000e+00 : f32
    %55 = vector.broadcast %cst_48 : f32 to vector<8x1152xf32>
    %56 = arith.cmpf oge, %54, %55 : vector<8x1152xf32>
    %cst_49 = arith.constant 2.000000e-01 : f32
    %57 = vector.broadcast %cst_49 : f32 to vector<8x1152xf32>
    %58 = arith.mulf %57, %54 : vector<8x1152xf32>
    %59 = arith.select %56, %54, %58 : vector<8x1152xi1>, vector<8x1152xf32>
    %60 = arith.truncf %59 : vector<8x1152xf32> to vector<8x1152xbf16>
    %c0_50 = arith.constant 0 : index
    %c0_51 = arith.constant 0 : index
    %c0_52 = arith.constant 0 : index
    %61 = vector.load %arg3[%c0_50, %c0_51, %c0_52] : memref<1x8x1152xbf16, #tpu.memory_space<vmem>>, vector<1x8x1152xbf16>
    %62 = vector.shape_cast %61 : vector<1x8x1152xbf16> to vector<8x1152xbf16>
    %63 = vector.shape_cast %60 : vector<8x1152xbf16> to vector<1x8x1152xbf16>
    tpu.vector_store %arg3[%c0_50, %c0_51, %c0_52], %63 {strides = array<i32>} : memref<1x8x1152xbf16, #tpu.memory_space<vmem>>, vector<1x8x1152xbf16>,
    return
  }
  func.func @transform_0(%arg0: i32) -> (i32, i32, i32) {
    %c0_i32 = arith.constant 0 : i32
    %c0_i32_0 = arith.constant 0 : i32
    %c0_i32_1 = arith.constant 0 : i32
    return %arg0, %c0_i32, %c0_i32_0 : i32, i32, i32
  }
  func.func @transform_1(%arg0: i32) -> (i32, i32, i32) {
    %c0_i32 = arith.constant 0 : i32
    %c0_i32_0 = arith.constant 0 : i32
    %c0_i32_1 = arith.constant 0 : i32
    %c0_i32_2 = arith.constant 0 : i32
    return %c0_i32, %c0_i32_0, %c0_i32_1 : i32, i32, i32
  }
  func.func @transform_2(%arg0: i32) -> (i32, i32, i32) {
    %c0_i32 = arith.constant 0 : i32
    %c0_i32_0 = arith.constant 0 : i32
    %c0_i32_1 = arith.constant 0 : i32
    return %arg0, %c0_i32, %c0_i32_0 : i32, i32, i32
  }
}

module attributes {stable_mosaic.version = 11 : i64} {
  func.func @_conv_stats_kernel(%arg0: i32, %arg1: memref<1x32x512xbf16, #tpu.memory_space<vmem>>, %arg2: memref<4x16x32xbf16, #tpu.memory_space<vmem>>, %arg3: memref<1x16x384xbf16, #tpu.memory_space<vmem>>, %arg4: memref<1x16x1xf32, #tpu.memory_space<vmem>>, %arg5: memref<1x16x1xf32, #tpu.memory_space<vmem>>) attributes {dimension_semantics = [#tpu.dimension_semantics<parallel>], iteration_bounds = array<i64: 2>, scalar_prefetch = 0 : i64, scratch_operands = 0 : i64, tpu.core_type = #tpu.core_type<tc>, window_params = [{transform_indices = @transform_0, window_bounds = array<i64: 1, 32, 512>}, {pipeline_mode = #tpu.pipeline_mode<synchronous>, transform_indices = @transform_1, window_bounds = array<i64: 4, 16, 32>}, {transform_indices = @transform_2, window_bounds = array<i64: 1, 16, 384>}, {transform_indices = @transform_3, window_bounds = array<i64: 1, 16, 1>}, {transform_indices = @transform_4, window_bounds = array<i64: 1, 16, 1>}]} {
    %cst = arith.constant 0.000000e+00 : f32
    %0 = vector.broadcast %cst : f32 to vector<16x384xf32>
    %c0 = arith.constant 0 : index
    %c0_0 = arith.constant 0 : index
    %c0_1 = arith.constant 0 : index
    %1 = vector.load %arg1[%c0, %c0_0, %c0_1] : memref<1x32x512xbf16, #tpu.memory_space<vmem>>, vector<1x32x384xbf16>
    %2 = vector.shape_cast %1 : vector<1x32x384xbf16> to vector<32x384xbf16>
    %c0_2 = arith.constant 0 : index
    %c0_3 = arith.constant 0 : index
    %c0_4 = arith.constant 0 : index
    %3 = vector.load %arg2[%c0_2, %c0_3, %c0_4] : memref<4x16x32xbf16, #tpu.memory_space<vmem>>, vector<1x16x32xbf16>
    %4 = vector.shape_cast %3 : vector<1x16x32xbf16> to vector<16x32xbf16>
    %cst_5 = arith.constant dense<0.000000e+00> : vector<16x384xf32>
    %5 = tpu.matmul %4, %2, %cst_5 {dimension_numbers = #tpu.dot_dimension_numbers<[1], [0], [0], [1], [0, 0, 1, 1], [], []>} : vector<16x32xbf16>, vector<32x384xbf16>, vector<16x384xf32> -> vector<16x384xf32>
    %6 = arith.addf %0, %5 : vector<16x384xf32>
    %c0_6 = arith.constant 0 : index
    %c0_7 = arith.constant 0 : index
    %c1 = arith.constant 1 : index
    %7 = vector.load %arg1[%c0_6, %c0_7, %c1] : memref<1x32x512xbf16, #tpu.memory_space<vmem>>, vector<1x32x384xbf16>
    %8 = vector.shape_cast %7 : vector<1x32x384xbf16> to vector<32x384xbf16>
    %c1_8 = arith.constant 1 : index
    %c0_9 = arith.constant 0 : index
    %c0_10 = arith.constant 0 : index
    %9 = vector.load %arg2[%c1_8, %c0_9, %c0_10] : memref<4x16x32xbf16, #tpu.memory_space<vmem>>, vector<1x16x32xbf16>
    %10 = vector.shape_cast %9 : vector<1x16x32xbf16> to vector<16x32xbf16>
    %cst_11 = arith.constant dense<0.000000e+00> : vector<16x384xf32>
    %11 = tpu.matmul %10, %8, %cst_11 {dimension_numbers = #tpu.dot_dimension_numbers<[1], [0], [0], [1], [0, 0, 1, 1], [], []>} : vector<16x32xbf16>, vector<32x384xbf16>, vector<16x384xf32> -> vector<16x384xf32>
    %12 = arith.addf %6, %11 : vector<16x384xf32>
    %c0_12 = arith.constant 0 : index
    %c0_13 = arith.constant 0 : index
    %c17 = arith.constant 17 : index
    %13 = vector.load %arg1[%c0_12, %c0_13, %c17] : memref<1x32x512xbf16, #tpu.memory_space<vmem>>, vector<1x32x384xbf16>
    %14 = vector.shape_cast %13 : vector<1x32x384xbf16> to vector<32x384xbf16>
    %c2 = arith.constant 2 : index
    %c0_14 = arith.constant 0 : index
    %c0_15 = arith.constant 0 : index
    %15 = vector.load %arg2[%c2, %c0_14, %c0_15] : memref<4x16x32xbf16, #tpu.memory_space<vmem>>, vector<1x16x32xbf16>
    %16 = vector.shape_cast %15 : vector<1x16x32xbf16> to vector<16x32xbf16>
    %cst_16 = arith.constant dense<0.000000e+00> : vector<16x384xf32>
    %17 = tpu.matmul %16, %14, %cst_16 {dimension_numbers = #tpu.dot_dimension_numbers<[1], [0], [0], [1], [0, 0, 1, 1], [], []>} : vector<16x32xbf16>, vector<32x384xbf16>, vector<16x384xf32> -> vector<16x384xf32>
    %18 = arith.addf %12, %17 : vector<16x384xf32>
    %c0_17 = arith.constant 0 : index
    %c0_18 = arith.constant 0 : index
    %c18 = arith.constant 18 : index
    %19 = vector.load %arg1[%c0_17, %c0_18, %c18] : memref<1x32x512xbf16, #tpu.memory_space<vmem>>, vector<1x32x384xbf16>
    %20 = vector.shape_cast %19 : vector<1x32x384xbf16> to vector<32x384xbf16>
    %c3 = arith.constant 3 : index
    %c0_19 = arith.constant 0 : index
    %c0_20 = arith.constant 0 : index
    %21 = vector.load %arg2[%c3, %c0_19, %c0_20] : memref<4x16x32xbf16, #tpu.memory_space<vmem>>, vector<1x16x32xbf16>
    %22 = vector.shape_cast %21 : vector<1x16x32xbf16> to vector<16x32xbf16>
    %cst_21 = arith.constant dense<0.000000e+00> : vector<16x384xf32>
    %23 = tpu.matmul %22, %20, %cst_21 {dimension_numbers = #tpu.dot_dimension_numbers<[1], [0], [0], [1], [0, 0, 1, 1], [], []>} : vector<16x32xbf16>, vector<32x384xbf16>, vector<16x384xf32> -> vector<16x384xf32>
    %24 = arith.addf %18, %23 : vector<16x384xf32>
    %25 = arith.truncf %24 : vector<16x384xf32> to vector<16x384xbf16>
    %c0_22 = arith.constant 0 : index
    %c0_23 = arith.constant 0 : index
    %c0_24 = arith.constant 0 : index
    %26 = vector.load %arg3[%c0_22, %c0_23, %c0_24] : memref<1x16x384xbf16, #tpu.memory_space<vmem>>, vector<1x16x384xbf16>
    %27 = vector.shape_cast %26 : vector<1x16x384xbf16> to vector<16x384xbf16>
    %28 = vector.shape_cast %25 : vector<16x384xbf16> to vector<1x16x384xbf16>
    tpu.vector_store %arg3[%c0_22, %c0_23, %c0_24], %28 {strides = array<i32>} : memref<1x16x384xbf16, #tpu.memory_space<vmem>>, vector<1x16x384xbf16>,
    %29 = tpu.iota {dimensions = array<i32: 1>} : vector<1x384xi32>
    %c17_i32 = arith.constant 17 : i32
    %c0_i32 = arith.constant 0 : i32
    %30 = arith.cmpi eq, %c17_i32, %c0_i32 : i32
    %c1_i32 = arith.constant 1 : i32
    %31 = arith.select %30, %c1_i32, %c17_i32 : i32
    %32 = vector.broadcast %31 : i32 to vector<1x384xi32>
    %33 = arith.remsi %29, %32 : vector<1x384xi32>
    %c0_i32_25 = arith.constant 0 : i32
    %34 = vector.broadcast %c0_i32_25 : i32 to vector<1x384xi32>
    %35 = arith.cmpi ne, %33, %34 : vector<1x384xi32>
    %c0_i32_26 = arith.constant 0 : i32
    %36 = vector.broadcast %c0_i32_26 : i32 to vector<1x384xi32>
    %37 = arith.cmpi slt, %33, %36 : vector<1x384xi32>
    %c0_i32_27 = arith.constant 0 : i32
    %38 = arith.cmpi slt, %31, %c0_i32_27 : i32
    %39 = vector.broadcast %38 : i1 to vector<1x384xi1>
    %40 = vector.broadcast %39 : vector<1x384xi1> to vector<1x384xi1>
    %41 = arith.xori %37, %40 : vector<1x384xi1>
    %42 = arith.andi %41, %35 : vector<1x384xi1>
    %43 = vector.broadcast %31 : i32 to vector<1x384xi32>
    %44 = arith.addi %33, %43 : vector<1x384xi32>
    %45 = arith.select %42, %44, %33 : vector<1x384xi1>, vector<1x384xi32>
    %c16_i32 = arith.constant 16 : i32
    %46 = vector.broadcast %c16_i32 : i32 to vector<1x384xi32>
    %47 = arith.cmpi slt, %45, %46 : vector<1x384xi32>
    %c272_i32 = arith.constant 272 : i32
    %48 = vector.broadcast %c272_i32 : i32 to vector<1x384xi32>
    %49 = arith.cmpi slt, %29, %48 : vector<1x384xi32>
    %50 = arith.andi %47, %49 : vector<1x384xi1>
    %51 = arith.extui %50 : vector<1x384xi1> to vector<1x384xi32>
    %52 = arith.sitofp %51 : vector<1x384xi32> to vector<1x384xf32>
    %53 = vector.broadcast %52 : vector<1x384xf32> to vector<16x384xf32>
    %54 = arith.mulf %24, %53 : vector<16x384xf32>
    %cst_28 = arith.constant dense<0.000000e+00> : vector<16xf32>
    %55 = vector.multi_reduction <add>, %54, %cst_28 [1] : vector<16x384xf32> to vector<16xf32>
    %56 = vector.shape_cast %55 : vector<16xf32> to vector<16x1xf32>
    %c0_29 = arith.constant 0 : index
    %c0_30 = arith.constant 0 : index
    %c0_31 = arith.constant 0 : index
    %57 = vector.load %arg4[%c0_29, %c0_30, %c0_31] : memref<1x16x1xf32, #tpu.memory_space<vmem>>, vector<1x16x1xf32>
    %58 = vector.shape_cast %57 : vector<1x16x1xf32> to vector<16x1xf32>
    %59 = vector.shape_cast %56 : vector<16x1xf32> to vector<1x16x1xf32>
    tpu.vector_store %arg4[%c0_29, %c0_30, %c0_31], %59 {strides = array<i32>} : memref<1x16x1xf32, #tpu.memory_space<vmem>>, vector<1x16x1xf32>,
    %60 = arith.mulf %54, %24 : vector<16x384xf32>
    %cst_32 = arith.constant dense<0.000000e+00> : vector<16xf32>
    %61 = vector.multi_reduction <add>, %60, %cst_32 [1] : vector<16x384xf32> to vector<16xf32>
    %62 = vector.shape_cast %61 : vector<16xf32> to vector<16x1xf32>
    %c0_33 = arith.constant 0 : index
    %c0_34 = arith.constant 0 : index
    %c0_35 = arith.constant 0 : index
    %63 = vector.load %arg5[%c0_33, %c0_34, %c0_35] : memref<1x16x1xf32, #tpu.memory_space<vmem>>, vector<1x16x1xf32>
    %64 = vector.shape_cast %63 : vector<1x16x1xf32> to vector<16x1xf32>
    %65 = vector.shape_cast %62 : vector<16x1xf32> to vector<1x16x1xf32>
    tpu.vector_store %arg5[%c0_33, %c0_34, %c0_35], %65 {strides = array<i32>} : memref<1x16x1xf32, #tpu.memory_space<vmem>>, vector<1x16x1xf32>,
    return
  }
  func.func @transform_0(%arg0: i32) -> (i32, i32, i32) {
    %c0_i32 = arith.constant 0 : i32
    %c0_i32_0 = arith.constant 0 : i32
    %c0_i32_1 = arith.constant 0 : i32
    return %arg0, %c0_i32, %c0_i32_0 : i32, i32, i32
  }
  func.func @transform_1(%arg0: i32) -> (i32, i32, i32) {
    %c0_i32 = arith.constant 0 : i32
    %c0_i32_0 = arith.constant 0 : i32
    %c0_i32_1 = arith.constant 0 : i32
    %c0_i32_2 = arith.constant 0 : i32
    return %c0_i32, %c0_i32_0, %c0_i32_1 : i32, i32, i32
  }
  func.func @transform_2(%arg0: i32) -> (i32, i32, i32) {
    %c0_i32 = arith.constant 0 : i32
    %c0_i32_0 = arith.constant 0 : i32
    %c0_i32_1 = arith.constant 0 : i32
    return %arg0, %c0_i32, %c0_i32_0 : i32, i32, i32
  }
  func.func @transform_3(%arg0: i32) -> (i32, i32, i32) {
    %c0_i32 = arith.constant 0 : i32
    %c0_i32_0 = arith.constant 0 : i32
    %c0_i32_1 = arith.constant 0 : i32
    return %arg0, %c0_i32, %c0_i32_0 : i32, i32, i32
  }
  func.func @transform_4(%arg0: i32) -> (i32, i32, i32) {
    %c0_i32 = arith.constant 0 : i32
    %c0_i32_0 = arith.constant 0 : i32
    %c0_i32_1 = arith.constant 0 : i32
    return %arg0, %c0_i32, %c0_i32_0 : i32, i32, i32
  }
}

module attributes {stable_mosaic.version = 11 : i64} {
  func.func @_bn_leaky_kernel(%arg0: i32, %arg1: memref<1x16x384xbf16, #tpu.memory_space<vmem>>, %arg2: memref<16x1xf32, #tpu.memory_space<vmem>>, %arg3: memref<16x1xf32, #tpu.memory_space<vmem>>, %arg4: memref<1x16x384xbf16, #tpu.memory_space<vmem>>) attributes {dimension_semantics = [#tpu.dimension_semantics<parallel>], iteration_bounds = array<i64: 2>, scalar_prefetch = 0 : i64, scratch_operands = 0 : i64, tpu.core_type = #tpu.core_type<tc>, window_params = [{transform_indices = @transform_0, window_bounds = array<i64: 1, 16, 384>}, {pipeline_mode = #tpu.pipeline_mode<synchronous>, transform_indices = @transform_1, window_bounds = array<i64: 16, 1>}, {pipeline_mode = #tpu.pipeline_mode<synchronous>, transform_indices = @transform_2, window_bounds = array<i64: 16, 1>}, {transform_indices = @transform_3, window_bounds = array<i64: 1, 16, 384>}]} {
    %c0 = arith.constant 0 : index
    %c0_0 = arith.constant 0 : index
    %c0_1 = arith.constant 0 : index
    %0 = vector.load %arg1[%c0, %c0_0, %c0_1] : memref<1x16x384xbf16, #tpu.memory_space<vmem>>, vector<1x16x384xbf16>
    %1 = vector.shape_cast %0 : vector<1x16x384xbf16> to vector<16x384xbf16>
    %2 = arith.extf %1 : vector<16x384xbf16> to vector<16x384xf32>
    %c0_2 = arith.constant 0 : index
    %c0_3 = arith.constant 0 : index
    %3 = vector.load %arg2[%c0_2, %c0_3] : memref<16x1xf32, #tpu.memory_space<vmem>>, vector<16x1xf32>
    %4 = vector.broadcast %3 : vector<16x1xf32> to vector<16x384xf32>
    %5 = arith.mulf %2, %4 : vector<16x384xf32>
    %c0_4 = arith.constant 0 : index
    %c0_5 = arith.constant 0 : index
    %6 = vector.load %arg3[%c0_4, %c0_5] : memref<16x1xf32, #tpu.memory_space<vmem>>, vector<16x1xf32>
    %7 = vector.broadcast %6 : vector<16x1xf32> to vector<16x384xf32>
    %8 = arith.addf %5, %7 : vector<16x384xf32>
    %cst = arith.constant 0.000000e+00 : f32
    %9 = vector.broadcast %cst : f32 to vector<16x384xf32>
    %10 = arith.cmpf oge, %8, %9 : vector<16x384xf32>
    %cst_6 = arith.constant 1.000000e-01 : f32
    %11 = vector.broadcast %cst_6 : f32 to vector<16x384xf32>
    %12 = arith.mulf %11, %8 : vector<16x384xf32>
    %13 = arith.select %10, %8, %12 : vector<16x384xi1>, vector<16x384xf32>
    %14 = arith.truncf %13 : vector<16x384xf32> to vector<16x384xbf16>
    %c0_7 = arith.constant 0 : index
    %c0_8 = arith.constant 0 : index
    %c0_9 = arith.constant 0 : index
    %15 = vector.load %arg4[%c0_7, %c0_8, %c0_9] : memref<1x16x384xbf16, #tpu.memory_space<vmem>>, vector<1x16x384xbf16>
    %16 = vector.shape_cast %15 : vector<1x16x384xbf16> to vector<16x384xbf16>
    %17 = vector.shape_cast %14 : vector<16x384xbf16> to vector<1x16x384xbf16>
    tpu.vector_store %arg4[%c0_7, %c0_8, %c0_9], %17 {strides = array<i32>} : memref<1x16x384xbf16, #tpu.memory_space<vmem>>, vector<1x16x384xbf16>,
    return
  }
  func.func @transform_0(%arg0: i32) -> (i32, i32, i32) {
    %c0_i32 = arith.constant 0 : i32
    %c0_i32_0 = arith.constant 0 : i32
    %c0_i32_1 = arith.constant 0 : i32
    return %arg0, %c0_i32, %c0_i32_0 : i32, i32, i32
  }
  func.func @transform_1(%arg0: i32) -> (i32, i32) {
    %c0_i32 = arith.constant 0 : i32
    %c0_i32_0 = arith.constant 0 : i32
    %c0_i32_1 = arith.constant 0 : i32
    return %c0_i32, %c0_i32_0 : i32, i32
  }
  func.func @transform_2(%arg0: i32) -> (i32, i32) {
    %c0_i32 = arith.constant 0 : i32
    %c0_i32_0 = arith.constant 0 : i32
    %c0_i32_1 = arith.constant 0 : i32
    return %c0_i32, %c0_i32_0 : i32, i32
  }
  func.func @transform_3(%arg0: i32) -> (i32, i32, i32) {
    %c0_i32 = arith.constant 0 : i32
    %c0_i32_0 = arith.constant 0 : i32
    %c0_i32_1 = arith.constant 0 : i32
    return %arg0, %c0_i32, %c0_i32_0 : i32, i32, i32
  }
}

module attributes {stable_mosaic.version = 11 : i64} {
  func.func @_conv_stats_kernel(%arg0: i32, %arg1: memref<1x64x256xbf16, #tpu.memory_space<vmem>>, %arg2: memref<4x32x64xbf16, #tpu.memory_space<vmem>>, %arg3: memref<1x32x128xbf16, #tpu.memory_space<vmem>>, %arg4: memref<1x32x1xf32, #tpu.memory_space<vmem>>, %arg5: memref<1x32x1xf32, #tpu.memory_space<vmem>>) attributes {dimension_semantics = [#tpu.dimension_semantics<parallel>], iteration_bounds = array<i64: 2>, scalar_prefetch = 0 : i64, scratch_operands = 0 : i64, tpu.core_type = #tpu.core_type<tc>, window_params = [{transform_indices = @transform_0, window_bounds = array<i64: 1, 64, 256>}, {pipeline_mode = #tpu.pipeline_mode<synchronous>, transform_indices = @transform_1, window_bounds = array<i64: 4, 32, 64>}, {transform_indices = @transform_2, window_bounds = array<i64: 1, 32, 128>}, {transform_indices = @transform_3, window_bounds = array<i64: 1, 32, 1>}, {transform_indices = @transform_4, window_bounds = array<i64: 1, 32, 1>}]} {
    %cst = arith.constant 0.000000e+00 : f32
    %0 = vector.broadcast %cst : f32 to vector<32x128xf32>
    %c0 = arith.constant 0 : index
    %c0_0 = arith.constant 0 : index
    %c0_1 = arith.constant 0 : index
    %1 = vector.load %arg1[%c0, %c0_0, %c0_1] : memref<1x64x256xbf16, #tpu.memory_space<vmem>>, vector<1x64x128xbf16>
    %2 = vector.shape_cast %1 : vector<1x64x128xbf16> to vector<64x128xbf16>
    %c0_2 = arith.constant 0 : index
    %c0_3 = arith.constant 0 : index
    %c0_4 = arith.constant 0 : index
    %3 = vector.load %arg2[%c0_2, %c0_3, %c0_4] : memref<4x32x64xbf16, #tpu.memory_space<vmem>>, vector<1x32x64xbf16>
    %4 = vector.shape_cast %3 : vector<1x32x64xbf16> to vector<32x64xbf16>
    %cst_5 = arith.constant dense<0.000000e+00> : vector<32x128xf32>
    %5 = tpu.matmul %4, %2, %cst_5 {dimension_numbers = #tpu.dot_dimension_numbers<[1], [0], [0], [1], [0, 0, 1, 1], [], []>} : vector<32x64xbf16>, vector<64x128xbf16>, vector<32x128xf32> -> vector<32x128xf32>
    %6 = arith.addf %0, %5 : vector<32x128xf32>
    %c0_6 = arith.constant 0 : index
    %c0_7 = arith.constant 0 : index
    %c1 = arith.constant 1 : index
    %7 = vector.load %arg1[%c0_6, %c0_7, %c1] : memref<1x64x256xbf16, #tpu.memory_space<vmem>>, vector<1x64x128xbf16>
    %8 = vector.shape_cast %7 : vector<1x64x128xbf16> to vector<64x128xbf16>
    %c1_8 = arith.constant 1 : index
    %c0_9 = arith.constant 0 : index
    %c0_10 = arith.constant 0 : index
    %9 = vector.load %arg2[%c1_8, %c0_9, %c0_10] : memref<4x32x64xbf16, #tpu.memory_space<vmem>>, vector<1x32x64xbf16>
    %10 = vector.shape_cast %9 : vector<1x32x64xbf16> to vector<32x64xbf16>
    %cst_11 = arith.constant dense<0.000000e+00> : vector<32x128xf32>
    %11 = tpu.matmul %10, %8, %cst_11 {dimension_numbers = #tpu.dot_dimension_numbers<[1], [0], [0], [1], [0, 0, 1, 1], [], []>} : vector<32x64xbf16>, vector<64x128xbf16>, vector<32x128xf32> -> vector<32x128xf32>
    %12 = arith.addf %6, %11 : vector<32x128xf32>
    %c0_12 = arith.constant 0 : index
    %c0_13 = arith.constant 0 : index
    %c9 = arith.constant 9 : index
    %13 = vector.load %arg1[%c0_12, %c0_13, %c9] : memref<1x64x256xbf16, #tpu.memory_space<vmem>>, vector<1x64x128xbf16>
    %14 = vector.shape_cast %13 : vector<1x64x128xbf16> to vector<64x128xbf16>
    %c2 = arith.constant 2 : index
    %c0_14 = arith.constant 0 : index
    %c0_15 = arith.constant 0 : index
    %15 = vector.load %arg2[%c2, %c0_14, %c0_15] : memref<4x32x64xbf16, #tpu.memory_space<vmem>>, vector<1x32x64xbf16>
    %16 = vector.shape_cast %15 : vector<1x32x64xbf16> to vector<32x64xbf16>
    %cst_16 = arith.constant dense<0.000000e+00> : vector<32x128xf32>
    %17 = tpu.matmul %16, %14, %cst_16 {dimension_numbers = #tpu.dot_dimension_numbers<[1], [0], [0], [1], [0, 0, 1, 1], [], []>} : vector<32x64xbf16>, vector<64x128xbf16>, vector<32x128xf32> -> vector<32x128xf32>
    %18 = arith.addf %12, %17 : vector<32x128xf32>
    %c0_17 = arith.constant 0 : index
    %c0_18 = arith.constant 0 : index
    %c10 = arith.constant 10 : index
    %19 = vector.load %arg1[%c0_17, %c0_18, %c10] : memref<1x64x256xbf16, #tpu.memory_space<vmem>>, vector<1x64x128xbf16>
    %20 = vector.shape_cast %19 : vector<1x64x128xbf16> to vector<64x128xbf16>
    %c3 = arith.constant 3 : index
    %c0_19 = arith.constant 0 : index
    %c0_20 = arith.constant 0 : index
    %21 = vector.load %arg2[%c3, %c0_19, %c0_20] : memref<4x32x64xbf16, #tpu.memory_space<vmem>>, vector<1x32x64xbf16>
    %22 = vector.shape_cast %21 : vector<1x32x64xbf16> to vector<32x64xbf16>
    %cst_21 = arith.constant dense<0.000000e+00> : vector<32x128xf32>
    %23 = tpu.matmul %22, %20, %cst_21 {dimension_numbers = #tpu.dot_dimension_numbers<[1], [0], [0], [1], [0, 0, 1, 1], [], []>} : vector<32x64xbf16>, vector<64x128xbf16>, vector<32x128xf32> -> vector<32x128xf32>
    %24 = arith.addf %18, %23 : vector<32x128xf32>
    %25 = arith.truncf %24 : vector<32x128xf32> to vector<32x128xbf16>
    %c0_22 = arith.constant 0 : index
    %c0_23 = arith.constant 0 : index
    %c0_24 = arith.constant 0 : index
    %26 = vector.load %arg3[%c0_22, %c0_23, %c0_24] : memref<1x32x128xbf16, #tpu.memory_space<vmem>>, vector<1x32x128xbf16>
    %27 = vector.shape_cast %26 : vector<1x32x128xbf16> to vector<32x128xbf16>
    %28 = vector.shape_cast %25 : vector<32x128xbf16> to vector<1x32x128xbf16>
    tpu.vector_store %arg3[%c0_22, %c0_23, %c0_24], %28 {strides = array<i32>} : memref<1x32x128xbf16, #tpu.memory_space<vmem>>, vector<1x32x128xbf16>,
    %29 = tpu.iota {dimensions = array<i32: 1>} : vector<1x128xi32>
    %c9_i32 = arith.constant 9 : i32
    %c0_i32 = arith.constant 0 : i32
    %30 = arith.cmpi eq, %c9_i32, %c0_i32 : i32
    %c1_i32 = arith.constant 1 : i32
    %31 = arith.select %30, %c1_i32, %c9_i32 : i32
    %32 = vector.broadcast %31 : i32 to vector<1x128xi32>
    %33 = arith.remsi %29, %32 : vector<1x128xi32>
    %c0_i32_25 = arith.constant 0 : i32
    %34 = vector.broadcast %c0_i32_25 : i32 to vector<1x128xi32>
    %35 = arith.cmpi ne, %33, %34 : vector<1x128xi32>
    %c0_i32_26 = arith.constant 0 : i32
    %36 = vector.broadcast %c0_i32_26 : i32 to vector<1x128xi32>
    %37 = arith.cmpi slt, %33, %36 : vector<1x128xi32>
    %c0_i32_27 = arith.constant 0 : i32
    %38 = arith.cmpi slt, %31, %c0_i32_27 : i32
    %39 = vector.broadcast %38 : i1 to vector<1x128xi1>
    %40 = vector.broadcast %39 : vector<1x128xi1> to vector<1x128xi1>
    %41 = arith.xori %37, %40 : vector<1x128xi1>
    %42 = arith.andi %41, %35 : vector<1x128xi1>
    %43 = vector.broadcast %31 : i32 to vector<1x128xi32>
    %44 = arith.addi %33, %43 : vector<1x128xi32>
    %45 = arith.select %42, %44, %33 : vector<1x128xi1>, vector<1x128xi32>
    %c8_i32 = arith.constant 8 : i32
    %46 = vector.broadcast %c8_i32 : i32 to vector<1x128xi32>
    %47 = arith.cmpi slt, %45, %46 : vector<1x128xi32>
    %c72_i32 = arith.constant 72 : i32
    %48 = vector.broadcast %c72_i32 : i32 to vector<1x128xi32>
    %49 = arith.cmpi slt, %29, %48 : vector<1x128xi32>
    %50 = arith.andi %47, %49 : vector<1x128xi1>
    %51 = arith.extui %50 : vector<1x128xi1> to vector<1x128xi32>
    %52 = arith.sitofp %51 : vector<1x128xi32> to vector<1x128xf32>
    %53 = vector.broadcast %52 : vector<1x128xf32> to vector<32x128xf32>
    %54 = arith.mulf %24, %53 : vector<32x128xf32>
    %cst_28 = arith.constant dense<0.000000e+00> : vector<32xf32>
    %55 = vector.multi_reduction <add>, %54, %cst_28 [1] : vector<32x128xf32> to vector<32xf32>
    %56 = vector.shape_cast %55 : vector<32xf32> to vector<32x1xf32>
    %c0_29 = arith.constant 0 : index
    %c0_30 = arith.constant 0 : index
    %c0_31 = arith.constant 0 : index
    %57 = vector.load %arg4[%c0_29, %c0_30, %c0_31] : memref<1x32x1xf32, #tpu.memory_space<vmem>>, vector<1x32x1xf32>
    %58 = vector.shape_cast %57 : vector<1x32x1xf32> to vector<32x1xf32>
    %59 = vector.shape_cast %56 : vector<32x1xf32> to vector<1x32x1xf32>
    tpu.vector_store %arg4[%c0_29, %c0_30, %c0_31], %59 {strides = array<i32>} : memref<1x32x1xf32, #tpu.memory_space<vmem>>, vector<1x32x1xf32>,
    %60 = arith.mulf %54, %24 : vector<32x128xf32>
    %cst_32 = arith.constant dense<0.000000e+00> : vector<32xf32>
    %61 = vector.multi_reduction <add>, %60, %cst_32 [1] : vector<32x128xf32> to vector<32xf32>
    %62 = vector.shape_cast %61 : vector<32xf32> to vector<32x1xf32>
    %c0_33 = arith.constant 0 : index
    %c0_34 = arith.constant 0 : index
    %c0_35 = arith.constant 0 : index
    %63 = vector.load %arg5[%c0_33, %c0_34, %c0_35] : memref<1x32x1xf32, #tpu.memory_space<vmem>>, vector<1x32x1xf32>
    %64 = vector.shape_cast %63 : vector<1x32x1xf32> to vector<32x1xf32>
    %65 = vector.shape_cast %62 : vector<32x1xf32> to vector<1x32x1xf32>
    tpu.vector_store %arg5[%c0_33, %c0_34, %c0_35], %65 {strides = array<i32>} : memref<1x32x1xf32, #tpu.memory_space<vmem>>, vector<1x32x1xf32>,
    return
  }
  func.func @transform_0(%arg0: i32) -> (i32, i32, i32) {
    %c0_i32 = arith.constant 0 : i32
    %c0_i32_0 = arith.constant 0 : i32
    %c0_i32_1 = arith.constant 0 : i32
    return %arg0, %c0_i32, %c0_i32_0 : i32, i32, i32
  }
  func.func @transform_1(%arg0: i32) -> (i32, i32, i32) {
    %c0_i32 = arith.constant 0 : i32
    %c0_i32_0 = arith.constant 0 : i32
    %c0_i32_1 = arith.constant 0 : i32
    %c0_i32_2 = arith.constant 0 : i32
    return %c0_i32, %c0_i32_0, %c0_i32_1 : i32, i32, i32
  }
  func.func @transform_2(%arg0: i32) -> (i32, i32, i32) {
    %c0_i32 = arith.constant 0 : i32
    %c0_i32_0 = arith.constant 0 : i32
    %c0_i32_1 = arith.constant 0 : i32
    return %arg0, %c0_i32, %c0_i32_0 : i32, i32, i32
  }
  func.func @transform_3(%arg0: i32) -> (i32, i32, i32) {
    %c0_i32 = arith.constant 0 : i32
    %c0_i32_0 = arith.constant 0 : i32
    %c0_i32_1 = arith.constant 0 : i32
    return %arg0, %c0_i32, %c0_i32_0 : i32, i32, i32
  }
  func.func @transform_4(%arg0: i32) -> (i32, i32, i32) {
    %c0_i32 = arith.constant 0 : i32
    %c0_i32_0 = arith.constant 0 : i32
    %c0_i32_1 = arith.constant 0 : i32
    return %arg0, %c0_i32, %c0_i32_0 : i32, i32, i32
  }
}

module attributes {stable_mosaic.version = 11 : i64} {
  func.func @_bn_leaky_kernel(%arg0: i32, %arg1: memref<1x32x128xbf16, #tpu.memory_space<vmem>>, %arg2: memref<32x1xf32, #tpu.memory_space<vmem>>, %arg3: memref<32x1xf32, #tpu.memory_space<vmem>>, %arg4: memref<1x32x128xbf16, #tpu.memory_space<vmem>>) attributes {dimension_semantics = [#tpu.dimension_semantics<parallel>], iteration_bounds = array<i64: 2>, scalar_prefetch = 0 : i64, scratch_operands = 0 : i64, tpu.core_type = #tpu.core_type<tc>, window_params = [{transform_indices = @transform_0, window_bounds = array<i64: 1, 32, 128>}, {pipeline_mode = #tpu.pipeline_mode<synchronous>, transform_indices = @transform_1, window_bounds = array<i64: 32, 1>}, {pipeline_mode = #tpu.pipeline_mode<synchronous>, transform_indices = @transform_2, window_bounds = array<i64: 32, 1>}, {transform_indices = @transform_3, window_bounds = array<i64: 1, 32, 128>}]} {
    %c0 = arith.constant 0 : index
    %c0_0 = arith.constant 0 : index
    %c0_1 = arith.constant 0 : index
    %0 = vector.load %arg1[%c0, %c0_0, %c0_1] : memref<1x32x128xbf16, #tpu.memory_space<vmem>>, vector<1x32x128xbf16>
    %1 = vector.shape_cast %0 : vector<1x32x128xbf16> to vector<32x128xbf16>
    %2 = arith.extf %1 : vector<32x128xbf16> to vector<32x128xf32>
    %c0_2 = arith.constant 0 : index
    %c0_3 = arith.constant 0 : index
    %3 = vector.load %arg2[%c0_2, %c0_3] : memref<32x1xf32, #tpu.memory_space<vmem>>, vector<32x1xf32>
    %4 = vector.broadcast %3 : vector<32x1xf32> to vector<32x128xf32>
    %5 = arith.mulf %2, %4 : vector<32x128xf32>
    %c0_4 = arith.constant 0 : index
    %c0_5 = arith.constant 0 : index
    %6 = vector.load %arg3[%c0_4, %c0_5] : memref<32x1xf32, #tpu.memory_space<vmem>>, vector<32x1xf32>
    %7 = vector.broadcast %6 : vector<32x1xf32> to vector<32x128xf32>
    %8 = arith.addf %5, %7 : vector<32x128xf32>
    %cst = arith.constant 0.000000e+00 : f32
    %9 = vector.broadcast %cst : f32 to vector<32x128xf32>
    %10 = arith.cmpf oge, %8, %9 : vector<32x128xf32>
    %cst_6 = arith.constant 1.000000e-01 : f32
    %11 = vector.broadcast %cst_6 : f32 to vector<32x128xf32>
    %12 = arith.mulf %11, %8 : vector<32x128xf32>
    %13 = arith.select %10, %8, %12 : vector<32x128xi1>, vector<32x128xf32>
    %14 = arith.truncf %13 : vector<32x128xf32> to vector<32x128xbf16>
    %c0_7 = arith.constant 0 : index
    %c0_8 = arith.constant 0 : index
    %c0_9 = arith.constant 0 : index
    %15 = vector.load %arg4[%c0_7, %c0_8, %c0_9] : memref<1x32x128xbf16, #tpu.memory_space<vmem>>, vector<1x32x128xbf16>
    %16 = vector.shape_cast %15 : vector<1x32x128xbf16> to vector<32x128xbf16>
    %17 = vector.shape_cast %14 : vector<32x128xbf16> to vector<1x32x128xbf16>
    tpu.vector_store %arg4[%c0_7, %c0_8, %c0_9], %17 {strides = array<i32>} : memref<1x32x128xbf16, #tpu.memory_space<vmem>>, vector<1x32x128xbf16>,
    return
  }
  func.func @transform_0(%arg0: i32) -> (i32, i32, i32) {
    %c0_i32 = arith.constant 0 : i32
    %c0_i32_0 = arith.constant 0 : i32
    %c0_i32_1 = arith.constant 0 : i32
    return %arg0, %c0_i32, %c0_i32_0 : i32, i32, i32
  }
  func.func @transform_1(%arg0: i32) -> (i32, i32) {
    %c0_i32 = arith.constant 0 : i32
    %c0_i32_0 = arith.constant 0 : i32
    %c0_i32_1 = arith.constant 0 : i32
    return %c0_i32, %c0_i32_0 : i32, i32
  }
  func.func @transform_2(%arg0: i32) -> (i32, i32) {
    %c0_i32 = arith.constant 0 : i32
    %c0_i32_0 = arith.constant 0 : i32
    %c0_i32_1 = arith.constant 0 : i32
    return %c0_i32, %c0_i32_0 : i32, i32
  }
  func.func @transform_3(%arg0: i32) -> (i32, i32, i32) {
    %c0_i32 = arith.constant 0 : i32
    %c0_i32_0 = arith.constant 0 : i32
    %c0_i32_1 = arith.constant 0 : i32
    return %arg0, %c0_i32, %c0_i32_0 : i32, i32, i32
  }
}

module attributes {stable_mosaic.version = 11 : i64} {
  func.func @_conv_stats_kernel(%arg0: i32, %arg1: memref<1x128x256xbf16, #tpu.memory_space<vmem>>, %arg2: memref<4x64x128xbf16, #tpu.memory_space<vmem>>, %arg3: memref<1x64x128xbf16, #tpu.memory_space<vmem>>, %arg4: memref<1x64x1xf32, #tpu.memory_space<vmem>>, %arg5: memref<1x64x1xf32, #tpu.memory_space<vmem>>) attributes {dimension_semantics = [#tpu.dimension_semantics<parallel>], iteration_bounds = array<i64: 2>, scalar_prefetch = 0 : i64, scratch_operands = 0 : i64, tpu.core_type = #tpu.core_type<tc>, window_params = [{transform_indices = @transform_0, window_bounds = array<i64: 1, 128, 256>}, {pipeline_mode = #tpu.pipeline_mode<synchronous>, transform_indices = @transform_1, window_bounds = array<i64: 4, 64, 128>}, {transform_indices = @transform_2, window_bounds = array<i64: 1, 64, 128>}, {transform_indices = @transform_3, window_bounds = array<i64: 1, 64, 1>}, {transform_indices = @transform_4, window_bounds = array<i64: 1, 64, 1>}]} {
    %cst = arith.constant 0.000000e+00 : f32
    %0 = vector.broadcast %cst : f32 to vector<64x128xf32>
    %c0 = arith.constant 0 : index
    %c0_0 = arith.constant 0 : index
    %c0_1 = arith.constant 0 : index
    %1 = vector.load %arg1[%c0, %c0_0, %c0_1] : memref<1x128x256xbf16, #tpu.memory_space<vmem>>, vector<1x128x128xbf16>
    %2 = vector.shape_cast %1 : vector<1x128x128xbf16> to vector<128x128xbf16>
    %c0_2 = arith.constant 0 : index
    %c0_3 = arith.constant 0 : index
    %c0_4 = arith.constant 0 : index
    %3 = vector.load %arg2[%c0_2, %c0_3, %c0_4] : memref<4x64x128xbf16, #tpu.memory_space<vmem>>, vector<1x64x128xbf16>
    %4 = vector.shape_cast %3 : vector<1x64x128xbf16> to vector<64x128xbf16>
    %cst_5 = arith.constant dense<0.000000e+00> : vector<64x128xf32>
    %5 = tpu.matmul %4, %2, %cst_5 {dimension_numbers = #tpu.dot_dimension_numbers<[1], [0], [0], [1], [0, 0, 1, 1], [], []>} : vector<64x128xbf16>, vector<128x128xbf16>, vector<64x128xf32> -> vector<64x128xf32>
    %6 = arith.addf %0, %5 : vector<64x128xf32>
    %c0_6 = arith.constant 0 : index
    %c0_7 = arith.constant 0 : index
    %c1 = arith.constant 1 : index
    %7 = vector.load %arg1[%c0_6, %c0_7, %c1] : memref<1x128x256xbf16, #tpu.memory_space<vmem>>, vector<1x128x128xbf16>
    %8 = vector.shape_cast %7 : vector<1x128x128xbf16> to vector<128x128xbf16>
    %c1_8 = arith.constant 1 : index
    %c0_9 = arith.constant 0 : index
    %c0_10 = arith.constant 0 : index
    %9 = vector.load %arg2[%c1_8, %c0_9, %c0_10] : memref<4x64x128xbf16, #tpu.memory_space<vmem>>, vector<1x64x128xbf16>
    %10 = vector.shape_cast %9 : vector<1x64x128xbf16> to vector<64x128xbf16>
    %cst_11 = arith.constant dense<0.000000e+00> : vector<64x128xf32>
    %11 = tpu.matmul %10, %8, %cst_11 {dimension_numbers = #tpu.dot_dimension_numbers<[1], [0], [0], [1], [0, 0, 1, 1], [], []>} : vector<64x128xbf16>, vector<128x128xbf16>, vector<64x128xf32> -> vector<64x128xf32>
    %12 = arith.addf %6, %11 : vector<64x128xf32>
    %c0_12 = arith.constant 0 : index
    %c0_13 = arith.constant 0 : index
    %c5 = arith.constant 5 : index
    %13 = vector.load %arg1[%c0_12, %c0_13, %c5] : memref<1x128x256xbf16, #tpu.memory_space<vmem>>, vector<1x128x128xbf16>
    %14 = vector.shape_cast %13 : vector<1x128x128xbf16> to vector<128x128xbf16>
    %c2 = arith.constant 2 : index
    %c0_14 = arith.constant 0 : index
    %c0_15 = arith.constant 0 : index
    %15 = vector.load %arg2[%c2, %c0_14, %c0_15] : memref<4x64x128xbf16, #tpu.memory_space<vmem>>, vector<1x64x128xbf16>
    %16 = vector.shape_cast %15 : vector<1x64x128xbf16> to vector<64x128xbf16>
    %cst_16 = arith.constant dense<0.000000e+00> : vector<64x128xf32>
    %17 = tpu.matmul %16, %14, %cst_16 {dimension_numbers = #tpu.dot_dimension_numbers<[1], [0], [0], [1], [0, 0, 1, 1], [], []>} : vector<64x128xbf16>, vector<128x128xbf16>, vector<64x128xf32> -> vector<64x128xf32>
    %18 = arith.addf %12, %17 : vector<64x128xf32>
    %c0_17 = arith.constant 0 : index
    %c0_18 = arith.constant 0 : index
    %c6 = arith.constant 6 : index
    %19 = vector.load %arg1[%c0_17, %c0_18, %c6] : memref<1x128x256xbf16, #tpu.memory_space<vmem>>, vector<1x128x128xbf16>
    %20 = vector.shape_cast %19 : vector<1x128x128xbf16> to vector<128x128xbf16>
    %c3 = arith.constant 3 : index
    %c0_19 = arith.constant 0 : index
    %c0_20 = arith.constant 0 : index
    %21 = vector.load %arg2[%c3, %c0_19, %c0_20] : memref<4x64x128xbf16, #tpu.memory_space<vmem>>, vector<1x64x128xbf16>
    %22 = vector.shape_cast %21 : vector<1x64x128xbf16> to vector<64x128xbf16>
    %cst_21 = arith.constant dense<0.000000e+00> : vector<64x128xf32>
    %23 = tpu.matmul %22, %20, %cst_21 {dimension_numbers = #tpu.dot_dimension_numbers<[1], [0], [0], [1], [0, 0, 1, 1], [], []>} : vector<64x128xbf16>, vector<128x128xbf16>, vector<64x128xf32> -> vector<64x128xf32>
    %24 = arith.addf %18, %23 : vector<64x128xf32>
    %25 = arith.truncf %24 : vector<64x128xf32> to vector<64x128xbf16>
    %c0_22 = arith.constant 0 : index
    %c0_23 = arith.constant 0 : index
    %c0_24 = arith.constant 0 : index
    %26 = vector.load %arg3[%c0_22, %c0_23, %c0_24] : memref<1x64x128xbf16, #tpu.memory_space<vmem>>, vector<1x64x128xbf16>
    %27 = vector.shape_cast %26 : vector<1x64x128xbf16> to vector<64x128xbf16>
    %28 = vector.shape_cast %25 : vector<64x128xbf16> to vector<1x64x128xbf16>
    tpu.vector_store %arg3[%c0_22, %c0_23, %c0_24], %28 {strides = array<i32>} : memref<1x64x128xbf16, #tpu.memory_space<vmem>>, vector<1x64x128xbf16>,
    %29 = tpu.iota {dimensions = array<i32: 1>} : vector<1x128xi32>
    %c5_i32 = arith.constant 5 : i32
    %c0_i32 = arith.constant 0 : i32
    %30 = arith.cmpi eq, %c5_i32, %c0_i32 : i32
    %c1_i32 = arith.constant 1 : i32
    %31 = arith.select %30, %c1_i32, %c5_i32 : i32
    %32 = vector.broadcast %31 : i32 to vector<1x128xi32>
    %33 = arith.remsi %29, %32 : vector<1x128xi32>
    %c0_i32_25 = arith.constant 0 : i32
    %34 = vector.broadcast %c0_i32_25 : i32 to vector<1x128xi32>
    %35 = arith.cmpi ne, %33, %34 : vector<1x128xi32>
    %c0_i32_26 = arith.constant 0 : i32
    %36 = vector.broadcast %c0_i32_26 : i32 to vector<1x128xi32>
    %37 = arith.cmpi slt, %33, %36 : vector<1x128xi32>
    %c0_i32_27 = arith.constant 0 : i32
    %38 = arith.cmpi slt, %31, %c0_i32_27 : i32
    %39 = vector.broadcast %38 : i1 to vector<1x128xi1>
    %40 = vector.broadcast %39 : vector<1x128xi1> to vector<1x128xi1>
    %41 = arith.xori %37, %40 : vector<1x128xi1>
    %42 = arith.andi %41, %35 : vector<1x128xi1>
    %43 = vector.broadcast %31 : i32 to vector<1x128xi32>
    %44 = arith.addi %33, %43 : vector<1x128xi32>
    %45 = arith.select %42, %44, %33 : vector<1x128xi1>, vector<1x128xi32>
    %c4_i32 = arith.constant 4 : i32
    %46 = vector.broadcast %c4_i32 : i32 to vector<1x128xi32>
    %47 = arith.cmpi slt, %45, %46 : vector<1x128xi32>
    %c20_i32 = arith.constant 20 : i32
    %48 = vector.broadcast %c20_i32 : i32 to vector<1x128xi32>
    %49 = arith.cmpi slt, %29, %48 : vector<1x128xi32>
    %50 = arith.andi %47, %49 : vector<1x128xi1>
    %51 = arith.extui %50 : vector<1x128xi1> to vector<1x128xi32>
    %52 = arith.sitofp %51 : vector<1x128xi32> to vector<1x128xf32>
    %53 = vector.broadcast %52 : vector<1x128xf32> to vector<64x128xf32>
    %54 = arith.mulf %24, %53 : vector<64x128xf32>
    %cst_28 = arith.constant dense<0.000000e+00> : vector<64xf32>
    %55 = vector.multi_reduction <add>, %54, %cst_28 [1] : vector<64x128xf32> to vector<64xf32>
    %56 = vector.shape_cast %55 : vector<64xf32> to vector<64x1xf32>
    %c0_29 = arith.constant 0 : index
    %c0_30 = arith.constant 0 : index
    %c0_31 = arith.constant 0 : index
    %57 = vector.load %arg4[%c0_29, %c0_30, %c0_31] : memref<1x64x1xf32, #tpu.memory_space<vmem>>, vector<1x64x1xf32>
    %58 = vector.shape_cast %57 : vector<1x64x1xf32> to vector<64x1xf32>
    %59 = vector.shape_cast %56 : vector<64x1xf32> to vector<1x64x1xf32>
    tpu.vector_store %arg4[%c0_29, %c0_30, %c0_31], %59 {strides = array<i32>} : memref<1x64x1xf32, #tpu.memory_space<vmem>>, vector<1x64x1xf32>,
    %60 = arith.mulf %54, %24 : vector<64x128xf32>
    %cst_32 = arith.constant dense<0.000000e+00> : vector<64xf32>
    %61 = vector.multi_reduction <add>, %60, %cst_32 [1] : vector<64x128xf32> to vector<64xf32>
    %62 = vector.shape_cast %61 : vector<64xf32> to vector<64x1xf32>
    %c0_33 = arith.constant 0 : index
    %c0_34 = arith.constant 0 : index
    %c0_35 = arith.constant 0 : index
    %63 = vector.load %arg5[%c0_33, %c0_34, %c0_35] : memref<1x64x1xf32, #tpu.memory_space<vmem>>, vector<1x64x1xf32>
    %64 = vector.shape_cast %63 : vector<1x64x1xf32> to vector<64x1xf32>
    %65 = vector.shape_cast %62 : vector<64x1xf32> to vector<1x64x1xf32>
    tpu.vector_store %arg5[%c0_33, %c0_34, %c0_35], %65 {strides = array<i32>} : memref<1x64x1xf32, #tpu.memory_space<vmem>>, vector<1x64x1xf32>,
    return
  }
  func.func @transform_0(%arg0: i32) -> (i32, i32, i32) {
    %c0_i32 = arith.constant 0 : i32
    %c0_i32_0 = arith.constant 0 : i32
    %c0_i32_1 = arith.constant 0 : i32
    return %arg0, %c0_i32, %c0_i32_0 : i32, i32, i32
  }
  func.func @transform_1(%arg0: i32) -> (i32, i32, i32) {
    %c0_i32 = arith.constant 0 : i32
    %c0_i32_0 = arith.constant 0 : i32
    %c0_i32_1 = arith.constant 0 : i32
    %c0_i32_2 = arith.constant 0 : i32
    return %c0_i32, %c0_i32_0, %c0_i32_1 : i32, i32, i32
  }
  func.func @transform_2(%arg0: i32) -> (i32, i32, i32) {
    %c0_i32 = arith.constant 0 : i32
    %c0_i32_0 = arith.constant 0 : i32
    %c0_i32_1 = arith.constant 0 : i32
    return %arg0, %c0_i32, %c0_i32_0 : i32, i32, i32
  }
  func.func @transform_3(%arg0: i32) -> (i32, i32, i32) {
    %c0_i32 = arith.constant 0 : i32
    %c0_i32_0 = arith.constant 0 : i32
    %c0_i32_1 = arith.constant 0 : i32
    return %arg0, %c0_i32, %c0_i32_0 : i32, i32, i32
  }
  func.func @transform_4(%arg0: i32) -> (i32, i32, i32) {
    %c0_i32 = arith.constant 0 : i32
    %c0_i32_0 = arith.constant 0 : i32
    %c0_i32_1 = arith.constant 0 : i32
    return %arg0, %c0_i32, %c0_i32_0 : i32, i32, i32
  }
}

module attributes {stable_mosaic.version = 11 : i64} {
  func.func @_bn_leaky_kernel(%arg0: i32, %arg1: memref<1x64x128xbf16, #tpu.memory_space<vmem>>, %arg2: memref<64x1xf32, #tpu.memory_space<vmem>>, %arg3: memref<64x1xf32, #tpu.memory_space<vmem>>, %arg4: memref<1x64x128xbf16, #tpu.memory_space<vmem>>) attributes {dimension_semantics = [#tpu.dimension_semantics<parallel>], iteration_bounds = array<i64: 2>, scalar_prefetch = 0 : i64, scratch_operands = 0 : i64, tpu.core_type = #tpu.core_type<tc>, window_params = [{transform_indices = @transform_0, window_bounds = array<i64: 1, 64, 128>}, {pipeline_mode = #tpu.pipeline_mode<synchronous>, transform_indices = @transform_1, window_bounds = array<i64: 64, 1>}, {pipeline_mode = #tpu.pipeline_mode<synchronous>, transform_indices = @transform_2, window_bounds = array<i64: 64, 1>}, {transform_indices = @transform_3, window_bounds = array<i64: 1, 64, 128>}]} {
    %c0 = arith.constant 0 : index
    %c0_0 = arith.constant 0 : index
    %c0_1 = arith.constant 0 : index
    %0 = vector.load %arg1[%c0, %c0_0, %c0_1] : memref<1x64x128xbf16, #tpu.memory_space<vmem>>, vector<1x64x128xbf16>
    %1 = vector.shape_cast %0 : vector<1x64x128xbf16> to vector<64x128xbf16>
    %2 = arith.extf %1 : vector<64x128xbf16> to vector<64x128xf32>
    %c0_2 = arith.constant 0 : index
    %c0_3 = arith.constant 0 : index
    %3 = vector.load %arg2[%c0_2, %c0_3] : memref<64x1xf32, #tpu.memory_space<vmem>>, vector<64x1xf32>
    %4 = vector.broadcast %3 : vector<64x1xf32> to vector<64x128xf32>
    %5 = arith.mulf %2, %4 : vector<64x128xf32>
    %c0_4 = arith.constant 0 : index
    %c0_5 = arith.constant 0 : index
    %6 = vector.load %arg3[%c0_4, %c0_5] : memref<64x1xf32, #tpu.memory_space<vmem>>, vector<64x1xf32>
    %7 = vector.broadcast %6 : vector<64x1xf32> to vector<64x128xf32>
    %8 = arith.addf %5, %7 : vector<64x128xf32>
    %cst = arith.constant 0.000000e+00 : f32
    %9 = vector.broadcast %cst : f32 to vector<64x128xf32>
    %10 = arith.cmpf oge, %8, %9 : vector<64x128xf32>
    %cst_6 = arith.constant 1.000000e-01 : f32
    %11 = vector.broadcast %cst_6 : f32 to vector<64x128xf32>
    %12 = arith.mulf %11, %8 : vector<64x128xf32>
    %13 = arith.select %10, %8, %12 : vector<64x128xi1>, vector<64x128xf32>
    %14 = arith.truncf %13 : vector<64x128xf32> to vector<64x128xbf16>
    %c0_7 = arith.constant 0 : index
    %c0_8 = arith.constant 0 : index
    %c0_9 = arith.constant 0 : index
    %15 = vector.load %arg4[%c0_7, %c0_8, %c0_9] : memref<1x64x128xbf16, #tpu.memory_space<vmem>>, vector<1x64x128xbf16>
    %16 = vector.shape_cast %15 : vector<1x64x128xbf16> to vector<64x128xbf16>
    %17 = vector.shape_cast %14 : vector<64x128xbf16> to vector<1x64x128xbf16>
    tpu.vector_store %arg4[%c0_7, %c0_8, %c0_9], %17 {strides = array<i32>} : memref<1x64x128xbf16, #tpu.memory_space<vmem>>, vector<1x64x128xbf16>,
    return
  }
  func.func @transform_0(%arg0: i32) -> (i32, i32, i32) {
    %c0_i32 = arith.constant 0 : i32
    %c0_i32_0 = arith.constant 0 : i32
    %c0_i32_1 = arith.constant 0 : i32
    return %arg0, %c0_i32, %c0_i32_0 : i32, i32, i32
  }
  func.func @transform_1(%arg0: i32) -> (i32, i32) {
    %c0_i32 = arith.constant 0 : i32
    %c0_i32_0 = arith.constant 0 : i32
    %c0_i32_1 = arith.constant 0 : i32
    return %c0_i32, %c0_i32_0 : i32, i32
  }
  func.func @transform_2(%arg0: i32) -> (i32, i32) {
    %c0_i32 = arith.constant 0 : i32
    %c0_i32_0 = arith.constant 0 : i32
    %c0_i32_1 = arith.constant 0 : i32
    return %c0_i32, %c0_i32_0 : i32, i32
  }
  func.func @transform_3(%arg0: i32) -> (i32, i32, i32) {
    %c0_i32 = arith.constant 0 : i32
    %c0_i32_0 = arith.constant 0 : i32
    %c0_i32_1 = arith.constant 0 : i32
    return %arg0, %c0_i32, %c0_i32_0 : i32, i32, i32
  }
}

module attributes {stable_mosaic.version = 11 : i64} {
  func.func @_conv_stats_kernel(%arg0: i32, %arg1: memref<1x256x256xbf16, #tpu.memory_space<vmem>>, %arg2: memref<4x128x256xbf16, #tpu.memory_space<vmem>>, %arg3: memref<1x128x128xbf16, #tpu.memory_space<vmem>>, %arg4: memref<1x128x1xf32, #tpu.memory_space<vmem>>, %arg5: memref<1x128x1xf32, #tpu.memory_space<vmem>>) attributes {dimension_semantics = [#tpu.dimension_semantics<parallel>], iteration_bounds = array<i64: 2>, scalar_prefetch = 0 : i64, scratch_operands = 0 : i64, tpu.core_type = #tpu.core_type<tc>, window_params = [{transform_indices = @transform_0, window_bounds = array<i64: 1, 256, 256>}, {pipeline_mode = #tpu.pipeline_mode<synchronous>, transform_indices = @transform_1, window_bounds = array<i64: 4, 128, 256>}, {transform_indices = @transform_2, window_bounds = array<i64: 1, 128, 128>}, {transform_indices = @transform_3, window_bounds = array<i64: 1, 128, 1>}, {transform_indices = @transform_4, window_bounds = array<i64: 1, 128, 1>}]} {
    %cst = arith.constant 0.000000e+00 : f32
    %0 = vector.broadcast %cst : f32 to vector<128x128xf32>
    %c0 = arith.constant 0 : index
    %c0_0 = arith.constant 0 : index
    %c0_1 = arith.constant 0 : index
    %1 = vector.load %arg1[%c0, %c0_0, %c0_1] : memref<1x256x256xbf16, #tpu.memory_space<vmem>>, vector<1x256x128xbf16>
    %2 = vector.shape_cast %1 : vector<1x256x128xbf16> to vector<256x128xbf16>
    %c0_2 = arith.constant 0 : index
    %c0_3 = arith.constant 0 : index
    %c0_4 = arith.constant 0 : index
    %3 = vector.load %arg2[%c0_2, %c0_3, %c0_4] : memref<4x128x256xbf16, #tpu.memory_space<vmem>>, vector<1x128x256xbf16>
    %4 = vector.shape_cast %3 : vector<1x128x256xbf16> to vector<128x256xbf16>
    %cst_5 = arith.constant dense<0.000000e+00> : vector<128x128xf32>
    %5 = tpu.matmul %4, %2, %cst_5 {dimension_numbers = #tpu.dot_dimension_numbers<[1], [0], [0], [1], [0, 0, 1, 1], [], []>} : vector<128x256xbf16>, vector<256x128xbf16>, vector<128x128xf32> -> vector<128x128xf32>
    %6 = arith.addf %0, %5 : vector<128x128xf32>
    %c0_6 = arith.constant 0 : index
    %c0_7 = arith.constant 0 : index
    %c1 = arith.constant 1 : index
    %7 = vector.load %arg1[%c0_6, %c0_7, %c1] : memref<1x256x256xbf16, #tpu.memory_space<vmem>>, vector<1x256x128xbf16>
    %8 = vector.shape_cast %7 : vector<1x256x128xbf16> to vector<256x128xbf16>
    %c1_8 = arith.constant 1 : index
    %c0_9 = arith.constant 0 : index
    %c0_10 = arith.constant 0 : index
    %9 = vector.load %arg2[%c1_8, %c0_9, %c0_10] : memref<4x128x256xbf16, #tpu.memory_space<vmem>>, vector<1x128x256xbf16>
    %10 = vector.shape_cast %9 : vector<1x128x256xbf16> to vector<128x256xbf16>
    %cst_11 = arith.constant dense<0.000000e+00> : vector<128x128xf32>
    %11 = tpu.matmul %10, %8, %cst_11 {dimension_numbers = #tpu.dot_dimension_numbers<[1], [0], [0], [1], [0, 0, 1, 1], [], []>} : vector<128x256xbf16>, vector<256x128xbf16>, vector<128x128xf32> -> vector<128x128xf32>
    %12 = arith.addf %6, %11 : vector<128x128xf32>
    %c0_12 = arith.constant 0 : index
    %c0_13 = arith.constant 0 : index
    %c3 = arith.constant 3 : index
    %13 = vector.load %arg1[%c0_12, %c0_13, %c3] : memref<1x256x256xbf16, #tpu.memory_space<vmem>>, vector<1x256x128xbf16>
    %14 = vector.shape_cast %13 : vector<1x256x128xbf16> to vector<256x128xbf16>
    %c2 = arith.constant 2 : index
    %c0_14 = arith.constant 0 : index
    %c0_15 = arith.constant 0 : index
    %15 = vector.load %arg2[%c2, %c0_14, %c0_15] : memref<4x128x256xbf16, #tpu.memory_space<vmem>>, vector<1x128x256xbf16>
    %16 = vector.shape_cast %15 : vector<1x128x256xbf16> to vector<128x256xbf16>
    %cst_16 = arith.constant dense<0.000000e+00> : vector<128x128xf32>
    %17 = tpu.matmul %16, %14, %cst_16 {dimension_numbers = #tpu.dot_dimension_numbers<[1], [0], [0], [1], [0, 0, 1, 1], [], []>} : vector<128x256xbf16>, vector<256x128xbf16>, vector<128x128xf32> -> vector<128x128xf32>
    %18 = arith.addf %12, %17 : vector<128x128xf32>
    %c0_17 = arith.constant 0 : index
    %c0_18 = arith.constant 0 : index
    %c4 = arith.constant 4 : index
    %19 = vector.load %arg1[%c0_17, %c0_18, %c4] : memref<1x256x256xbf16, #tpu.memory_space<vmem>>, vector<1x256x128xbf16>
    %20 = vector.shape_cast %19 : vector<1x256x128xbf16> to vector<256x128xbf16>
    %c3_19 = arith.constant 3 : index
    %c0_20 = arith.constant 0 : index
    %c0_21 = arith.constant 0 : index
    %21 = vector.load %arg2[%c3_19, %c0_20, %c0_21] : memref<4x128x256xbf16, #tpu.memory_space<vmem>>, vector<1x128x256xbf16>
    %22 = vector.shape_cast %21 : vector<1x128x256xbf16> to vector<128x256xbf16>
    %cst_22 = arith.constant dense<0.000000e+00> : vector<128x128xf32>
    %23 = tpu.matmul %22, %20, %cst_22 {dimension_numbers = #tpu.dot_dimension_numbers<[1], [0], [0], [1], [0, 0, 1, 1], [], []>} : vector<128x256xbf16>, vector<256x128xbf16>, vector<128x128xf32> -> vector<128x128xf32>
    %24 = arith.addf %18, %23 : vector<128x128xf32>
    %25 = arith.truncf %24 : vector<128x128xf32> to vector<128x128xbf16>
    %c0_23 = arith.constant 0 : index
    %c0_24 = arith.constant 0 : index
    %c0_25 = arith.constant 0 : index
    %26 = vector.load %arg3[%c0_23, %c0_24, %c0_25] : memref<1x128x128xbf16, #tpu.memory_space<vmem>>, vector<1x128x128xbf16>
    %27 = vector.shape_cast %26 : vector<1x128x128xbf16> to vector<128x128xbf16>
    %28 = vector.shape_cast %25 : vector<128x128xbf16> to vector<1x128x128xbf16>
    tpu.vector_store %arg3[%c0_23, %c0_24, %c0_25], %28 {strides = array<i32>} : memref<1x128x128xbf16, #tpu.memory_space<vmem>>, vector<1x128x128xbf16>,
    %29 = tpu.iota {dimensions = array<i32: 1>} : vector<1x128xi32>
    %c3_i32 = arith.constant 3 : i32
    %c0_i32 = arith.constant 0 : i32
    %30 = arith.cmpi eq, %c3_i32, %c0_i32 : i32
    %c1_i32 = arith.constant 1 : i32
    %31 = arith.select %30, %c1_i32, %c3_i32 : i32
    %32 = vector.broadcast %31 : i32 to vector<1x128xi32>
    %33 = arith.remsi %29, %32 : vector<1x128xi32>
    %c0_i32_26 = arith.constant 0 : i32
    %34 = vector.broadcast %c0_i32_26 : i32 to vector<1x128xi32>
    %35 = arith.cmpi ne, %33, %34 : vector<1x128xi32>
    %c0_i32_27 = arith.constant 0 : i32
    %36 = vector.broadcast %c0_i32_27 : i32 to vector<1x128xi32>
    %37 = arith.cmpi slt, %33, %36 : vector<1x128xi32>
    %c0_i32_28 = arith.constant 0 : i32
    %38 = arith.cmpi slt, %31, %c0_i32_28 : i32
    %39 = vector.broadcast %38 : i1 to vector<1x128xi1>
    %40 = vector.broadcast %39 : vector<1x128xi1> to vector<1x128xi1>
    %41 = arith.xori %37, %40 : vector<1x128xi1>
    %42 = arith.andi %41, %35 : vector<1x128xi1>
    %43 = vector.broadcast %31 : i32 to vector<1x128xi32>
    %44 = arith.addi %33, %43 : vector<1x128xi32>
    %45 = arith.select %42, %44, %33 : vector<1x128xi1>, vector<1x128xi32>
    %c2_i32 = arith.constant 2 : i32
    %46 = vector.broadcast %c2_i32 : i32 to vector<1x128xi32>
    %47 = arith.cmpi slt, %45, %46 : vector<1x128xi32>
    %c6_i32 = arith.constant 6 : i32
    %48 = vector.broadcast %c6_i32 : i32 to vector<1x128xi32>
    %49 = arith.cmpi slt, %29, %48 : vector<1x128xi32>
    %50 = arith.andi %47, %49 : vector<1x128xi1>
    %51 = arith.extui %50 : vector<1x128xi1> to vector<1x128xi32>
    %52 = arith.sitofp %51 : vector<1x128xi32> to vector<1x128xf32>
    %53 = vector.broadcast %52 : vector<1x128xf32> to vector<128x128xf32>
    %54 = arith.mulf %24, %53 : vector<128x128xf32>
    %cst_29 = arith.constant dense<0.000000e+00> : vector<128xf32>
    %55 = vector.multi_reduction <add>, %54, %cst_29 [1] : vector<128x128xf32> to vector<128xf32>
    %56 = vector.shape_cast %55 : vector<128xf32> to vector<128x1xf32>
    %c0_30 = arith.constant 0 : index
    %c0_31 = arith.constant 0 : index
    %c0_32 = arith.constant 0 : index
    %57 = vector.load %arg4[%c0_30, %c0_31, %c0_32] : memref<1x128x1xf32, #tpu.memory_space<vmem>>, vector<1x128x1xf32>
    %58 = vector.shape_cast %57 : vector<1x128x1xf32> to vector<128x1xf32>
    %59 = vector.shape_cast %56 : vector<128x1xf32> to vector<1x128x1xf32>
    tpu.vector_store %arg4[%c0_30, %c0_31, %c0_32], %59 {strides = array<i32>} : memref<1x128x1xf32, #tpu.memory_space<vmem>>, vector<1x128x1xf32>,
    %60 = arith.mulf %54, %24 : vector<128x128xf32>
    %cst_33 = arith.constant dense<0.000000e+00> : vector<128xf32>
    %61 = vector.multi_reduction <add>, %60, %cst_33 [1] : vector<128x128xf32> to vector<128xf32>
    %62 = vector.shape_cast %61 : vector<128xf32> to vector<128x1xf32>
    %c0_34 = arith.constant 0 : index
    %c0_35 = arith.constant 0 : index
    %c0_36 = arith.constant 0 : index
    %63 = vector.load %arg5[%c0_34, %c0_35, %c0_36] : memref<1x128x1xf32, #tpu.memory_space<vmem>>, vector<1x128x1xf32>
    %64 = vector.shape_cast %63 : vector<1x128x1xf32> to vector<128x1xf32>
    %65 = vector.shape_cast %62 : vector<128x1xf32> to vector<1x128x1xf32>
    tpu.vector_store %arg5[%c0_34, %c0_35, %c0_36], %65 {strides = array<i32>} : memref<1x128x1xf32, #tpu.memory_space<vmem>>, vector<1x128x1xf32>,
    return
  }
  func.func @transform_0(%arg0: i32) -> (i32, i32, i32) {
    %c0_i32 = arith.constant 0 : i32
    %c0_i32_0 = arith.constant 0 : i32
    %c0_i32_1 = arith.constant 0 : i32
    return %arg0, %c0_i32, %c0_i32_0 : i32, i32, i32
  }
  func.func @transform_1(%arg0: i32) -> (i32, i32, i32) {
    %c0_i32 = arith.constant 0 : i32
    %c0_i32_0 = arith.constant 0 : i32
    %c0_i32_1 = arith.constant 0 : i32
    %c0_i32_2 = arith.constant 0 : i32
    return %c0_i32, %c0_i32_0, %c0_i32_1 : i32, i32, i32
  }
  func.func @transform_2(%arg0: i32) -> (i32, i32, i32) {
    %c0_i32 = arith.constant 0 : i32
    %c0_i32_0 = arith.constant 0 : i32
    %c0_i32_1 = arith.constant 0 : i32
    return %arg0, %c0_i32, %c0_i32_0 : i32, i32, i32
  }
  func.func @transform_3(%arg0: i32) -> (i32, i32, i32) {
    %c0_i32 = arith.constant 0 : i32
    %c0_i32_0 = arith.constant 0 : i32
    %c0_i32_1 = arith.constant 0 : i32
    return %arg0, %c0_i32, %c0_i32_0 : i32, i32, i32
  }
  func.func @transform_4(%arg0: i32) -> (i32, i32, i32) {
    %c0_i32 = arith.constant 0 : i32
    %c0_i32_0 = arith.constant 0 : i32
    %c0_i32_1 = arith.constant 0 : i32
    return %arg0, %c0_i32, %c0_i32_0 : i32, i32, i32
  }
}

module attributes {stable_mosaic.version = 11 : i64} {
  func.func @_bn_leaky_kernel(%arg0: i32, %arg1: memref<1x128x128xbf16, #tpu.memory_space<vmem>>, %arg2: memref<128x1xf32, #tpu.memory_space<vmem>>, %arg3: memref<128x1xf32, #tpu.memory_space<vmem>>, %arg4: memref<1x128x128xbf16, #tpu.memory_space<vmem>>) attributes {dimension_semantics = [#tpu.dimension_semantics<parallel>], iteration_bounds = array<i64: 2>, scalar_prefetch = 0 : i64, scratch_operands = 0 : i64, tpu.core_type = #tpu.core_type<tc>, window_params = [{transform_indices = @transform_0, window_bounds = array<i64: 1, 128, 128>}, {pipeline_mode = #tpu.pipeline_mode<synchronous>, transform_indices = @transform_1, window_bounds = array<i64: 128, 1>}, {pipeline_mode = #tpu.pipeline_mode<synchronous>, transform_indices = @transform_2, window_bounds = array<i64: 128, 1>}, {transform_indices = @transform_3, window_bounds = array<i64: 1, 128, 128>}]} {
    %c0 = arith.constant 0 : index
    %c0_0 = arith.constant 0 : index
    %c0_1 = arith.constant 0 : index
    %0 = vector.load %arg1[%c0, %c0_0, %c0_1] : memref<1x128x128xbf16, #tpu.memory_space<vmem>>, vector<1x128x128xbf16>
    %1 = vector.shape_cast %0 : vector<1x128x128xbf16> to vector<128x128xbf16>
    %2 = arith.extf %1 : vector<128x128xbf16> to vector<128x128xf32>
    %c0_2 = arith.constant 0 : index
    %c0_3 = arith.constant 0 : index
    %3 = vector.load %arg2[%c0_2, %c0_3] : memref<128x1xf32, #tpu.memory_space<vmem>>, vector<128x1xf32>
    %4 = vector.broadcast %3 : vector<128x1xf32> to vector<128x128xf32>
    %5 = arith.mulf %2, %4 : vector<128x128xf32>
    %c0_4 = arith.constant 0 : index
    %c0_5 = arith.constant 0 : index
    %6 = vector.load %arg3[%c0_4, %c0_5] : memref<128x1xf32, #tpu.memory_space<vmem>>, vector<128x1xf32>
    %7 = vector.broadcast %6 : vector<128x1xf32> to vector<128x128xf32>
    %8 = arith.addf %5, %7 : vector<128x128xf32>
    %cst = arith.constant 0.000000e+00 : f32
    %9 = vector.broadcast %cst : f32 to vector<128x128xf32>
    %10 = arith.cmpf oge, %8, %9 : vector<128x128xf32>
    %cst_6 = arith.constant 1.000000e-01 : f32
    %11 = vector.broadcast %cst_6 : f32 to vector<128x128xf32>
    %12 = arith.mulf %11, %8 : vector<128x128xf32>
    %13 = arith.select %10, %8, %12 : vector<128x128xi1>, vector<128x128xf32>
    %14 = arith.truncf %13 : vector<128x128xf32> to vector<128x128xbf16>
    %c0_7 = arith.constant 0 : index
    %c0_8 = arith.constant 0 : index
    %c0_9 = arith.constant 0 : index
    %15 = vector.load %arg4[%c0_7, %c0_8, %c0_9] : memref<1x128x128xbf16, #tpu.memory_space<vmem>>, vector<1x128x128xbf16>
    %16 = vector.shape_cast %15 : vector<1x128x128xbf16> to vector<128x128xbf16>
    %17 = vector.shape_cast %14 : vector<128x128xbf16> to vector<1x128x128xbf16>
    tpu.vector_store %arg4[%c0_7, %c0_8, %c0_9], %17 {strides = array<i32>} : memref<1x128x128xbf16, #tpu.memory_space<vmem>>, vector<1x128x128xbf16>,
    return
  }
  func.func @transform_0(%arg0: i32) -> (i32, i32, i32) {
    %c0_i32 = arith.constant 0 : i32
    %c0_i32_0 = arith.constant 0 : i32
    %c0_i32_1 = arith.constant 0 : i32
    return %arg0, %c0_i32, %c0_i32_0 : i32, i32, i32
  }
  func.func @transform_1(%arg0: i32) -> (i32, i32) {
    %c0_i32 = arith.constant 0 : i32
    %c0_i32_0 = arith.constant 0 : i32
    %c0_i32_1 = arith.constant 0 : i32
    return %c0_i32, %c0_i32_0 : i32, i32
  }
  func.func @transform_2(%arg0: i32) -> (i32, i32) {
    %c0_i32 = arith.constant 0 : i32
    %c0_i32_0 = arith.constant 0 : i32
    %c0_i32_1 = arith.constant 0 : i32
    return %c0_i32, %c0_i32_0 : i32, i32
  }
  func.func @transform_3(%arg0: i32) -> (i32, i32, i32) {
    %c0_i32 = arith.constant 0 : i32
    %c0_i32_0 = arith.constant 0 : i32
    %c0_i32_1 = arith.constant 0 : i32
    return %arg0, %c0_i32, %c0_i32_0 : i32, i32, i32
  }
}

module attributes {stable_mosaic.version = 11 : i64} {
  func.func @_final_dot_kernel(%arg0: memref<2x512xbf16, #tpu.memory_space<vmem>>, %arg1: memref<1x512xbf16, #tpu.memory_space<vmem>>, %arg2: memref<2x1xf32, #tpu.memory_space<vmem>>) attributes {dimension_semantics = [], scalar_prefetch = 0 : i64, scratch_operands = 0 : i64, tpu.core_type = #tpu.core_type<tc>} {
    %c0 = arith.constant 0 : index
    %c0_0 = arith.constant 0 : index
    %0 = vector.load %arg0[%c0, %c0_0] : memref<2x512xbf16, #tpu.memory_space<vmem>>, vector<2x512xbf16>
    %1 = arith.extf %0 : vector<2x512xbf16> to vector<2x512xf32>
    %c0_1 = arith.constant 0 : index
    %c0_2 = arith.constant 0 : index
    %2 = vector.load %arg1[%c0_1, %c0_2] : memref<1x512xbf16, #tpu.memory_space<vmem>>, vector<1x512xbf16>
    %3 = arith.extf %2 : vector<1x512xbf16> to vector<1x512xf32>
    %4 = vector.broadcast %3 : vector<1x512xf32> to vector<2x512xf32>
    %5 = arith.mulf %1, %4 : vector<2x512xf32>
    %cst = arith.constant dense<0.000000e+00> : vector<2xf32>
    %6 = vector.multi_reduction <add>, %5, %cst [1] : vector<2x512xf32> to vector<2xf32>
    %7 = vector.shape_cast %6 : vector<2xf32> to vector<2x1xf32>
    %c0_3 = arith.constant 0 : index
    %c0_4 = arith.constant 0 : index
    %8 = vector.load %arg2[%c0_3, %c0_4] : memref<2x1xf32, #tpu.memory_space<vmem>>, vector<2x1xf32>
    tpu.vector_store %arg2[%c0_3, %c0_4], %7 {strides = array<i32>} : memref<2x1xf32, #tpu.memory_space<vmem>>, vector<2x1xf32>,
    return
  }
}

</mosaic_0001>

<bundles_post_ra>
// kernel: discriminator_forward.10
= control target key start
LH: loop header
LB: loop body
LE: loop exit
PB: predicated region body
PF: predicated region fallthrough
CT: control target
= control target key end

     0   :  { %s3460_s9 = smov 0   ;;  %s4077_s0 = inlined_call_operand.vmem [shape: bf16[2,3,1280], index: 0, kind: input, shape index: {}]   ;;  %s4078_s1 = inlined_call_operand.vmem [shape: bf16[9,8,3], index: 1, kind: input, shape index: {}]   ;;  %s4079_s2 = inlined_call_operand.vmem [shape: bf16[2,8,1152], index: 2, kind: output, shape index: {}]  }
   0x1 LB: > { %s3093_s10 = sadd.s32 4294967295, %s3430_s9   ;;  %p3097_p0 = scmp.ge.s32.totalorder %s3430_s9, 1  ;;  %s3430_s9 = sphi %s3460_s9, %s12_s9  }
   0x2   : > { %p112_p1 = scmp.lt.s32.totalorder %s3430_s9, 3 }
   0x4   : > { %p113_p2 = pnand %p3097_p0, %p112_p1 }
   0x5   : > { %p134_p3 = scmp.lt.s32.totalorder (!%p113_p2), %s3093_s10, 1  ;;  %v159_v0 = vlaneseq (!%p113_p2)  ;;  %v3432_v1 = vmov (!%p113_p2), 1983009808   ;;  %v3433_v4 = vmov (!%p113_p2), 0   ;;  %vm231_vm0 = vcmask (!%p113_p2), 1040384   ;;  %s3435_s15 = smov (!%p113_p2), 127  }
   0x6   : > { %116 = sbr.rel (%p113_p2) target bundleno = 537 (0x219), region = 28  ;;  %v157_v2 = vunpack.c.l.s4 (!%p113_p2), %v3432_v1  ;;  %618 = vmatprep.mubr.bf16.mxu0 (!%p113_p2), %v3433_v4  ;;  %294 = vmatprep.mubr.bf16.mxu1 (!%p113_p2), %v3433_v4  ;;  %vm232_vm1 = vcmask (!%p113_p2), 1041408   ;;  %v3434_v7 = vmov (!%p113_p2), 65535   ;;  %s3436_s16 = smov (!%p113_p2), 126   ;;  %v3512_v21 = vld [vmem:[%s4078_s1] sm:$0xf] (!%p113_p2) }
   0x7   : > { %v160_v3 = vshrl.u32 (!%p113_p2), %v159_v0, 7  ;;  %v233_v8 = vsel (!%p113_p2), %vm231_vm0, 4294967295, %v3434_v7  ;;  %vm227_vm2 = vcmask (!%p113_p2), 23552   ;;  %v3437_v23 = vmov (!%p113_p2), 0.0   ;;  %s3439_s19 = smov (!%p113_p2), 94   ;;  %s3440_s20 = smov (!%p113_p2), 93  }
   0x8   : > { %v158_v5 = vunpack.c.0.s8 (!%p113_p2), %v157_v2  ;;  %v3484_v13 = vsel (!%p113_p2), %vm232_vm1, %v233_v8, 0  ;;  %vm3438_vm3 = vmmov (!%p113_p2), 0   ;;  %s3441_s21 = smov (!%p113_p2), 92   ;;  %s3442_s22 = smov (!%p113_p2), 60   ;;  %vm217_vm4 = vcmask (!%p113_p2), 1039360  }
   0x9   : > { %s3443_s23 = smov (!%p113_p2), 59   ;;  %vm778_vm5 = vcmask (!%p113_p2), 1031168   ;;  %v3644_v46 = vld [vmem:[%s4078_s1 + $0x4] sm:$0xf] (!%p113_p2)  ;;  %v3663_v54 = vld [vmem:[%s4078_s1 + $0x8] sm:$0xf] (!%p113_p2) }
   0xa   : > { %v161_v6 = vsub.s32 (!%p113_p2), %v158_v5, %v160_v3  ;;  %s3444_s28 = smov (!%p113_p2), 58   ;;  %vm1101_vm6 = vcmask (!%p113_p2), 769024   ;;  %vm1424_vm7 = vcmask (!%p113_p2), 760832   ;;  %vm1747_vm8 = vcmask (!%p113_p2), 752640  }
   0xb   : > { %vm2070_vm9 = vcmask (!%p113_p2), 490496   ;;  %vm2393_vm10 = vcmask (!%p113_p2), 482304   ;;  %vm2716_vm11 = vcmask (!%p113_p2), 474112  }
   0xd   : > { %s4081_s10 = smov (!%p134_p3, %s3093_s10), 1 }
   0xe   : > { %s3399_s11 = smul.u32 20, %s4081_s10 }
  0x10   : > { %s3476_s14 = scalar_lea.vmem %s4077_s0, %s3399_s11 }
  0x11   : > { %v146_v9 = vld [vmem:[%s3476_s14 + $0x8] sm:$0xff]  ;;  %v145_v10 = vld [vmem:[%s3476_s14] sm:$0xff]  ;;  %v3107_v19 = vld.sshfl [vmem:[%s3476_s14 + $0x10] sm:$0x3 pattern:$0x76325410] }
  0x12   : > { %v3480_v11 = vrot.slane %v146_v9, %v161_v6  ;;  %v3482_v12 = vrot.slane %v145_v10, %v161_v6  ;;  %v155_v15 = vcombine.high %v145_v10, %v145_v10  ;;  %v502_v22 = vand.u32 %v3107_v19, %v3484_v13  ;;  %v3554_v28 = vld.sshfl [vmem:[%s3476_s14 + $0x10] sm:$0x33 pattern:$0x76325410] }
  0x13   : > { %v733_v25 = vcombine.high %v146_v9, %v146_v9  ;;  %v3558_v29 = vcombine.high %v3554_v28, %v3554_v28 }
  0x14   : > { %205 = vrot.lane.b32.xlu0 %v3480_v11, %s3435_s15  ;;  %197 = vrot.lane.b32.xlu1 %v3482_v12, %s3435_s15  ;;  %v3492_v14 = vcombine.high %v3482_v12, %v3482_v12  ;;  %v3496_v16 = vcombine.high %v3480_v11, %v3480_v11  ;;  %v490_v17 = vand.u32 %v3484_v13, %v3480_v11 }
  0x15   : > { %v3507_v20 = vrot.slane %v155_v15, %v161_v6  ;;  %v3532_v26 = vrot.slane %v733_v25, %v161_v6 }
  0x16   : > { %v493_v18 = vand.u32 %v3484_v13, %v3496_v16 }
  0x17   : > { %v3522_v24 = vcombine.high %v3507_v20, %v3507_v20  ;;  %v3547_v27 = vcombine.high %v3532_v26, %v3532_v26 }
  0x18   : > { %758 = vrot.lane.b32.xlu1 %v3482_v12, %s3436_s16  ;;  %199 = vrot.lane.b32.xlu0 %v3492_v14, %s3435_s15 }
  0x19   : > { %586 = vmatprep.subr.bf16.mxu0 %v493_v18 }
  0x1a   : > { %587 = vmatpush1.bf16.msra.mxu0 %v490_v17 }
  0x1b   : > { %3198 = vmatprep.subr.bf16.mxu0 %v3437_v23 }
  0x1c   : > { %760 = vrot.lane.b32.xlu1 %v3492_v14, %s3436_s16  ;;  %201 = vrot.lane.b32.xlu0 %v3507_v20, %s3435_s15 }
  0x1d   : > { %3110 = vmatmul.mubr.msk.bf16.vlgmr.msra.gmra.mrb[0].mxu0 %vm227_vm2, %v3512_v21 }
  0x1e   : > { %3199 = vmatpush3.bf16.msra.mxu0 %v502_v22  ;;  %3200 = vmatprep.mubr.msk.bf16.mxu0 %vm3438_vm3, %v3437_v23 }
  0x20   : > { %762 = vrot.lane.b32.xlu0 %v3507_v20, %s3436_s16  ;;  %203 = vrot.lane.b32.xlu1 %v3522_v24, %s3435_s15 }
  0x24   : > { %768 = vrot.lane.b32.xlu0 %v3496_v16, %s3436_s16  ;;  %770 = vrot.lane.b32.xlu1 %v3532_v26, %s3436_s16 }
  0x25   : > { %3201 = vmatmul.mubr.msk.bf16.vlgmr.msra.gmra.mrb[4].mxu0 %vm227_vm2, %v3512_v21 }
  0x26   : > { %850 = vmatprep.mubr.bf16.mxu0 %v3433_v4 }
  0x28   : > { %207 = vrot.lane.b32.xlu0 %v3496_v16, %s3435_s15  ;;  %209 = vrot.lane.b32.xlu1 %v3532_v26, %s3435_s15 }
  0x2c   : > { %766 = vrot.lane.b32.xlu0 %v3480_v11, %s3436_s16  ;;  %211 = vrot.lane.b32.xlu1 %v3547_v27, %s3435_s15 }
  0x30   : > { %213 = vrot.lane.b32.xlu0 %v3554_v28, %s3435_s15  ;;  %774 = vrot.lane.b32.xlu1 %v3554_v28, %s3436_s16 }
  0x34   : > { %776 = vrot.lane.b32.xlu0 %v3558_v29, %s3436_s16  ;;  %1083 = vrot.lane.b32.xlu1 %v3492_v14, %s3439_s19 }
  0x38   : > { %1085 = vrot.lane.b32.xlu0 %v3507_v20, %s3439_s19  ;;  %1081 = vrot.lane.b32.xlu1 %v3482_v12, %s3439_s19 }
  0x3c   : > { %215 = vrot.lane.b32.xlu0 %v3558_v29, %s3435_s15  ;;  %1091 = vrot.lane.b32.xlu1 %v3496_v16, %s3439_s19  ;;  %s3400_s15 = smul.u32 36, %s4081_s10 }
  0x3e   : > { %s4067_s18 = scalar_lea.vmem %s4079_s2, %s3400_s15 }
  0x40   : > { %1093 = vrot.lane.b32.xlu0 %v3532_v26, %s3439_s19  ;;  %1089 = vrot.lane.b32.xlu1 %v3480_v11, %s3439_s19 }
  0x44   : > { %1097 = vrot.lane.b32.xlu0 %v3554_v28, %s3439_s19  ;;  %1099 = vrot.lane.b32.xlu1 %v3558_v29, %s3439_s19 }
  0x48   : > { %1406 = vrot.lane.b32.xlu0 %v3492_v14, %s3440_s20  ;;  %1408 = vrot.lane.b32.xlu1 %v3507_v20, %s3440_s20 }
  0x4c   : > { %1404 = vrot.lane.b32.xlu0 %v3482_v12, %s3440_s20  ;;  %1414 = vrot.lane.b32.xlu1 %v3496_v16, %s3440_s20 }
  0x50   : > { %1416 = vrot.lane.b32.xlu0 %v3532_v26, %s3440_s20  ;;  %764 = vrot.lane.b32.xlu1 %v3522_v24, %s3436_s16 }
  0x54   : > { %1412 = vrot.lane.b32.xlu0 %v3480_v11, %s3440_s20  ;;  %772 = vrot.lane.b32.xlu1 %v3547_v27, %s3436_s16 }
  0x58   : > { %1420 = vrot.lane.b32.xlu0 %v3554_v28, %s3440_s20  ;;  %1422 = vrot.lane.b32.xlu1 %v3558_v29, %s3440_s20 }
  0x5c   : > { %1729 = vrot.lane.b32.xlu0 %v3492_v14, %s3441_s21  ;;  %1731 = vrot.lane.b32.xlu1 %v3507_v20, %s3441_s21 }
  0x60   : > { %1087 = vrot.lane.b32.xlu0 %v3522_v24, %s3439_s19  ;;  %1727 = vrot.lane.b32.xlu1 %v3482_v12, %s3441_s21 }
  0x64   : > { %1737 = vrot.lane.b32.xlu0 %v3496_v16, %s3441_s21  ;;  %1739 = vrot.lane.b32.xlu1 %v3532_v26, %s3441_s21 }
  0x68   : > { %1095 = vrot.lane.b32.xlu0 %v3547_v27, %s3439_s19  ;;  %1735 = vrot.lane.b32.xlu1 %v3480_v11, %s3441_s21 }
  0x6c   : > { %1410 = vrot.lane.b32.xlu0 %v3522_v24, %s3440_s20  ;;  %1743 = vrot.lane.b32.xlu1 %v3554_v28, %s3441_s21 }
  0x70   : > { %1745 = vrot.lane.b32.xlu0 %v3558_v29, %s3441_s21  ;;  %2052 = vrot.lane.b32.xlu1 %v3492_v14, %s3442_s22 }
  0x74   : > { %2054 = vrot.lane.b32.xlu0 %v3507_v20, %s3442_s22  ;;  %1418 = vrot.lane.b32.xlu1 %v3547_v27, %s3440_s20 }
  0x78   : > { %2050 = vrot.lane.b32.xlu0 %v3482_v12, %s3442_s22  ;;  %2060 = vrot.lane.b32.xlu1 %v3496_v16, %s3442_s22 }
  0x7c   : > { %2062 = vrot.lane.b32.xlu0 %v3532_v26, %s3442_s22  ;;  %1733 = vrot.lane.b32.xlu1 %v3522_v24, %s3441_s21 }
  0x80   : > { %2058 = vrot.lane.b32.xlu0 %v3480_v11, %s3442_s22  ;;  %1741 = vrot.lane.b32.xlu1 %v3547_v27, %s3441_s21 }
  0x84   : > { %2066 = vrot.lane.b32.xlu0 %v3554_v28, %s3442_s22  ;;  %2068 = vrot.lane.b32.xlu1 %v3558_v29, %s3442_s22 }
  0x86   : > { %v206_v30 = vpop.permute.xlu0 %205  ;;  %v198_v31 = vpop.permute.xlu1 %197 }
  0x88   : > { %2375 = vrot.lane.b32.xlu0 %v3492_v14, %s3443_s23  ;;  %2377 = vrot.lane.b32.xlu1 %v3507_v20, %s3443_s23 }
  0x8a   : > { %v759_v32 = vpop.permute.xlu1 %758  ;;  %v200_v33 = vpop.permute.xlu0 %199 }
  0x8b   : > { %v218_v34 = vsel %vm217_vm4, %v198_v31, %v200_v33 }
  0x8c   : > { %2056 = vrot.lane.b32.xlu0 %v3522_v24, %s3442_s22  ;;  %2373 = vrot.lane.b32.xlu1 %v3482_v12, %s3443_s23  ;;  %v236_v39 = vand.u32 %v3484_v13, %v218_v34  ;;  %v481_v34 = vand.u32 %v3484_v13, %v3492_v14 }
  0x8e   : > { %v761_v35 = vpop.permute.xlu1 %760  ;;  %v202_v36 = vpop.permute.xlu0 %201 }
  0x8f   : > { %v219_v37 = vsel %vm217_vm4, %v200_v33, %v202_v36  ;;  %v779_v40 = vsel %vm778_vm5, %v759_v32, %v761_v35 }
  0x90   : > { %2383 = vrot.lane.b32.xlu0 %v3496_v16, %s3443_s23  ;;  %2385 = vrot.lane.b32.xlu1 %v3532_v26, %s3443_s23  ;;  %v239_v38 = vand.u32 %v3484_v13, %v219_v37  ;;  %v792_v50 = vand.u32 %v779_v40, %v3484_v13 }
  0x92   : > { %262 = vmatprep.subr.bf16.mxu1 %v239_v38  ;;  %v3635_v41 = vpop.permute.xlu0 %762  ;;  %v204_v42 = vpop.permute.xlu1 %203 }
  0x93   : > { %v780_v43 = vsel %vm778_vm5, %v761_v35, %v3635_v41  ;;  %v220_v44 = vsel %vm217_vm4, %v202_v36, %v204_v42  ;;  %v221_v45 = vsel %vm217_vm4, %v204_v42, %v206_v30  ;;  %263 = vmatpush1.bf16.msra.mxu1 %v236_v39  ;;  %v487_v42 = vand.u32 %v3484_v13, %v3522_v24 }
  0x94   : > { %v795_v47 = vand.u32 %v780_v43, %v3484_v13  ;;  %v242_v48 = vand.u32 %v3484_v13, %v220_v44  ;;  %v245_v49 = vand.u32 %v3484_v13, %v221_v45  ;;  %2064 = vrot.lane.b32.xlu0 %v3547_v27, %s3442_s22  ;;  %2381 = vrot.lane.b32.xlu1 %v3480_v11, %s3443_s23 }
  0x96   : > { %3102 = vmatmul.mubr.msk.bf16.vlgmr.msra.gmra.mrb[0].mxu1 %vm227_vm2, %v3644_v46  ;;  %818 = vmatprep.subr.bf16.mxu0 %v795_v47  ;;  %v769_v51 = vpop.permute.xlu0 %768  ;;  %v3656_v52 = vpop.permute.xlu1 %770  ;;  %v484_v47 = vand.u32 %v3484_v13, %v3507_v20 }
  0x97   : > { %303 = vmatprep.subr.bf16.mxu1 %v245_v49  ;;  %v784_v53 = vsel %vm778_vm5, %v769_v51, %v3656_v52  ;;  %819 = vmatpush1.bf16.msra.mxu0 %v792_v50 }
  0x98   : > { %v807_v55 = vand.u32 %v784_v53, %v3484_v13  ;;  %304 = vmatpush1.bf16.msra.mxu1 %v242_v48  ;;  %2379 = vrot.lane.b32.xlu0 %v3522_v24, %s3443_s23  ;;  %v499_v48 = vand.u32 %v3484_v13, %v3547_v27 }
  0x99   : > { %2389 = vrot.lane.b32.xlu1 %v3554_v28, %s3443_s23  ;;  %335 = vmatprep.mubr.bf16.mxu1 %v3433_v4 }
  0x9a   : > { %v208_v56 = vpop.permute.xlu0 %207  ;;  %900 = vmatprep.subr.bf16.mxu0 %v807_v55  ;;  %v210_v57 = vpop.permute.xlu1 %209  ;;  %3115 = vmatmul.mubr.msk.bf16.vlgmr.msra.gmra.mrb[8].mxu0 %vm227_vm2, %v3663_v54 }
  0x9b   : > { %v222_v58 = vsel %vm217_vm4, %v206_v30, %v208_v56  ;;  %v223_v59 = vsel %vm217_vm4, %v208_v56, %v210_v57  ;;  %932 = vmatprep.mubr.bf16.mxu0 %v3433_v4 }
  0x9c   : > { %v248_v60 = vand.u32 %v3484_v13, %v222_v58  ;;  %v251_v61 = vand.u32 %v3484_v13, %v223_v59  ;;  %2391 = vrot.lane.b32.xlu0 %v3558_v29, %s3443_s23  ;;  %v496_v58 = vand.u32 %v3532_v26, %v3484_v13 }
  0x9d   : > { %2698 = vrot.lane.b32.xlu1 %v3492_v14, %s3444_s28  ;;  %v3751_v14 = vld [vmem:[%s4078_s1 + $0xc] sm:$0xf] }
  0x9e   : > { %v3682_v62 = vpop.permute.xlu0 %766  ;;  %3103 = vmatmul.mubr.msk.bf16.vlgmr.msra.gmra.mrb[4].mxu1 %vm227_vm2, %v3644_v46  ;;  %344 = vmatprep.subr.bf16.mxu1 %v251_v61  ;;  %v212_v63 = vpop.permute.xlu1 %211 }
  0x9f   : > { %v783_v0 = vsel %vm778_vm5, %v3682_v62, %v769_v51  ;;  %345 = vmatpush1.bf16.msra.mxu1 %v248_v60  ;;  %376 = vmatprep.mubr.bf16.mxu1 %v3433_v4  ;;  %v224_v2 = vsel %vm217_vm4, %v210_v57, %v212_v63 }
  0xa0   : > { %v804_v1 = vand.u32 %v783_v0, %v3484_v13  ;;  %2700 = vrot.lane.b32.xlu0 %v3507_v20, %s3444_s28  ;;  %v254_v8 = vand.u32 %v3484_v13, %v224_v2 }
  0xa1   : > { %2387 = vrot.lane.b32.xlu1 %v3547_v27, %s3443_s23 }
  0xa2   : > { %v214_v3 = vpop.permute.xlu0 %213  ;;  %901 = vmatpush1.bf16.msra.mxu0 %v804_v1  ;;  %v3695_v5 = vpop.permute.xlu1 %774 }
  0xa3   : > { %v225_v6 = vsel %vm217_vm4, %v212_v63, %v214_v3  ;;  %3204 = vmatprep.subr.bf16.mxu0 %v3437_v23 }
  0xa4   : > { %v257_v7 = vand.u32 %v3484_v13, %v225_v6  ;;  %2696 = vrot.lane.b32.xlu0 %v3482_v12, %s3444_s28 }
  0xa5   : > { %3117 = vmatmul.mubr.msk.bf16.vlgmr.msra.gmra.mrb[0].mxu0 %vm227_vm2, %v3663_v54  ;;  %2706 = vrot.lane.b32.xlu1 %v3496_v16, %s3444_s28 }
  0xa6   : > { %v777_v9 = vpop.permute.xlu0 %776  ;;  %3104 = vmatmul.mubr.msk.bf16.vlgmr.msra.gmra.mrb[8].mxu1 %vm227_vm2, %v3644_v46  ;;  %385 = vmatprep.subr.bf16.mxu1 %v257_v7  ;;  %v1084_v10 = vpop.permute.xlu1 %1083 }
  0xa7   : > { %v787_v15 = vsel %vm778_vm5, %v3695_v5, %v777_v9  ;;  %386 = vmatpush1.bf16.msra.mxu1 %v254_v8  ;;  %3206 = vmatprep.mubr.msk.bf16.mxu0 %vm3438_vm3, %v3437_v23 }
  0xa8   : > { %v816_v17 = vand.u32 %v787_v15, %v3484_v13  ;;  %417 = vmatprep.mubr.bf16.mxu1 %v3433_v4  ;;  %3192 = vmatprep.subr.bf16.mxu1 %v3437_v23 }
  0xa9   : > { %2702 = vrot.lane.b32.xlu1 %v3522_v24, %s3444_s28  ;;  %2708 = vrot.lane.b32.xlu0 %v3532_v26, %s3444_s28 }
  0xaa   : > { %v3720_v16 = vpop.permute.xlu0 %1085  ;;  %3205 = vmatpush3.bf16.msra.mxu0 %v816_v17  ;;  %v1082_v18 = vpop.permute.xlu1 %1081 }
  0xab   : > { %v1103_v19 = vsel %vm1101_vm6, %v1084_v10, %v3720_v16  ;;  %v1102_v22 = vsel %vm1101_vm6, %v1082_v18, %v1084_v10 }
  0xac   : > { %v1118_v25 = vand.u32 %v1103_v19, %v3484_v13  ;;  %v1115_v30 = vand.u32 %v1102_v22, %v3484_v13 }
  0xad   : > { %3207 = vmatmul.mubr.msk.bf16.vlgmr.msra.gmra.mrb[4].mxu0 %vm227_vm2, %v3663_v54  ;;  %2704 = vrot.lane.b32.xlu0 %v3480_v11, %s3444_s28 }
  0xae   : > { %v216_v31 = vpop.permute.xlu0 %215  ;;  %3105 = vmatmul.mubr.msk.bf16.vlgmr.msra.gmra.mrb[12].mxu1 %vm227_vm2, %v3644_v46  ;;  %1141 = vmatprep.subr.bf16.mxu0 %v1118_v25  ;;  %v1092_v32 = vpop.permute.xlu1 %1091 }
  0xaf   : > { %v226_v33 = vsel %vm217_vm4, %v214_v3, %v216_v31  ;;  %1142 = vmatpush1.bf16.msra.mxu0 %v1115_v30  ;;  %1173 = vmatprep.mubr.bf16.mxu0 %v3433_v4  ;;  %v3823_v3 = vld [vmem:[%s4078_s1 + $0x10] sm:$0xf] }
  0xb0   : > { %v260_v35 = vand.u32 %v3484_v13, %v226_v33  ;;  %3194 = vmatprep.mubr.msk.bf16.mxu1 %vm3438_vm3, %v3437_v23  ;;  %2710 = vrot.lane.b32.xlu1 %v3547_v27, %s3444_s28 }
  0xb1   : > { %2712 = vrot.lane.b32.xlu0 %v3554_v28, %s3444_s28  ;;  %v478_v28 = vand.u32 %v3484_v13, %v3482_v12 }
  0xb2   : > { %v3744_v11 = vpop.permute.xlu0 %1093  ;;  %3193 = vmatpush3.bf16.msra.mxu1 %v260_v35  ;;  %v3746_v36 = vpop.permute.xlu1 %1089 }
  0xb3   : > { %v1107_v37 = vsel %vm1101_vm6, %v1092_v32, %v3744_v11  ;;  %v1106_v38 = vsel %vm1101_vm6, %v3746_v36, %v1092_v32  ;;  %504 = vmatprep.subr.bf16.mxu1 %v481_v34 }
  0xb4   : > { %v1130_v39 = vand.u32 %v1107_v37, %v3484_v13  ;;  %v1127_v40 = vand.u32 %v1106_v38, %v3484_v13  ;;  %2714 = vrot.lane.b32.xlu1 %v3558_v29, %s3444_s28 }
  0xb5   : > { %3122 = vmatmul.mubr.msk.bf16.vlgmr.msra.gmra.mrb[8].mxu0 %vm227_vm2, %v3751_v14 }
  0xb6   : > { %v3767_v43 = vpop.permute.xlu0 %1097  ;;  %3195 = vmatmul.mubr.msk.bf16.vlgmr.msra.gmra.mrb[16].mxu1 %vm227_vm2, %v3644_v46  ;;  %1223 = vmatprep.subr.bf16.mxu0 %v1130_v39  ;;  %v1100_v12 = vpop.permute.xlu1 %1099 }
  0xb7   : > { %v1110_v44 = vsel %vm1101_vm6, %v3767_v43, %v1100_v12  ;;  %1224 = vmatpush1.bf16.msra.mxu0 %v1127_v40  ;;  %505 = vmatpush1.bf16.msra.mxu1 %v478_v28 }
  0xb8   : > { %1255 = vmatprep.mubr.bf16.mxu0 %v3433_v4  ;;  %536 = vmatprep.mubr.bf16.mxu1 %v3433_v4  ;;  %v1139_v24 = vand.u32 %v1110_v44, %v3484_v13 }
  0xb9   : > { %545 = vmatprep.subr.bf16.mxu1 %v487_v42  ;;  %3210 = vmatprep.subr.bf16.mxu0 %v3437_v23 }
  0xba   : > { %v1407_v29 = vpop.permute.xlu0 %1406  ;;  %v3777_v45 = vpop.permute.xlu1 %1408 }
  0xbb   : > { %v1426_v46 = vsel %vm1424_vm7, %v1407_v29, %v3777_v45 }
  0xbc   : > { %v1441_v49 = vand.u32 %v1426_v46, %v3484_v13 }
  0xbd   : > { %3124 = vmatmul.mubr.msk.bf16.vlgmr.msra.gmra.mrb[0].mxu0 %vm227_vm2, %v3751_v14 }
  0xbe   : > { %v1405_v50 = vpop.permute.xlu0 %1404  ;;  %3108 = vmatmul.mubr.msk.bf16.vlgmr.msra.gmra.mrb[0].mxu1 %vm227_vm2, %v3512_v21  ;;  %v1415_v51 = vpop.permute.xlu1 %1414  ;;  %3211 = vmatpush3.bf16.msra.mxu0 %v1139_v24 }
  0xbf   : > { %v1425_v53 = vsel %vm1424_vm7, %v1405_v50, %v1407_v29  ;;  %546 = vmatpush1.bf16.msra.mxu1 %v484_v47  ;;  %3212 = vmatprep.mubr.msk.bf16.mxu0 %vm3438_vm3, %v3437_v23 }
  0xc0   : > { %577 = vmatprep.mubr.bf16.mxu1 %v3433_v4  ;;  %627 = vmatprep.subr.bf16.mxu1 %v499_v48  ;;  %v1438_v20 = vand.u32 %v1425_v53, %v3484_v13 }
  0xc1   : > { %1464 = vmatprep.subr.bf16.mxu0 %v1441_v49 }
  0xc2   : > { %v3795_v27 = vpop.permute.xlu0 %1416  ;;  %v765_v55 = vpop.permute.xlu1 %764 }
  0xc3   : > { %v1430_v56 = vsel %vm1424_vm7, %v1415_v51, %v3795_v27  ;;  %v782_v57 = vsel %vm778_vm5, %v765_v55, %v3682_v62  ;;  %v781_v26 = vsel %vm778_vm5, %v3635_v41, %v765_v55 }
  0xc4   : > { %v801_v59 = vand.u32 %v782_v57, %v3484_v13  ;;  %v1453_v60 = vand.u32 %v1430_v56, %v3484_v13  ;;  %v798_v7 = vand.u32 %v781_v26, %v3484_v13 }
  0xc5   : > { %3213 = vmatmul.mubr.msk.bf16.vlgmr.msra.gmra.mrb[4].mxu0 %vm227_vm2, %v3751_v14 }
  0xc6   : > { %v3807_v61 = vpop.permute.xlu0 %1412  ;;  %1465 = vmatpush1.bf16.msra.mxu0 %v1438_v20  ;;  %v773_v63 = vpop.permute.xlu1 %772  ;;  %3109 = vmatmul.mubr.msk.bf16.vlgmr.msra.gmra.mrb[4].mxu1 %vm227_vm2, %v3512_v21 }
  0xc7   : > { %v1429_v62 = vsel %vm1424_vm7, %v3807_v61, %v1415_v51  ;;  %628 = vmatpush1.bf16.msra.mxu1 %v496_v58  ;;  %1496 = vmatprep.mubr.bf16.mxu0 %v3433_v4  ;;  %v786_v6 = vsel %vm778_vm5, %v773_v63, %v3695_v5  ;;  %v785_v5 = vsel %vm778_vm5, %v3656_v52, %v773_v63 }
  0xc8   : > { %859 = vmatprep.subr.bf16.mxu1 %v801_v59  ;;  %659 = vmatprep.mubr.bf16.mxu1 %v3433_v4  ;;  %v1450_v0 = vand.u32 %v1429_v62, %v3484_v13  ;;  %v813_v41 = vand.u32 %v786_v6, %v3484_v13  ;;  %v810_v25 = vand.u32 %v785_v5, %v3484_v13 }
  0xc9   : > { %1546 = vmatprep.subr.bf16.mxu0 %v1453_v60 }
  0xca   : > { %v3818_v1 = vpop.permute.xlu0 %1420  ;;  %v1423_v2 = vpop.permute.xlu1 %1422 }
  0xcb   : > { %v1433_v10 = vsel %vm1424_vm7, %v3818_v1, %v1423_v2 }
  0xcc   : > { %v1462_v15 = vand.u32 %v1433_v10, %v3484_v13 }
  0xcd   : > { %3129 = vmatmul.mubr.msk.bf16.vlgmr.msra.gmra.mrb[8].mxu0 %vm227_vm2, %v3823_v3 }
  0xce   : > { %v1730_v8 = vpop.permute.xlu0 %1729  ;;  %1547 = vmatpush1.bf16.msra.mxu0 %v1450_v0  ;;  %v3831_v9 = vpop.permute.xlu1 %1731  ;;  %3111 = vmatmul.mubr.msk.bf16.vlgmr.msra.gmra.mrb[12].mxu1 %vm227_vm2, %v3512_v21 }
  0xcf   : > { %860 = vmatpush1.bf16.msra.mxu1 %v798_v7  ;;  %1578 = vmatprep.mubr.bf16.mxu0 %v3433_v4  ;;  %v1749_v21 = vsel %vm1747_vm8, %v1730_v8, %v3831_v9 }
  0xd0   : > { %941 = vmatprep.subr.bf16.mxu1 %v813_v41  ;;  %891 = vmatprep.mubr.bf16.mxu1 %v3433_v4  ;;  %v1764_v30 = vand.u32 %v1749_v21, %v3484_v13 }
  0xd1   : > { %3216 = vmatprep.subr.bf16.mxu0 %v3437_v23 }
  0xd2   : > { %v1088_v17 = vpop.permute.xlu0 %1087  ;;  %v1728_v18 = vpop.permute.xlu1 %1727 }
  0xd3   : > { %v1105_v19 = vsel %vm1101_vm6, %v1088_v17, %v3746_v36  ;;  %v1748_v32 = vsel %vm1747_vm8, %v1728_v18, %v1730_v8  ;;  %v1104_v33 = vsel %vm1101_vm6, %v3720_v16, %v1088_v17  ;;  %v3946_v18 = vld [vmem:[%s4078_s1 + $0x18] sm:$0xf] }
  0xd4   : > { %v1124_v22 = vand.u32 %v1105_v19, %v3484_v13  ;;  %v1761_v34 = vand.u32 %v1748_v32, %v3484_v13  ;;  %v1121_v39 = vand.u32 %v1104_v33, %v3484_v13 }
  0xd5   : > { %3131 = vmatmul.mubr.msk.bf16.vlgmr.msra.gmra.mrb[0].mxu0 %vm227_vm2, %v3823_v3 }
  0xd6   : > { %v1738_v52 = vpop.permute.xlu0 %1737  ;;  %v3852_v31 = vpop.permute.xlu1 %1739  ;;  %3116 = vmatmul.mubr.msk.bf16.vlgmr.msra.gmra.mrb[4].mxu1 %vm227_vm2, %v3663_v54  ;;  %3217 = vmatpush3.bf16.msra.mxu0 %v1462_v15 }
  0xd7   : > { %942 = vmatpush1.bf16.msra.mxu1 %v810_v25  ;;  %3218 = vmatprep.mubr.msk.bf16.mxu0 %vm3438_vm3, %v3437_v23  ;;  %v1753_v35 = vsel %vm1747_vm8, %v1738_v52, %v3852_v31 }
  0xd8   : > { %1182 = vmatprep.subr.bf16.mxu1 %v1124_v22  ;;  %973 = vmatprep.mubr.bf16.mxu1 %v3433_v4  ;;  %v1776_v40 = vand.u32 %v1753_v35, %v3484_v13 }
  0xd9   : > { %1787 = vmatprep.subr.bf16.mxu0 %v1764_v30 }
  0xda   : > { %v1096_v36 = vpop.permute.xlu0 %1095  ;;  %v1736_v37 = vpop.permute.xlu1 %1735 }
  0xdb   : > { %v1109_v38 = vsel %vm1101_vm6, %v1096_v36, %v3767_v43  ;;  %v1752_v12 = vsel %vm1747_vm8, %v1736_v37, %v1738_v52  ;;  %v1108_v43 = vsel %vm1101_vm6, %v3744_v11, %v1096_v36 }
  0xdc   : > { %v1136_v28 = vand.u32 %v1109_v38, %v3484_v13  ;;  %v1773_v44 = vand.u32 %v1752_v12, %v3484_v13  ;;  %v1133_v47 = vand.u32 %v1108_v43, %v3484_v13 }
  0xdd   : > { %3219 = vmatmul.mubr.msk.bf16.vlgmr.msra.gmra.mrb[4].mxu0 %vm227_vm2, %v3823_v3 }
  0xde   : > { %v1411_v16 = vpop.permute.xlu0 %1410  ;;  %1788 = vmatpush1.bf16.msra.mxu0 %v1761_v34  ;;  %v3872_v42 = vpop.permute.xlu1 %1743  ;;  %3118 = vmatmul.mubr.msk.bf16.vlgmr.msra.gmra.mrb[12].mxu1 %vm227_vm2, %v3663_v54  ;;  %v3885_v54 = vld [vmem:[%s4078_s1 + $0x14] sm:$0xf] }
  0xdf   : > { %1183 = vmatpush1.bf16.msra.mxu1 %v1121_v39  ;;  %1819 = vmatprep.mubr.bf16.mxu0 %v3433_v4  ;;  %v1428_v46 = vsel %vm1424_vm7, %v1411_v16, %v3807_v61  ;;  %v1427_v51 = vsel %vm1424_vm7, %v3777_v45, %v1411_v16 }
  0xe0   : > { %1264 = vmatprep.subr.bf16.mxu1 %v1136_v28  ;;  %1214 = vmatprep.mubr.bf16.mxu1 %v3433_v4  ;;  %v1447_v48 = vand.u32 %v1428_v46, %v3484_v13  ;;  %v1444_v58 = vand.u32 %v1427_v51, %v3484_v13 }
  0xe1   : > { %1869 = vmatprep.subr.bf16.mxu0 %v1776_v40 }
  0xe2   : > { %v1746_v24 = vpop.permute.xlu0 %1745  ;;  %v2053_v29 = vpop.permute.xlu1 %2052 }
  0xe3   : > { %v1756_v50 = vsel %vm1747_vm8, %v3872_v42, %v1746_v24 }
  0xe4   : > { %v1785_v53 = vand.u32 %v1756_v50, %v3484_v13 }
  0xe5   : > { %3136 = vmatmul.mubr.msk.bf16.vlgmr.msra.gmra.mrb[8].mxu0 %vm227_vm2, %v3885_v54 }
  0xe6   : > { %v3893_v11 = vpop.permute.xlu0 %2054  ;;  %1870 = vmatpush1.bf16.msra.mxu0 %v1773_v44  ;;  %v1419_v49 = vpop.permute.xlu1 %1418  ;;  %3123 = vmatmul.mubr.msk.bf16.vlgmr.msra.gmra.mrb[4].mxu1 %vm227_vm2, %v3751_v14 }
  0xe7   : > { %1265 = vmatpush1.bf16.msra.mxu1 %v1133_v47  ;;  %1901 = vmatprep.mubr.bf16.mxu0 %v3433_v4  ;;  %v2072_v20 = vsel %vm2070_vm9, %v2053_v29, %v3893_v11  ;;  %v1432_v57 = vsel %vm1424_vm7, %v1419_v49, %v3818_v1  ;;  %v1431_v62 = vsel %vm1424_vm7, %v3795_v27, %v1419_v49 }
  0xe8   : > { %1505 = vmatprep.subr.bf16.mxu1 %v1447_v48  ;;  %1296 = vmatprep.mubr.bf16.mxu1 %v3433_v4  ;;  %v2087_v59 = vand.u32 %v2072_v20, %v3484_v13  ;;  %v1459_v60 = vand.u32 %v1432_v57, %v3484_v13  ;;  %v1456_v6 = vand.u32 %v1431_v62, %v3484_v13 }
  0xe9   : > { %3222 = vmatprep.subr.bf16.mxu0 %v3437_v23 }
  0xea   : > { %v2051_v55 = vpop.permute.xlu0 %2050  ;;  %v2061_v56 = vpop.permute.xlu1 %2060 }
  0xeb   : > { %v2071_v63 = vsel %vm2070_vm9, %v2051_v55, %v2053_v29 }
  0xec   : > { %v2084_v26 = vand.u32 %v2071_v63, %v3484_v13 }
  0xed   : > { %3138 = vmatmul.mubr.msk.bf16.vlgmr.msra.gmra.mrb[0].mxu0 %vm227_vm2, %v3885_v54 }
  0xee   : > { %v3914_v45 = vpop.permute.xlu0 %2062  ;;  %v1734_v61 = vpop.permute.xlu1 %1733  ;;  %3125 = vmatmul.mubr.msk.bf16.vlgmr.msra.gmra.mrb[12].mxu1 %vm227_vm2, %v3751_v14  ;;  %3223 = vmatpush3.bf16.msra.mxu0 %v1785_v53 }
  0xef   : > { %1506 = vmatpush1.bf16.msra.mxu1 %v1444_v58  ;;  %3224 = vmatprep.mubr.msk.bf16.mxu0 %vm3438_vm3, %v3437_v23  ;;  %v2076_v0 = vsel %vm2070_vm9, %v2061_v56, %v3914_v45  ;;  %v1751_v2 = vsel %vm1747_vm8, %v1734_v61, %v1736_v37  ;;  %v1750_v5 = vsel %vm1747_vm8, %v3831_v9, %v1734_v61 }
  0xf0   : > { %1587 = vmatprep.subr.bf16.mxu1 %v1459_v60  ;;  %1537 = vmatprep.mubr.bf16.mxu1 %v3433_v4  ;;  %v2099_v7 = vand.u32 %v2076_v0, %v3484_v13  ;;  %v1770_v41 = vand.u32 %v1751_v2, %v3484_v13  ;;  %v1767_v22 = vand.u32 %v1750_v5, %v3484_v13 }
  0xf1   : > { %2110 = vmatprep.subr.bf16.mxu0 %v2087_v59 }
  0xf2   : > { %v2059_v14 = vpop.permute.xlu0 %2058  ;;  %v1742_v1 = vpop.permute.xlu1 %1741 }
  0xf3   : > { %v2075_v10 = vsel %vm2070_vm9, %v2059_v14, %v2061_v56  ;;  %v1755_v19 = vsel %vm1747_vm8, %v1742_v1, %v3872_v42  ;;  %v1754_v32 = vsel %vm1747_vm8, %v3852_v31, %v1742_v1 }
  0xf4   : > { %v2096_v15 = vand.u32 %v2075_v10, %v3484_v13  ;;  %v1782_v9 = vand.u32 %v1755_v19, %v3484_v13  ;;  %v1779_v37 = vand.u32 %v1754_v32, %v3484_v13 }
  0xf5   : > { %3225 = vmatmul.mubr.msk.bf16.vlgmr.msra.gmra.mrb[4].mxu0 %vm227_vm2, %v3885_v54 }
  0xf6   : > { %v2067_v8 = vpop.permute.xlu0 %2066  ;;  %2111 = vmatpush1.bf16.msra.mxu0 %v2084_v26  ;;  %v2069_v27 = vpop.permute.xlu1 %2068  ;;  %3130 = vmatmul.mubr.msk.bf16.vlgmr.msra.gmra.mrb[4].mxu1 %vm227_vm2, %v3823_v3 }
  0xf7   : > { %1588 = vmatpush1.bf16.msra.mxu1 %v1456_v6  ;;  %2142 = vmatprep.mubr.bf16.mxu0 %v3433_v4  ;;  %v2079_v52 = vsel %vm2070_vm9, %v2067_v8, %v2069_v27 }
  0xf8   : > { %1828 = vmatprep.subr.bf16.mxu1 %v1770_v41  ;;  %1619 = vmatprep.mubr.bf16.mxu1 %v3433_v4  ;;  %v2108_v33 = vand.u32 %v2079_v52, %v3484_v13 }
  0xf9   : > { %2192 = vmatprep.subr.bf16.mxu0 %v2099_v7 }
  0xfa   : > { %v2376_v21 = vpop.permute.xlu0 %2375  ;;  %v3941_v17 = vpop.permute.xlu1 %2377 }
  0xfb   : > { %v2395_v34 = vsel %vm2393_vm10, %v2376_v21, %v3941_v17 }
  0xfc   : > { %v2410_v38 = vand.u32 %v2395_v34, %v3484_v13 }
  0xfd   : > { %3143 = vmatmul.mubr.msk.bf16.vlgmr.msra.gmra.mrb[8].mxu0 %vm227_vm2, %v3946_v18 }
  0xfe   : > { %v2057_v25 = vpop.permute.xlu0 %2056  ;;  %2193 = vmatpush1.bf16.msra.mxu0 %v2096_v15  ;;  %v2374_v30 = vpop.permute.xlu1 %2373  ;;  %3132 = vmatmul.mubr.msk.bf16.vlgmr.msra.gmra.mrb[12].mxu1 %vm227_vm2, %v3823_v3 }
  0xff   : > { %1829 = vmatpush1.bf16.msra.mxu1 %v1767_v22  ;;  %2224 = vmatprep.mubr.bf16.mxu0 %v3433_v4  ;;  %v2074_v36 = vsel %vm2070_vm9, %v2057_v25, %v2059_v14  ;;  %v2394_v40 = vsel %vm2393_vm10, %v2374_v30, %v2376_v21  ;;  %v2073_v16 = vsel %vm2070_vm9, %v3893_v11, %v2057_v25  ;;  %v3155_v30 = vld [vmem:[%s4078_s1 + $0x20] sm:$0xf] }
 0x100   : > { %1910 = vmatprep.subr.bf16.mxu1 %v1782_v9  ;;  %1860 = vmatprep.mubr.bf16.mxu1 %v3433_v4  ;;  %v2093_v28 = vand.u32 %v2074_v36, %v3484_v13  ;;  %v2407_v42 = vand.u32 %v2394_v40, %v3484_v13  ;;  %v2090_v29 = vand.u32 %v2073_v16, %v3484_v13 }
 0x101   : > { %3228 = vmatprep.subr.bf16.mxu0 %v3437_v23 }
 0x102   : > { %v2384_v3 = vpop.permute.xlu0 %2383  ;;  %v3965_v35 = vpop.permute.xlu1 %2385 }
 0x103   : > { %v2399_v12 = vsel %vm2393_vm10, %v2384_v3, %v3965_v35 }
 0x104   : > { %v2422_v46 = vand.u32 %v2399_v12, %v3484_v13 }
 0x105   : > { %3145 = vmatmul.mubr.msk.bf16.vlgmr.msra.gmra.mrb[0].mxu0 %vm227_vm2, %v3946_v18 }
 0x106   : > { %v2065_v31 = vpop.permute.xlu0 %2064  ;;  %v2382_v39 = vpop.permute.xlu1 %2381  ;;  %3137 = vmatmul.mubr.msk.bf16.vlgmr.msra.gmra.mrb[4].mxu1 %vm227_vm2, %v3885_v54  ;;  %3229 = vmatpush3.bf16.msra.mxu0 %v2108_v33 }
 0x107   : > { %1911 = vmatpush1.bf16.msra.mxu1 %v1779_v37  ;;  %3230 = vmatprep.mubr.msk.bf16.mxu0 %vm3438_vm3, %v3437_v23  ;;  %v2078_v44 = vsel %vm2070_vm9, %v2065_v31, %v2067_v8  ;;  %v2398_v11 = vsel %vm2393_vm10, %v2382_v39, %v2384_v3  ;;  %v2077_v51 = vsel %vm2070_vm9, %v3914_v45, %v2065_v31 }
 0x108   : > { %2151 = vmatprep.subr.bf16.mxu1 %v2093_v28  ;;  %1942 = vmatprep.mubr.bf16.mxu1 %v3433_v4  ;;  %v2105_v47 = vand.u32 %v2078_v44, %v3484_v13  ;;  %v2419_v53 = vand.u32 %v2398_v11, %v3484_v13  ;;  %v2102_v56 = vand.u32 %v2077_v51, %v3484_v13 }
 0x109   : > { %2433 = vmatprep.subr.bf16.mxu0 %v2410_v38 }
 0x10a   : > { %v2380_v43 = vpop.permute.xlu0 %2379 }
 0x10b   : > { %v2390_v24 = vpop.permute.xlu1 %2389  ;;  %v2397_v50 = vsel %vm2393_vm10, %v2380_v43, %v2382_v39  ;;  %v2396_v45 = vsel %vm2393_vm10, %v3941_v17, %v2380_v43 }
 0x10c   : > { %v2416_v55 = vand.u32 %v2397_v50, %v3484_v13  ;;  %v2413_v14 = vand.u32 %v2396_v45, %v3484_v13 }
 0x10d   : > { %3231 = vmatmul.mubr.msk.bf16.vlgmr.msra.gmra.mrb[4].mxu0 %vm227_vm2, %v3946_v18 }
 0x10e   : > { %2434 = vmatpush1.bf16.msra.mxu0 %v2407_v42  ;;  %3139 = vmatmul.mubr.msk.bf16.vlgmr.msra.gmra.mrb[12].mxu1 %vm227_vm2, %v3885_v54  ;;  %v2392_v48 = vpop.permute.xlu0 %2391  ;;  %v3148_v54 = vld [vmem:[%s4078_s1 + $0x1c] sm:$0xf] }
 0x10f   : > { %2152 = vmatpush1.bf16.msra.mxu1 %v2090_v29  ;;  %2465 = vmatprep.mubr.bf16.mxu0 %v3433_v4  ;;  %v2699_v49 = vpop.permute.xlu1 %2698  ;;  %v2402_v59 = vsel %vm2393_vm10, %v2390_v24, %v2392_v48 }
 0x110   : > { %2233 = vmatprep.subr.bf16.mxu1 %v2105_v47  ;;  %2183 = vmatprep.mubr.bf16.mxu1 %v3433_v4  ;;  %v2431_v61 = vand.u32 %v2402_v59, %v3484_v13 }
 0x111   : > { %2515 = vmatprep.subr.bf16.mxu0 %v2422_v46 }
 0x112   : > { %v2701_v20 = vpop.permute.xlu0 %2700 }
 0x113   : > { %v2388_v57 = vpop.permute.xlu1 %2387  ;;  %v2718_v63 = vsel %vm2716_vm11, %v2699_v49, %v2701_v20 }
 0x114   : > { %v2401_v60 = vsel %vm2393_vm10, %v2388_v57, %v2390_v24  ;;  %v2733_v1 = vand.u32 %v2718_v63, %v3484_v13  ;;  %v2400_v8 = vsel %vm2393_vm10, %v3965_v35, %v2388_v57 }
 0x115   : > { %3150 = vmatmul.mubr.msk.bf16.vlgmr.msra.gmra.mrb[8].mxu0 %vm227_vm2, %v3148_v54  ;;  %v2428_v0 = vand.u32 %v2401_v60, %v3484_v13  ;;  %v2425_v15 = vand.u32 %v2400_v8, %v3484_v13 }
 0x116   : > { %3144 = vmatmul.mubr.msk.bf16.vlgmr.msra.gmra.mrb[4].mxu1 %vm227_vm2, %v3946_v18  ;;  %2516 = vmatpush1.bf16.msra.mxu0 %v2419_v53  ;;  %v2697_v58 = vpop.permute.xlu0 %2696 }
 0x117   : > { %2234 = vmatpush1.bf16.msra.mxu1 %v2102_v56  ;;  %2547 = vmatprep.mubr.bf16.mxu0 %v3433_v4  ;;  %v2707_v62 = vpop.permute.xlu1 %2706  ;;  %v2717_v2 = vsel %vm2716_vm11, %v2697_v58, %v2699_v49 }
 0x118   : > { %2474 = vmatprep.subr.bf16.mxu1 %v2416_v55  ;;  %2265 = vmatprep.mubr.bf16.mxu1 %v3433_v4  ;;  %v2730_v27 = vand.u32 %v2717_v2, %v3484_v13 }
 0x119   : > { %3234 = vmatprep.subr.bf16.mxu0 %v3437_v23 }
 0x11b   : > { %v2709_v26 = vpop.permute.xlu0 %2708  ;;  %v2703_v7 = vpop.permute.xlu1 %2702 }
 0x11c   : > { %v2722_v10 = vsel %vm2716_vm11, %v2707_v62, %v2709_v26  ;;  %v2719_v9 = vsel %vm2716_vm11, %v2701_v20, %v2703_v7 }
 0x11d   : > { %3152 = vmatmul.mubr.msk.bf16.vlgmr.msra.gmra.mrb[0].mxu0 %vm227_vm2, %v3148_v54  ;;  %v2745_v21 = vand.u32 %v2722_v10, %v3484_v13  ;;  %v2736_v33 = vand.u32 %v2719_v9, %v3484_v13 }
 0x11e   : > { %3146 = vmatmul.mubr.msk.bf16.vlgmr.msra.gmra.mrb[12].mxu1 %vm227_vm2, %v3946_v18  ;;  %3235 = vmatpush3.bf16.msra.mxu0 %v2431_v61 }
 0x11f   : > { %2475 = vmatpush1.bf16.msra.mxu1 %v2413_v14  ;;  %3236 = vmatprep.mubr.msk.bf16.mxu0 %vm3438_vm3, %v3437_v23  ;;  %v2705_v6 = vpop.permute.xlu0 %2704 }
 0x120   : > { %2556 = vmatprep.subr.bf16.mxu1 %v2428_v0  ;;  %2506 = vmatprep.mubr.bf16.mxu1 %v3433_v4  ;;  %v2720_v41 = vsel %vm2716_vm11, %v2703_v7, %v2705_v6  ;;  %v2721_v18 = vsel %vm2716_vm11, %v2705_v6, %v2707_v62 }
 0x121   : > { %2756 = vmatprep.subr.bf16.mxu0 %v2733_v1  ;;  %v2739_v5 = vand.u32 %v2720_v41, %v3484_v13  ;;  %v2742_v25 = vand.u32 %v2721_v18, %v3484_v13 }
 0x122   : > { %v2711_v19 = vpop.permute.xlu1 %2710 }
 0x123   : > { %v2713_v17 = vpop.permute.xlu0 %2712  ;;  %v2723_v3 = vsel %vm2716_vm11, %v2709_v26, %v2711_v19 }
 0x124   : > { %v2724_v22 = vsel %vm2716_vm11, %v2711_v19, %v2713_v17  ;;  %v2748_v36 = vand.u32 %v2723_v3, %v3484_v13 }
 0x125   : > { %3237 = vmatmul.mubr.msk.bf16.vlgmr.msra.gmra.mrb[4].mxu0 %vm227_vm2, %v3148_v54  ;;  %v2751_v52 = vand.u32 %v2724_v22, %v3484_v13 }
 0x126   : > { %3151 = vmatmul.mubr.msk.bf16.vlgmr.msra.gmra.mrb[4].mxu1 %vm227_vm2, %v3148_v54  ;;  %2757 = vmatpush1.bf16.msra.mxu0 %v2730_v27  ;;  %v2715_v32 = vpop.permute.xlu1 %2714 }
 0x127   : > { %2557 = vmatpush1.bf16.msra.mxu1 %v2425_v15  ;;  %2788 = vmatprep.mubr.bf16.mxu0 %v3433_v4  ;;  %v2725_v34 = vsel %vm2716_vm11, %v2713_v17, %v2715_v32 }
 0x128   : > { %2588 = vmatprep.mubr.bf16.mxu1 %v3433_v4  ;;  %2797 = vmatprep.subr.bf16.mxu1 %v2739_v5  ;;  %v2754_v35 = vand.u32 %v2725_v34, %v3484_v13 }
 0x129   : > { %2838 = vmatprep.subr.bf16.mxu0 %v2745_v21 }
 0x12d   : > { %3157 = vmatmul.mubr.msk.bf16.vlgmr.msra.gmra.mrb[8].mxu0 %vm227_vm2, %v3155_v30 }
 0x12e   : > { %3153 = vmatmul.mubr.msk.bf16.vlgmr.msra.gmra.mrb[12].mxu1 %vm227_vm2, %v3148_v54  ;;  %2839 = vmatpush1.bf16.msra.mxu0 %v2742_v25 }
 0x12f   : > { %2798 = vmatpush1.bf16.msra.mxu1 %v2736_v33  ;;  %2870 = vmatprep.mubr.bf16.mxu0 %v3433_v4 }
 0x130   : > { %2829 = vmatprep.mubr.bf16.mxu1 %v3433_v4  ;;  %2879 = vmatprep.subr.bf16.mxu1 %v2751_v52 }
 0x131   : > { %3240 = vmatprep.subr.bf16.mxu0 %v3437_v23 }
 0x135   : > { %3159 = vmatmul.mubr.msk.bf16.vlgmr.msra.gmra.mrb[0].mxu0 %vm227_vm2, %v3155_v30 }
 0x136   : > { %3158 = vmatmul.mubr.msk.bf16.vlgmr.msra.gmra.mrb[4].mxu1 %vm227_vm2, %v3155_v30  ;;  %3241 = vmatpush3.bf16.msra.mxu0 %v2754_v35 }
 0x137   : > { %2880 = vmatpush1.bf16.msra.mxu1 %v2748_v36  ;;  %3242 = vmatprep.mubr.msk.bf16.mxu0 %vm3438_vm3, %v3437_v23 }
 0x138   : > { %2911 = vmatprep.mubr.bf16.mxu1 %v3433_v4 }
 0x13d   : > { %3243 = vmatmul.mubr.msk.bf16.vlgmr.msra.gmra.mrb[4].mxu0 %vm227_vm2, %v3155_v30 }
 0x13e   : > { %3160 = vmatmul.mubr.msk.bf16.vlgmr.msra.gmra.mrb[12].mxu1 %vm227_vm2, %v3155_v30 }
 0x179   : > { %v378_v37 = vpop.f32.mrb[8].mxu1 }
 0x17a   : > { %v380_v38 = vpop.f32.mrb[9].mxu1 }
 0x17b   : > { %v382_v28 = vpop.f32.mrb[10].mxu1 }
 0x17c   : > { %v383_v13 = vpop.f32.mrb[11].mxu1 }
 0x189   : > { %v460_v31 = vpop.f32.mrb[16].mxu1 }
 0x18a   : > { %v3196_v39 = vpop.f32.mrb[17].mxu1 }
 0x18b   : > { %v463_v40 = vpop.f32.mrb[18].mxu1 }
 0x18c   : > { %v3197_v16 = vpop.f32.mrb[19].mxu1 }
 0x191   : > { %v538_v42 = vpop.f32.mrb[0].mxu1 }
 0x192   : > { %v540_v12 = vpop.f32.mrb[1].mxu1 }
 0x193   : > { %v542_v43 = vpop.f32.mrb[2].mxu1 }
 0x194   : > { %v543_v44 = vpop.f32.mrb[3].mxu1 }
 0x200   : > { %v2790_v23 = vpop.f32.mrb[8].mxu0 }
 0x201   : > { %v3246_v24 = vadd.f32 %v2790_v23, %v538_v42  ;;  %v2792_v4 = vpop.f32.mrb[9].mxu0 }
 0x202   : > { %v3247_v29 = vadd.f32 %v2792_v4, %v540_v12  ;;  %v2794_v46 = vpop.f32.mrb[10].mxu0 }
 0x203   : > { %vm2969_vm12 = vcmp.ge.f32.partialorder %v3246_v24, 0.0  ;;  %v2978_v47 = vmul.f32 0.2, %v3246_v24  ;;  %v2795_v48 = vpop.f32.mrb[11].mxu0 }
 0x204   : > { %vm2970_vm13 = vcmp.ge.f32.partialorder %v3247_v29, 0.0  ;;  %v2979_v11 = vmul.f32 0.2, %v3247_v29 }
 0x205   : > { %v2987_v49 = vsel %vm2969_vm12, %v3246_v24, %v2978_v47 }
 0x206   : > { %v2988_v50 = vsel %vm2970_vm13, %v3247_v29, %v2979_v11 }
 0x207   : > { %v3169_v51 = vpack.c.bf16 %v2988_v50, %v2987_v49 }
 0x208   : > { %v2872_v53 = vpop.f32.mrb[0].mxu0 }
 0x209   : > { %3033 = vst [vmem:[%s4067_s18] sm:$0xff] %v3169_v51  ;;  %v3248_v54 = vadd.f32 %v2872_v53, %v378_v37  ;;  %v2831_v20 = vpop.f32.mrb[4].mxu1  ;;  %v2874_v55 = vpop.f32.mrb[1].mxu0 }
 0x20a   : > { %vm2971_vm14 = vcmp.ge.f32.partialorder %v2831_v20, 0.0  ;;  %v2980_v56 = vmul.f32 0.2, %v2831_v20  ;;  %v3249_v57 = vadd.f32 %v2874_v55, %v380_v38  ;;  %v2833_v58 = vpop.f32.mrb[5].mxu1  ;;  %v2876_v59 = vpop.f32.mrb[2].mxu0 }
 0x20b   : > { %vm2973_vm15 = vcmp.ge.f32.partialorder %v3248_v54, 0.0  ;;  %v2982_v60 = vmul.f32 0.2, %v3248_v54  ;;  %vm2972_vm0 = vcmp.ge.f32.partialorder %v2833_v58, 0.0  ;;  %v2981_v45 = vmul.f32 0.2, %v2833_v58 }
 0x20c   : > { %v2989_v61 = vsel %vm2971_vm14, %v2831_v20, %v2980_v56  ;;  %vm2974_vm1 = vcmp.ge.f32.partialorder %v3249_v57, 0.0  ;;  %v2983_v63 = vmul.f32 0.2, %v3249_v57  ;;  %v2835_v62 = vpop.f32.mrb[6].mxu1  ;;  %v2877_v26 = vpop.f32.mrb[3].mxu0 }
 0x20d   : > { %v2991_v0 = vsel %vm2973_vm15, %v3248_v54, %v2982_v60  ;;  %v2990_v14 = vsel %vm2972_vm0, %v2833_v58, %v2981_v45  ;;  %v2836_v1 = vpop.f32.mrb[7].mxu1 }
 0x20e   : > { %v2992_v2 = vsel %vm2974_vm1, %v3249_v57, %v2983_v63  ;;  %v3170_v6 = vpack.c.bf16 %v2990_v14, %v2989_v61 }
 0x20f   : > { %v3171_v7 = vpack.c.bf16 %v2992_v2, %v2991_v0 }
 0x210   : > { %3034 = vst [vmem:[%s4067_s18 + $0x8] sm:$0xff] %v3170_v6  ;;  %v2954_v41 = vpop.f32.mrb[4].mxu0 }
 0x211   : > { %3035 = vst [vmem:[%s4067_s18 + $0x10] sm:$0xff] %v3171_v7  ;;  %v3250_v8 = vadd.f32 %v2954_v41, %v460_v31  ;;  %v2913_v27 = vpop.f32.mrb[12].mxu1  ;;  %v3244_v10 = vpop.f32.mrb[5].mxu0 }
 0x212   : > { %vm2975_vm2 = vcmp.ge.f32.partialorder %v2913_v27, 0.0  ;;  %v2984_v5 = vmul.f32 0.2, %v2913_v27  ;;  %v2915_v15 = vpop.f32.mrb[13].mxu1  ;;  %v2957_v21 = vpop.f32.mrb[6].mxu0 }
 0x213   : > { %vm2977_vm3 = vcmp.ge.f32.partialorder %v3250_v8, 0.0  ;;  %v2986_v17 = vmul.f32 0.2, %v3250_v8  ;;  %vm2976_vm4 = vcmp.ge.f32.partialorder %v2915_v15, 0.0  ;;  %v2985_v18 = vmul.f32 0.2, %v2915_v15 }
 0x214   : > { %v2993_v19 = vsel %vm2975_vm2, %v2913_v27, %v2984_v5  ;;  %v2917_v22 = vpop.f32.mrb[14].mxu1  ;;  %v3245_v9 = vpop.f32.mrb[7].mxu0 }
 0x215   : > { %v2995_v25 = vsel %vm2977_vm3, %v3250_v8, %v2986_v17  ;;  %v2994_v30 = vsel %vm2976_vm4, %v2915_v15, %v2985_v18  ;;  %v2918_v52 = vpop.f32.mrb[15].mxu1 }
 0x216   : > { %v3173_v32 = vpack.c.bf16 %v2995_v25, %v2995_v25  ;;  %v3172_v33 = vpack.c.bf16 %v2994_v30, %v2993_v19 }
 0x218   : > { %3037 = vst [vmem:[%s4067_s18 + $0x20] sm:$0xf] %v3173_v32  ;;  %3036 = vst [vmem:[%s4067_s18 + $0x18] sm:$0xff] %v3172_v33 }
 0x219 PF: > { %s12_s9 = sadd.s32 1, %s3430_s9  }
 0x21a   : > { %p9_p4 = scmp.ge.s32.totalorder %s12_s9, 4  }
 0x21c   :  { %11 = sbr.rel (!%p9_p4) target bundleno = 1 (0x1), region = 66 }

// kernel: discriminator_forward.12
= control target key start
LH: loop header
LB: loop body
LE: loop exit
PB: predicated region body
PF: predicated region fallthrough
CT: control target
= control target key end

     0   :  { %s372_s12 = smov 0   ;;  %s408_s0 = inlined_call_operand.vmem [shape: bf16[2,16,384], index: 0, kind: input, shape index: {}]   ;;  %s409_s1 = inlined_call_operand.vmem [shape: f32[16,1], index: 1, kind: input, shape index: {}]   ;;  %s410_s2 = inlined_call_operand.vmem [shape: f32[16,1], index: 2, kind: input, shape index: {}]   ;;  %s411_s3 = inlined_call_operand.vmem [shape: bf16[2,16,384], index: 3, kind: output, shape index: {}]  }
   0x1 LB: > { %s314_s13 = sadd.s32 4294967295, %s349_s12   ;;  %p318_p0 = scmp.ge.s32.totalorder %s349_s12, 1  ;;  %s349_s12 = sphi %s372_s12, %s13_s12  }
   0x2   : > { %p137_p1 = scmp.lt.s32.totalorder %s349_s12, 3 }
   0x4   : > { %p138_p2 = pnand %p318_p0, %p137_p1 }
   0x5   : > { %v199_v0 = vld [vmem:[%s410_s2] sm:$0xff] (!%p138_p2)  ;;  %v351_v2 = vmov (!%p138_p2), 0   ;;  %v200_v3 = vld [vmem:[%s410_s2 + $0x8] sm:$0xff] (!%p138_p2)  ;;  %p161_p3 = scmp.lt.s32.totalorder (!%p138_p2), %s314_s13, 1 }
   0x6   : > { %141 = sbr.rel (%p138_p2) target bundleno = 151 (0x97), region = 32  ;;  %v181_v1 = vld [vmem:[%s409_s1] sm:$0xff] (!%p138_p2)  ;;  %342 = vset.pattern.permute.xlu1 (!%p138_p2), %v351_v2  ;;  %341 = vset.pattern.permute.xlu0 (!%p138_p2), %v351_v2  ;;  %v182_v4 = vld [vmem:[%s409_s1 + $0x8] sm:$0xff] (!%p138_p2) }
   0x7   : > { %203 = vperm.xlu1 (!%p138_p2), %342, %v199_v0   ;;  %185 = vperm.xlu0 (!%p138_p2), %341, %v181_v1  }
   0xb   : > { %208 = vperm.xlu1 (!%p138_p2), %342, %v200_v3   ;;  %190 = vperm.xlu0 (!%p138_p2), %341, %v182_v4  }
   0xd   : > { %s413_s13 = smov (!%p161_p3, %s314_s13), 1 }
   0xe   : > { %s331_s22 = smul.u32 24, %s413_s13 }
  0x10   : > { %s165_s25 = scalar_lea.vmem %s408_s0, %s331_s22  ;;  %s170_s28 = scalar_lea.vmem %s411_s3, %s331_s22 }
  0x11   : > { %v171_v5 = vld [vmem:[%s165_s25] sm:$0xff]  ;;  %v172_v6 = vld [vmem:[%s165_s25 + $0x8] ss:$12 sps:$4 sm:$0xff]   ;;  %v173_v10 = vld [vmem:[%s165_s25 + $0xc] sm:$0xff] }
  0x12   : > { %v175_v7 = vunpack.c.l.bf16 %v171_v5  ;;  %v176_v8 = vunpack.c.h.bf16 %v171_v5  ;;  %v177_v9 = vunpack.c.l.bf16 %v172_v6  ;;  %v178_v16 = vunpack.c.l.bf16 %v173_v10 }
  0x13   : > { %v179_v17 = vunpack.c.h.bf16 %v173_v10  ;;  %v180_v21 = vunpack.c.h.bf16 %v172_v6 }
  0x86   : > { %v186_v11 = vpop.permute.xlu0 %185  ;;  %v204_v12 = vpop.permute.xlu1 %203 }
  0x87   : > { %v193_v13 = vmul.f32 %v186_v11, %v175_v7  ;;  %v194_v14 = vmul.f32 %v186_v11, %v176_v8  ;;  %v195_v15 = vmul.f32 %v186_v11, %v177_v9 }
  0x89   : > { %v211_v18 = vadd.f32 %v204_v12, %v193_v13  ;;  %v212_v19 = vadd.f32 %v204_v12, %v194_v14  ;;  %v213_v20 = vadd.f32 %v204_v12, %v195_v15 }
  0x8a   : > { %v191_v22 = vpop.permute.xlu0 %190  ;;  %v209_v29 = vpop.permute.xlu1 %208 }
  0x8b   : > { %vm217_vm0 = vcmp.ge.f32.partialorder %v211_v18, 0.0  ;;  %vm218_vm1 = vcmp.ge.f32.partialorder %v212_v19, 0.0  ;;  %vm219_vm2 = vcmp.ge.f32.partialorder %v213_v20, 0.0  ;;  %v223_v23 = vmul.f32 0.1, %v211_v18 }
  0x8c   : > { %v224_v24 = vmul.f32 0.1, %v212_v19  ;;  %v225_v25 = vmul.f32 0.1, %v213_v20  ;;  %v196_v26 = vmul.f32 %v191_v22, %v178_v16  ;;  %v197_v27 = vmul.f32 %v191_v22, %v179_v17 }
  0x8d   : > { %v229_v28 = vsel %vm217_vm0, %v211_v18, %v223_v23  ;;  %v198_v30 = vmul.f32 %v191_v22, %v180_v21 }
  0x8e   : > { %v230_v31 = vsel %vm218_vm1, %v212_v19, %v224_v24  ;;  %v231_v32 = vsel %vm219_vm2, %v213_v20, %v225_v25  ;;  %v214_v33 = vadd.f32 %v209_v29, %v196_v26  ;;  %v215_v34 = vadd.f32 %v209_v29, %v197_v27 }
  0x8f   : > { %v327_v35 = vpack.c.bf16 %v230_v31, %v229_v28  ;;  %v328_v36 = vpack.c.bf16 %v231_v32, %v231_v32  ;;  %v216_v37 = vadd.f32 %v209_v29, %v198_v30 }
  0x90   : > { %vm220_vm3 = vcmp.ge.f32.partialorder %v214_v33, 0.0  ;;  %vm221_vm4 = vcmp.ge.f32.partialorder %v215_v34, 0.0  ;;  %v226_v38 = vmul.f32 0.1, %v214_v33  ;;  %v227_v39 = vmul.f32 0.1, %v215_v34 }
  0x91   : > { %255 = vst [vmem:[%s170_s28] sm:$0xff] %v327_v35  ;;  %256 = vst [vmem:[%s170_s28 + $0x8] sm:$0xf] %v328_v36  ;;  %vm222_vm5 = vcmp.ge.f32.partialorder %v216_v37, 0.0  ;;  %v228_v40 = vmul.f32 0.1, %v216_v37 }
  0x92   : > { %v232_v41 = vsel %vm220_vm3, %v214_v33, %v226_v38  ;;  %v233_v42 = vsel %vm221_vm4, %v215_v34, %v227_v39 }
  0x93   : > { %v234_v43 = vsel %vm222_vm5, %v216_v37, %v228_v40  ;;  %v329_v44 = vpack.c.bf16 %v233_v42, %v232_v41 }
  0x94   : > { %v330_v45 = vpack.c.bf16 %v234_v43, %v234_v43 }
  0x95   : > { %257 = vst [vmem:[%s170_s28 + $0xc] sm:$0xff] %v329_v44 }
  0x96   : > { %258 = vst [vmem:[%s170_s28 + $0x14] sm:$0xf] %v330_v45 }
  0x97 PF: > { %s13_s12 = sadd.s32 1, %s349_s12  }
  0x98   : > { %p10_p4 = scmp.ge.s32.totalorder %s13_s12, 4  }
  0x9a   :  { %12 = sbr.rel (!%p10_p4) target bundleno = 1 (0x1), region = 62 }

// kernel: discriminator_forward.11
= control target key start
LH: loop header
LB: loop body
LE: loop exit
PB: predicated region body
PF: predicated region fallthrough
CT: control target
= control target key end

     0   :  { %s1234_s15 = smov 0   ;;  %s1359_s0 = inlined_call_operand.vmem [shape: bf16[2,32,512], index: 0, kind: input, shape index: {}]   ;;  %s1360_s1 = inlined_call_operand.vmem [shape: bf16[4,16,32], index: 1, kind: input, shape index: {}]   ;;  %s1361_s2 = inlined_call_operand.vmem [shape: bf16[2,16,384], index: 2, kind: output, shape index: {0}]   ;;  %s1362_s3 = inlined_call_operand.vmem [shape: f32[2,16,1], index: 3, kind: output, shape index: {1}]   ;;  %s1363_s4 = inlined_call_operand.vmem [shape: f32[2,16,1], index: 4, kind: output, shape index: {2}]  }
   0x1 LB: > { %s1028_s16 = sadd.s32 4294967295, %s1201_s15   ;;  %p1032_p0 = scmp.ge.s32.totalorder %s1201_s15, 1  ;;  %s1201_s15 = sphi %s1234_s15, %s15_s15  }
   0x2   : > { %p167_p1 = scmp.lt.s32.totalorder %s1201_s15, 3 }
   0x4   : > { %p168_p2 = pnand %p1032_p0, %p167_p1 }
   0x5   : > { %p203_p3 = scmp.lt.s32.totalorder (!%p168_p2), %s1028_s16, 1  ;;  %v1203_v0 = vmov (!%p168_p2), 0.0   ;;  %s1204_s21 = smov (!%p168_p2), 127   ;;  %v1205_v5 = vmov (!%p168_p2), 0   ;;  %vm1206_vm0 = vmmov (!%p168_p2), 0   ;;  %vm298_vm1 = vcmask (!%p168_p2), 1039360  }
   0x6   : > { %171 = sbr.rel (%p168_p2) target bundleno = 554 (0x22a), region = 28  ;;  %1100 = vmatprep.subr.bf16.mxu1 (!%p168_p2), %v1203_v0  ;;  %347 = vmatprep.mubr.bf16.mxu0 (!%p168_p2), %v1205_v5  ;;  %s1207_s22 = smov (!%p168_p2), 111   ;;  %v1189_v23 = vld [vmem:[%s1360_s1 + $0x8] sm:$0xff] (!%p168_p2)   ;;  %vm311_vm2 = vcmask (!%p168_p2), 261120   ;;  %vm547_vm3 = vcmask (!%p168_p2), 908288   ;;  %v1192_v34 = vld [vmem:[%s1360_s1] sm:$0xff] (!%p168_p2)   ;;  %v807_v58 = vlaneseq (!%p168_p2) }
   0x7   : > { %1104 = vmatprep.mubr.msk.bf16.mxu1 (!%p168_p2), %vm1206_vm0, %v1203_v0  ;;  %s1208_s23 = smov (!%p168_p2), 110   ;;  %vm677_vm4 = vcmask (!%p168_p2), 900096   ;;  %v1193_v47 = vld [vmem:[%s1360_s1 + $0x10] sm:$0xff] (!%p168_p2)   ;;  %v1194_v57 = vld [vmem:[%s1360_s1 + $0x18] sm:$0xff] (!%p168_p2)  }
   0x8   : > { %v808_v59 = vand.u32 (!%p168_p2), 127, %v807_v58 }
   0xa   : > { %v810_v60 = vadd.s32 (!%p168_p2), 256, %v808_v59  ;;  %v809_v61 = vadd.s32 (!%p168_p2), 128, %v808_v59 }
   0xc   : > { %v1330_v62 = vmul.u32.u64.low (!%p168_p2), 4042322161, %v810_v60  ;;  %v1331_v63 = vmul.u32.u64.high 4042322161, %v810_v60, %v1330_v62  ;;  %vm864_vm15 = vcmp.lt.s32.totalorder (!%p168_p2), %v810_v60, 272 }
   0xd   : > { %s1365_s16 = smov (!%p203_p3, %s1028_s16), 1 }
   0xe   : > { %s1081_s17 = sshll.u32 %s1365_s16, 6  ;;  %s1156_s6 = smul.u32 24, %s1365_s16 }
   0xf   : > { %s1249_s20 = scalar_lea.vmem %s1359_s0, %s1081_s17  ;;  %s1082_s10 = sshll.u32 %s1365_s16, 4 }
  0x10   : > { %v1177_v1 = vld [vmem:[%s1249_s20 + $0x4] ss:$16 sps:$4 sm:$0xff]   ;;  %v1253_v2 = vld [vmem:[%s1249_s20] ss:$16 sps:$4 sm:$0xff]   ;;  %v1180_v3 = vld [vmem:[%s1249_s20 + $0x8] ss:$16 sps:$4 sm:$0xff]   ;;  %s212_s9 = scalar_lea.vmem %s1361_s2, %s1156_s6  ;;  %s217_s13 = scalar_lea.vmem %s1362_s3, %s1082_s10 }
  0x11   : > { %284 = vrot.lane.b32.xlu0 %v1177_v1, %s1204_s21  ;;  %282 = vrot.lane.b32.xlu1 %v1253_v2, %s1204_s21  ;;  %v1182_v4 = vld [vmem:[%s1249_s20 + $0xc] ss:$16 sps:$4 sm:$0xff]   ;;  %v1183_v6 = vld [vmem:[%s1249_s20 + $0x24] ss:$16 sps:$4 sm:$0xff]   ;;  %s222_s18 = scalar_lea.vmem %s1363_s4, %s1082_s10 }
  0x12   : > { %v1185_v7 = vld [vmem:[%s1249_s20 + $0x28] ss:$16 sps:$4 sm:$0xff]   ;;  %v1264_v8 = vld [vmem:[%s1249_s20 + $0x20] ss:$16 sps:$4 sm:$0xff]   ;;  %v1188_v9 = vld [vmem:[%s1249_s20 + $0x2c] ss:$16 sps:$4 sm:$0xff]  }
  0x13   : > { %v1190_v25 = vld [vmem:[%s1249_s20 + $0x8] ss:$16 sps:$4 sm:$0xff]  }
  0x14   : > { %v1191_v28 = vld [vmem:[%s1249_s20 + $0x28] ss:$16 sps:$4 sm:$0xff]  }
  0x15   : > { %286 = vrot.lane.b32.xlu0 %v1180_v3, %s1204_s21  ;;  %288 = vrot.lane.b32.xlu1 %v1182_v4, %s1204_s21 }
  0x19   : > { %292 = vrot.lane.b32.xlu0 %v1183_v6, %s1204_s21  ;;  %294 = vrot.lane.b32.xlu1 %v1185_v7, %s1204_s21 }
  0x1d   : > { %290 = vrot.lane.b32.xlu0 %v1264_v8, %s1204_s21  ;;  %296 = vrot.lane.b32.xlu1 %v1188_v9, %s1204_s21 }
  0x21   : > { %533 = vrot.lane.b32.xlu0 %v1177_v1, %s1207_s22  ;;  %535 = vrot.lane.b32.xlu1 %v1180_v3, %s1207_s22 }
  0x25   : > { %531 = vrot.lane.b32.xlu0 %v1253_v2, %s1207_s22  ;;  %537 = vrot.lane.b32.xlu1 %v1182_v4, %s1207_s22 }
  0x29   : > { %541 = vrot.lane.b32.xlu0 %v1183_v6, %s1207_s22  ;;  %543 = vrot.lane.b32.xlu1 %v1185_v7, %s1207_s22 }
  0x2d   : > { %539 = vrot.lane.b32.xlu0 %v1264_v8, %s1207_s22  ;;  %545 = vrot.lane.b32.xlu1 %v1188_v9, %s1207_s22 }
  0x31   : > { %663 = vrot.lane.b32.xlu0 %v1177_v1, %s1208_s23  ;;  %665 = vrot.lane.b32.xlu1 %v1180_v3, %s1208_s23 }
  0x35   : > { %661 = vrot.lane.b32.xlu0 %v1253_v2, %s1208_s23  ;;  %667 = vrot.lane.b32.xlu1 %v1182_v4, %s1208_s23  ;;  %v1336_v3 = vmul.u32.u64.low 4042322161, %v809_v61  ;;  %v1337_v4 = vmul.u32.u64.high 4042322161, %v809_v61, %v1336_v3 }
  0x39   : > { %671 = vrot.lane.b32.xlu0 %v1183_v6, %s1208_s23  ;;  %673 = vrot.lane.b32.xlu1 %v1185_v7, %s1208_s23  ;;  %v828_v7 = vshrl.u32 %v1337_v4, 4 }
  0x3d   : > { %669 = vrot.lane.b32.xlu0 %v1264_v8, %s1208_s23  ;;  %675 = vrot.lane.b32.xlu1 %v1188_v9, %s1208_s23 }
  0x83   : > { %v285_v10 = vpop.permute.xlu0 %284  ;;  %v283_v11 = vpop.permute.xlu1 %282 }
  0x84   : > { %v299_v16 = vsel %vm298_vm1, %v283_v11, %v285_v10 }
  0x87   : > { %v287_v12 = vpop.permute.xlu0 %286  ;;  %v289_v13 = vpop.permute.xlu1 %288 }
  0x88   : > { %v300_v14 = vsel %vm298_vm1, %v285_v10, %v287_v12  ;;  %v301_v15 = vsel %vm298_vm1, %v287_v12, %v289_v13  ;;  %v829_v10 = vmul.u32 17, %v828_v7 }
  0x89   : > { %315 = vmatprep.subr.bf16.mxu0 %v300_v14  ;;  %1101 = vmatpush3.bf16.msra.mxu1 %v301_v15 }
  0x8a   : > { %316 = vmatpush1.bf16.msra.mxu0 %v299_v16  ;;  %1102 = vmatprep.subr.bf16.mxu1 %v1203_v0  ;;  %v830_v13 = vsub.s32 %v809_v61, %v829_v10 }
  0x8b   : > { %v293_v17 = vpop.permute.xlu0 %292  ;;  %v295_v18 = vpop.permute.xlu1 %294 }
  0x8c   : > { %v303_v19 = vsel %vm298_vm1, %v293_v17, %v295_v18  ;;  %vm845_vm9 = vcmp.ne.s32.totalorder %v830_v13, 0  ;;  %vm848_vm10 = vcmp.lt.s32.totalorder %v830_v13, 0  ;;  %v854_v16 = vadd.s32 17, %v830_v13 }
  0x8d   : > { %317 = vmatprep.subr.bf16.mxu0 %v303_v19  ;;  %vm851_vm13 = vmand %vm848_vm10, %vm845_vm9 }
  0x8e   : > { %v857_v19 = vsel %vm851_vm13, %v854_v16, %v830_v13 }
  0x8f   : > { %v291_v20 = vpop.permute.xlu0 %290  ;;  %v297_v21 = vpop.permute.xlu1 %296 }
  0x90   : > { %v302_v22 = vsel %vm298_vm1, %v291_v20, %v293_v17  ;;  %v304_v24 = vsel %vm298_vm1, %v295_v18, %v297_v21  ;;  %vm860_vm1 = vcmp.lt.s32.totalorder %v857_v19, 16 }
  0x91   : > { %318 = vmatpush1.bf16.msra.mxu0 %v302_v22  ;;  %1103 = vmatpush3.bf16.msra.mxu1 %v304_v24  ;;  %v1077_v21 = vsel %vm860_vm1, 1.0, %v1203_v0 }
  0x92   : > { %439 = vmatprep.subr.bf16.mxu0 %v1177_v1  ;;  %1108 = vmatprep.subr.bf16.mxu1 %v1203_v0 }
  0x93   : > { %v534_v26 = vpop.permute.xlu0 %533  ;;  %v536_v27 = vpop.permute.xlu1 %535 }
  0x94   : > { %1051 = vmatmul.mubr.msk.bf16.vlgmr.msra.gmra.mrb[0].mxu0 %vm311_vm2, %v1189_v23  ;;  %1105 = vmatmul.mubr.msk.bf16.vlgmr.msra.gmra.mrb[0].mxu1 %vm311_vm2, %v1189_v23  ;;  %v549_v30 = vsel %vm547_vm3, %v534_v26, %v536_v27 }
  0x95   : > { %440 = vmatpush1.bf16.msra.mxu0 %v1253_v2  ;;  %1109 = vmatpush3.bf16.msra.mxu1 %v1190_v25  ;;  %v1333_v1 = vmul.u32.u64.low 4042322161, %v808_v59  ;;  %v1334_v2 = vmul.u32.u64.high 4042322161, %v808_v59, %v1333_v1 }
  0x96   : > { %441 = vmatprep.subr.bf16.mxu0 %v1183_v6  ;;  %1110 = vmatprep.subr.bf16.mxu1 %v1203_v0 }
  0x97   : > { %v532_v29 = vpop.permute.xlu0 %531  ;;  %471 = vmatprep.mubr.bf16.mxu0 %v1205_v5  ;;  %v538_v31 = vpop.permute.xlu1 %537  ;;  %1112 = vmatprep.mubr.msk.bf16.mxu1 %vm1206_vm0, %v1203_v0  ;;  %v817_v6 = vshrl.u32 %v1334_v2, 4 }
  0x98   : > { %v548_v37 = vsel %vm547_vm3, %v532_v29, %v534_v26  ;;  %v550_v39 = vsel %vm547_vm3, %v536_v27, %v538_v31 }
  0x99   : > { %442 = vmatpush1.bf16.msra.mxu0 %v1264_v8  ;;  %1111 = vmatpush3.bf16.msra.mxu1 %v1191_v28  ;;  %v818_v9 = vmul.u32 17, %v817_v6 }
  0x9a   : > { %563 = vmatprep.subr.bf16.mxu0 %v549_v30  ;;  %1116 = vmatprep.subr.bf16.mxu1 %v1203_v0 }
  0x9b   : > { %v542_v32 = vpop.permute.xlu0 %541  ;;  %v544_v33 = vpop.permute.xlu1 %543  ;;  %v819_v12 = vsub.s32 %v808_v59, %v818_v9 }
  0x9c   : > { %v552_v36 = vsel %vm547_vm3, %v542_v32, %v544_v33 }
  0x9d   : > { %vm844_vm7 = vcmp.ne.s32.totalorder %v819_v12, 0  ;;  %vm847_vm8 = vcmp.lt.s32.totalorder %v819_v12, 0  ;;  %v853_v15 = vadd.s32 17, %v819_v12 }
  0x9e   : > { %vm850_vm12 = vmand %vm847_vm8, %vm844_vm7 }
  0x9f   : > { %v540_v35 = vpop.permute.xlu0 %539  ;;  %v546_v38 = vpop.permute.xlu1 %545  ;;  %v856_v18 = vsel %vm850_vm12, %v853_v15, %v819_v12 }
  0xa0   : > { %1060 = vmatmul.mubr.msk.bf16.vlgmr.msra.gmra.mrb[0].mxu0 %vm311_vm2, %v1192_v34  ;;  %1113 = vmatmul.mubr.msk.bf16.vlgmr.msra.gmra.mrb[0].mxu1 %vm311_vm2, %v1192_v34  ;;  %v553_v40 = vsel %vm547_vm3, %v544_v33, %v546_v38  ;;  %v551_v42 = vsel %vm547_vm3, %v540_v35, %v542_v32  ;;  %vm888_vm3 = vcmask 7168  }
  0xa1   : > { %564 = vmatpush1.bf16.msra.mxu0 %v548_v37  ;;  %1117 = vmatpush3.bf16.msra.mxu1 %v550_v39 }
  0xa2   : > { %565 = vmatprep.subr.bf16.mxu0 %v552_v36  ;;  %1118 = vmatprep.subr.bf16.mxu1 %v1203_v0 }
  0xa3   : > { %v664_v41 = vpop.permute.xlu0 %663  ;;  %595 = vmatprep.mubr.bf16.mxu0 %v1205_v5  ;;  %v666_v43 = vpop.permute.xlu1 %665  ;;  %1120 = vmatprep.mubr.msk.bf16.mxu1 %vm1206_vm0, %v1203_v0 }
  0xa4   : > { %v679_v44 = vsel %vm677_vm4, %v664_v41, %v666_v43 }
  0xa5   : > { %566 = vmatpush1.bf16.msra.mxu0 %v551_v42  ;;  %1119 = vmatpush3.bf16.msra.mxu1 %v553_v40 }
  0xa6   : > { %693 = vmatprep.subr.bf16.mxu0 %v679_v44  ;;  %1124 = vmatprep.subr.bf16.mxu1 %v1203_v0 }
  0xa7   : > { %v662_v45 = vpop.permute.xlu0 %661  ;;  %v668_v46 = vpop.permute.xlu1 %667 }
  0xa8   : > { %v680_v48 = vsel %vm677_vm4, %v666_v43, %v668_v46  ;;  %v678_v50 = vsel %vm677_vm4, %v662_v45, %v664_v41 }
  0xab   : > { %v672_v49 = vpop.permute.xlu0 %671  ;;  %v674_v51 = vpop.permute.xlu1 %673 }
  0xac   : > { %1065 = vmatmul.mubr.msk.bf16.vlgmr.msra.gmra.mrb[0].mxu0 %vm311_vm2, %v1193_v47  ;;  %1121 = vmatmul.mubr.msk.bf16.vlgmr.msra.gmra.mrb[0].mxu1 %vm311_vm2, %v1193_v47  ;;  %v682_v52 = vsel %vm677_vm4, %v672_v49, %v674_v51 }
  0xad   : > { %694 = vmatpush1.bf16.msra.mxu0 %v678_v50  ;;  %1125 = vmatpush3.bf16.msra.mxu1 %v680_v48 }
  0xae   : > { %695 = vmatprep.subr.bf16.mxu0 %v682_v52  ;;  %1126 = vmatprep.subr.bf16.mxu1 %v1203_v0 }
  0xaf   : > { %v670_v53 = vpop.permute.xlu0 %669  ;;  %725 = vmatprep.mubr.bf16.mxu0 %v1205_v5  ;;  %v676_v55 = vpop.permute.xlu1 %675  ;;  %1128 = vmatprep.mubr.msk.bf16.mxu1 %vm1206_vm0, %v1203_v0  ;;  %v839_v5 = vshrl.u32 %v1331_v63, 4  ;;  %vm859_vm0 = vcmp.lt.s32.totalorder %v856_v18, 16 }
  0xb0   : > { %v681_v54 = vsel %vm677_vm4, %v670_v53, %v672_v49  ;;  %v683_v56 = vsel %vm677_vm4, %v674_v51, %v676_v55  ;;  %v1076_v20 = vsel %vm859_vm0, 1.0, %v1203_v0 }
  0xb1   : > { %696 = vmatpush1.bf16.msra.mxu0 %v681_v54  ;;  %1127 = vmatpush3.bf16.msra.mxu1 %v683_v56  ;;  %v840_v8 = vmul.u32 17, %v839_v5 }
  0xb3   : > { %v841_v11 = vsub.s32 %v810_v60, %v840_v8 }
  0xb5   : > { %vm846_vm5 = vcmp.ne.s32.totalorder %v841_v11, 0  ;;  %vm849_vm6 = vcmp.lt.s32.totalorder %v841_v11, 0  ;;  %v855_v14 = vadd.s32 17, %v841_v11 }
  0xb6   : > { %vm852_vm11 = vmand %vm849_vm6, %vm846_vm5 }
  0xb7   : > { %v858_v17 = vsel %vm852_vm11, %v855_v14, %v841_v11 }
  0xb8   : > { %1070 = vmatmul.mubr.msk.bf16.vlgmr.msra.gmra.mrb[0].mxu0 %vm311_vm2, %v1194_v57  ;;  %1129 = vmatmul.mubr.msk.bf16.vlgmr.msra.gmra.mrb[0].mxu1 %vm311_vm2, %v1194_v57  ;;  %vm861_vm14 = vcmp.lt.s32.totalorder %v858_v17, 16 }
  0xb9   : > { %vm867_vm2 = vmand %vm861_vm14, %vm864_vm15 }
  0xba   : > { %v1078_v23 = vsel %vm867_vm2, 1.0, %v1203_v0 }
 0x18b   : > { %v727_v22 = vpop.f32.mrb[0].mxu0  ;;  %v770_v25 = vpop.f32.mrb[0].mxu1 }
 0x18c   : > { %v874_v24 = vmul.f32 %v1076_v20, %v727_v22  ;;  %v729_v26 = vpop.f32.mrb[1].mxu0  ;;  %v1085_v27 = vpack.c.bf16 %v770_v25, %v770_v25  ;;  %v1130_v29 = vpop.f32.mrb[1].mxu1  ;;  %v876_v36 = vmul.f32 %v1078_v23, %v770_v25 }
 0x18d   : > { %v1084_v28 = vpack.c.bf16 %v729_v26, %v727_v22  ;;  %v731_v30 = vpop.f32.mrb[2].mxu0  ;;  %v875_v31 = vmul.f32 %v1077_v21, %v729_v26  ;;  %v773_v34 = vpop.f32.mrb[2].mxu1 }
 0x18e   : > { %v891_v32 = vmul.f32 %v874_v24, %v727_v22  ;;  %v877_v33 = vmul.f32 %v1076_v20, %v731_v30  ;;  %v733_v35 = vpop.f32.mrb[3].mxu0  ;;  %804 = vst [vmem:[%s212_s9 + $0x8] sm:$0xf] %v1085_v27  ;;  %v1087_v0 = vpack.c.bf16 %v773_v34, %v773_v34  ;;  %v1131_v39 = vpop.f32.mrb[3].mxu1  ;;  %v879_v42 = vmul.f32 %v1078_v23, %v773_v34 }
 0x18f   : > { %803 = vst [vmem:[%s212_s9] sm:$0xff] %v1084_v28  ;;  %v1086_v37 = vpack.c.bf16 %v733_v35, %v731_v30  ;;  %v878_v38 = vmul.f32 %v1077_v21, %v733_v35  ;;  %v880_v40 = vadd.f32 %v875_v31, %v874_v24  ;;  %v892_v43 = vmul.f32 %v875_v31, %v729_v26 }
 0x190   : > { %v894_v41 = vmul.f32 %v877_v33, %v731_v30  ;;  %806 = vst [vmem:[%s212_s9 + $0x14] sm:$0xf] %v1087_v0  ;;  %v893_v47 = vmul.f32 %v876_v36, %v770_v25  ;;  %v896_v50 = vmul.f32 %v879_v42, %v773_v34 }
 0x191   : > { %805 = vst [vmem:[%s212_s9 + $0xc] sm:$0xff] %v1086_v37  ;;  %v895_v44 = vmul.f32 %v878_v38, %v733_v35  ;;  %v881_v45 = vadd.f32 %v880_v40, %v876_v36  ;;  %v884_v46 = vadd.f32 %v878_v38, %v877_v33  ;;  %v897_v48 = vadd.f32 %v892_v43, %v891_v32 }
 0x193   : > { %882 = vadd.xlane.f32.xlu0 %v881_v45  ;;  %v885_v49 = vadd.f32 %v884_v46, %v879_v42  ;;  %v901_v51 = vadd.f32 %v895_v44, %v894_v41  ;;  %v898_v52 = vadd.f32 %v897_v48, %v893_v47 }
 0x195   : > { %886 = vadd.xlane.f32.xlu1 %v885_v49  ;;  %v902_v53 = vadd.f32 %v901_v51, %v896_v50 }
 0x197   : > { %899 = vadd.xlane.f32.xlu0 %v898_v52 }
 0x19b   : > { %903 = vadd.xlane.f32.xlu0 %v902_v53 }
 0x220   : > { %v883_v54 = vpop.xlane.xlu0 %882 }
 0x221   : > { %889 = vst.msk [vmem:[%s217_s13] sm:$0xff] %vm888_vm3, %v883_v54 }
 0x222   : > { %v887_v55 = vpop.xlane.xlu1 %886 }
 0x223   : > { %890 = vst.msk [vmem:[%s217_s13 + $0x8] sm:$0xff] %vm888_vm3, %v887_v55 }
 0x224   : > { %v900_v56 = vpop.xlane.xlu0 %899 }
 0x225   : > { %905 = vst.msk [vmem:[%s222_s18] sm:$0xff] %vm888_vm3, %v900_v56 }
 0x228   : > { %v904_v57 = vpop.xlane.xlu0 %903 }
 0x229   : > { %906 = vst.msk [vmem:[%s222_s18 + $0x8] sm:$0xff] %vm888_vm3, %v904_v57 }
 0x22a PF: > { %s15_s15 = sadd.s32 1, %s1201_s15  }
 0x22b   : > { %p12_p4 = scmp.ge.s32.totalorder %s15_s15, 4  }
 0x22d   :  { %14 = sbr.rel (!%p12_p4) target bundleno = 1 (0x1), region = 85 }

// kernel: discriminator_forward.14
= control target key start
LH: loop header
LB: loop body
LE: loop exit
PB: predicated region body
PF: predicated region fallthrough
CT: control target
= control target key end

     0   :  { %s403_s12 = smov 0   ;;  %s444_s0 = inlined_call_operand.vmem [shape: bf16[2,32,128], index: 0, kind: input, shape index: {}]   ;;  %s445_s1 = inlined_call_operand.vmem [shape: f32[32,1], index: 1, kind: input, shape index: {}]   ;;  %s446_s2 = inlined_call_operand.vmem [shape: f32[32,1], index: 2, kind: input, shape index: {}]   ;;  %s447_s3 = inlined_call_operand.vmem [shape: bf16[2,32,128], index: 3, kind: output, shape index: {}]  }
   0x1 LB: > { %s322_s13 = sadd.s32 4294967295, %s380_s12   ;;  %p326_p0 = scmp.ge.s32.totalorder %s380_s12, 1  ;;  %s380_s12 = sphi %s403_s12, %s13_s12  }
   0x2   : > { %p137_p1 = scmp.lt.s32.totalorder %s380_s12, 3 }
   0x4   : > { %p138_p2 = pnand %p326_p0, %p137_p1 }
   0x5   : > { %v181_v0 = vld [vmem:[%s445_s1 + $0x10] sm:$0xff] (!%p138_p2)  ;;  %v179_v1 = vld [vmem:[%s445_s1] sm:$0xff] (!%p138_p2)  ;;  %v382_v2 = vmov (!%p138_p2), 0   ;;  %v182_v3 = vld [vmem:[%s445_s1 + $0x18] sm:$0xff] (!%p138_p2)  ;;  %p161_p3 = scmp.lt.s32.totalorder (!%p138_p2), %s322_s13, 1 }
   0x6   : > { %141 = sbr.rel (%p138_p2) target bundleno = 155 (0x9b), region = 32  ;;  %373 = vset.pattern.permute.xlu1 (!%p138_p2), %v382_v2  ;;  %372 = vset.pattern.permute.xlu0 (!%p138_p2), %v382_v2  ;;  %v180_v4 = vld [vmem:[%s445_s1 + $0x8] sm:$0xff] (!%p138_p2)  ;;  %v207_v6 = vld [vmem:[%s446_s2] sm:$0xff] (!%p138_p2)  ;;  %v210_v7 = vld [vmem:[%s446_s2 + $0x18] sm:$0xff] (!%p138_p2) }
   0x7   : > { %195 = vperm.xlu1 (!%p138_p2), %373, %v181_v0   ;;  %185 = vperm.xlu0 (!%p138_p2), %372, %v179_v1   ;;  %v208_v5 = vld [vmem:[%s446_s2 + $0x8] sm:$0xff] (!%p138_p2)  ;;  %v209_v8 = vld [vmem:[%s446_s2 + $0x10] sm:$0xff] (!%p138_p2) }
   0xb   : > { %200 = vperm.xlu1 (!%p138_p2), %373, %v182_v3   ;;  %190 = vperm.xlu0 (!%p138_p2), %372, %v180_v4  }
   0xd   : > { %s449_s13 = smov (!%p161_p3, %s322_s13), 1 }
   0xe   : > { %s337_s30 = sshll.u32 %s449_s13, 4 }
   0xf   : > { %218 = vperm.xlu1 %373, %v208_v5   ;;  %213 = vperm.xlu0 %372, %v207_v6   ;;  %s165_s6 = scalar_lea.vmem %s444_s0, %s337_s30  ;;  %s170_s9 = scalar_lea.vmem %s447_s3, %s337_s30 }
  0x10   : > { %v344_v11 = vld [vmem:[%s165_s6] sm:$0xff]   ;;  %v361_v12 = vld [vmem:[%s165_s6 + $0x8] sm:$0xff]  }
  0x11   : > { %v345_v13 = vunpack.c.l.bf16 %v344_v11  ;;  %v346_v14 = vunpack.c.h.bf16 %v344_v11  ;;  %v349_v17 = vunpack.c.l.bf16 %v361_v12  ;;  %v350_v18 = vunpack.c.h.bf16 %v361_v12 }
  0x13   : > { %228 = vperm.xlu1 %373, %v210_v7   ;;  %223 = vperm.xlu0 %372, %v209_v8  }
  0x86   : > { %v196_v9 = vpop.permute.xlu1 %195  ;;  %v186_v10 = vpop.permute.xlu0 %185 }
  0x87   : > { %v203_v19 = vmul.f32 %v345_v13, %v186_v10  ;;  %v205_v25 = vmul.f32 %v349_v17, %v196_v9 }
  0x8a   : > { %v201_v15 = vpop.permute.xlu1 %200  ;;  %v191_v16 = vpop.permute.xlu0 %190 }
  0x8b   : > { %v204_v20 = vmul.f32 %v346_v14, %v191_v16  ;;  %v206_v26 = vmul.f32 %v350_v18, %v201_v15 }
  0x8e   : > { %v219_v21 = vpop.permute.xlu1 %218  ;;  %v214_v22 = vpop.permute.xlu0 %213 }
  0x8f   : > { %v232_v23 = vadd.f32 %v219_v21, %v204_v20  ;;  %v231_v24 = vadd.f32 %v214_v22, %v203_v19 }
  0x91   : > { %vm236_vm0 = vcmp.ge.f32.partialorder %v232_v23, 0.0  ;;  %v240_v27 = vmul.f32 0.1, %v232_v23  ;;  %vm235_vm1 = vcmp.ge.f32.partialorder %v231_v24, 0.0  ;;  %v239_v28 = vmul.f32 0.1, %v231_v24 }
  0x92   : > { %v229_v29 = vpop.permute.xlu1 %228  ;;  %v224_v30 = vpop.permute.xlu0 %223 }
  0x93   : > { %v244_v31 = vsel %vm236_vm0, %v232_v23, %v240_v27  ;;  %v243_v32 = vsel %vm235_vm1, %v231_v24, %v239_v28  ;;  %v234_v33 = vadd.f32 %v229_v29, %v206_v26  ;;  %v233_v34 = vadd.f32 %v224_v30, %v205_v25 }
  0x94   : > { %v354_v35 = vpack.c.bf16 %v244_v31, %v243_v32 }
  0x95   : > { %vm238_vm2 = vcmp.ge.f32.partialorder %v234_v33, 0.0  ;;  %v242_v36 = vmul.f32 0.1, %v234_v33  ;;  %vm237_vm3 = vcmp.ge.f32.partialorder %v233_v34, 0.0  ;;  %v241_v37 = vmul.f32 0.1, %v233_v34 }
  0x96   : > { %355 = vst [vmem:[%s170_s9] sm:$0xff] %v354_v35  }
  0x97   : > { %v246_v38 = vsel %vm238_vm2, %v234_v33, %v242_v36  ;;  %v245_v39 = vsel %vm237_vm3, %v233_v34, %v241_v37 }
  0x98   : > { %v359_v40 = vpack.c.bf16 %v246_v38, %v245_v39 }
  0x9a   : > { %362 = vst [vmem:[%s170_s9 + $0x8] sm:$0xff] %v359_v40  }
  0x9b PF: > { %s13_s12 = sadd.s32 1, %s380_s12  }
  0x9c   : > { %p10_p4 = scmp.ge.s32.totalorder %s13_s12, 4  }
  0x9e   :  { %12 = sbr.rel (!%p10_p4) target bundleno = 1 (0x1), region = 62 }

// kernel: discriminator_forward.13
= control target key start
LH: loop header
LB: loop body
LE: loop exit
PB: predicated region body
PF: predicated region fallthrough
CT: control target
= control target key end

     0   :  { %s1094_s15 = smov 0   ;;  %s1192_s0 = inlined_call_operand.vmem [shape: bf16[2,64,256], index: 0, kind: input, shape index: {}]   ;;  %s1193_s1 = inlined_call_operand.vmem [shape: bf16[4,32,64], index: 1, kind: input, shape index: {}]   ;;  %s1194_s2 = inlined_call_operand.vmem [shape: bf16[2,32,128], index: 2, kind: output, shape index: {0}]   ;;  %s1195_s3 = inlined_call_operand.vmem [shape: f32[2,32,1], index: 3, kind: output, shape index: {1}]   ;;  %s1196_s4 = inlined_call_operand.vmem [shape: f32[2,32,1], index: 4, kind: output, shape index: {2}]  }
   0x1 LB: > { %s856_s16 = sadd.s32 4294967295, %s1063_s15   ;;  %p860_p0 = scmp.ge.s32.totalorder %s1063_s15, 1  ;;  %s1063_s15 = sphi %s1094_s15, %s15_s15  }
   0x2   : > { %p167_p1 = scmp.lt.s32.totalorder %s1063_s15, 3 }
   0x4   : > { %p168_p2 = pnand %p860_p0, %p167_p1 }
   0x5   : > { %p203_p3 = scmp.lt.s32.totalorder (!%p168_p2), %s856_s16, 1  ;;  %s1065_s21 = smov (!%p168_p2), 119   ;;  %v1045_v6 = vld [vmem:[%s1193_s1 + $0x10] sm:$0xff] (!%p168_p2)   ;;  %vm316_vm0 = vcmask (!%p168_p2), 523264   ;;  %v1049_v7 = vld [vmem:[%s1193_s1 + $0x20] sm:$0xff] (!%p168_p2)   ;;  %vm307_vm1 = vcmask (!%p168_p2), 1039360   ;;  %v679_v56 = vlaneseq (!%p168_p2) }
   0x6   : > { %171 = sbr.rel (%p168_p2) target bundleno = 556 (0x22c), region = 28  ;;  %s1066_s22 = smov (!%p168_p2), 127   ;;  %967 = vmatprep.mubr.msk.bf16.mxu1 (!%p168_p2), %vm316_vm0, %v1045_v6  ;;  %991 = vmatprep.mubr.msk.bf16.mxu0 (!%p168_p2), %vm316_vm0, %v1049_v7  ;;  %vm492_vm2 = vcmask (!%p168_p2), 973824   ;;  %v1047_v32 = vld [vmem:[%s1193_s1 + $0x18] sm:$0xff] (!%p168_p2)   ;;  %v1053_v36 = vld [vmem:[%s1193_s1] sm:$0xff] (!%p168_p2)   ;;  %vm591_vm3 = vcmask (!%p168_p2), 965632  }
   0x7   : > { %s1067_s27 = smov (!%p168_p2), 118   ;;  %v1050_v38 = vld [vmem:[%s1193_s1 + $0x28] sm:$0xff] (!%p168_p2)   ;;  %v1055_v42 = vld [vmem:[%s1193_s1 + $0x30] sm:$0xff] (!%p168_p2)   ;;  %v1056_v55 = vld [vmem:[%s1193_s1 + $0x38] sm:$0xff] (!%p168_p2)   ;;  %v680_v57 = vand.u32 (!%p168_p2), 127, %v679_v56  ;;  %v1068_v6 = vmov (!%p168_p2), 0.0  }
   0x8   : > { %v1054_v51 = vld [vmem:[%s1193_s1 + $0x8] sm:$0xff] (!%p168_p2)   ;;  %vm714_vm10 = vcmask (!%p168_p2), 7168  }
   0x9   : > { %v1166_v58 = vmul.u32.u64.low (!%p168_p2), 3817748708, %v680_v57  ;;  %v1167_v59 = vmul.u32.u64.high 3817748708, %v680_v57, %v1166_v58  ;;  %vm698_vm8 = vcmp.lt.s32.totalorder (!%p168_p2), %v680_v57, 72 }
   0xb   : > { %v687_v60 = vshrl.u32 (!%p168_p2), %v1167_v59, 3 }
   0xd   : > { %s1198_s16 = smov (!%p203_p3, %s856_s16), 1  ;;  %v688_v61 = vmul.u32 9, %v687_v60 }
   0xe   : > { %s916_s17 = sshll.u32 %s1198_s16, 6  ;;  %s917_s14 = sshll.u32 %s1198_s16, 4 }
   0xf   : > { %s1108_s20 = scalar_lea.vmem %s1192_s0, %s916_s17  ;;  %v689_v62 = vsub.s32 %v680_v57, %v688_v61  ;;  %s212_s19 = scalar_lea.vmem %s1194_s2, %s917_s14 }
  0x10   : > { %v1033_v0 = vld [vmem:[%s1108_s20] ss:$8 sps:$4 sm:$0xff]   ;;  %v1035_v1 = vld [vmem:[%s1108_s20 + $0x4] ss:$8 sps:$4 sm:$0xff]   ;;  %v1036_v2 = vld [vmem:[%s1108_s20 + $0x14] ss:$8 sps:$4 sm:$0xff]  }
  0x11   : > { %476 = vrot.lane.b32.xlu1 %v1033_v0, %s1065_s21  ;;  %291 = vrot.lane.b32.xlu0 %v1033_v0, %s1066_s22  ;;  %v1038_v3 = vld [vmem:[%s1108_s20 + $0x10] ss:$8 sps:$4 sm:$0xff]   ;;  %v1039_v4 = vld [vmem:[%s1108_s20 + $0x24] ss:$8 sps:$4 sm:$0xff]   ;;  %vm692_vm4 = vcmp.ne.s32.totalorder %v689_v62, 0  ;;  %vm693_vm5 = vcmp.lt.s32.totalorder %v689_v62, 0 }
  0x12   : > { %v1041_v5 = vld [vmem:[%s1108_s20 + $0x20] ss:$8 sps:$4 sm:$0xff]   ;;  %v1042_v8 = vld [vmem:[%s1108_s20 + $0x34] ss:$8 sps:$4 sm:$0xff]   ;;  %v1044_v9 = vld [vmem:[%s1108_s20 + $0x30] ss:$8 sps:$4 sm:$0xff]  }
  0x13   : > { %v1046_v30 = vld [vmem:[%s1108_s20] ss:$8 sps:$4 sm:$0xff]   ;;  %v1048_v35 = vld [vmem:[%s1108_s20 + $0x10] ss:$8 sps:$4 sm:$0xff]   ;;  %v695_v63 = vadd.s32 9, %v689_v62  ;;  %vm694_vm6 = vmand %vm693_vm5, %vm692_vm4 }
  0x14   : > { %v1051_v41 = vld [vmem:[%s1108_s20 + $0x20] ss:$8 sps:$4 sm:$0xff]   ;;  %v1052_v46 = vld [vmem:[%s1108_s20 + $0x30] ss:$8 sps:$4 sm:$0xff]   ;;  %s918_s20 = sshll.u32 %s1198_s16, 5 }
  0x15   : > { %478 = vrot.lane.b32.xlu1 %v1035_v1, %s1065_s21  ;;  %293 = vrot.lane.b32.xlu0 %v1035_v1, %s1066_s22  ;;  %s217_s23 = scalar_lea.vmem %s1195_s3, %s918_s20  ;;  %s222_s26 = scalar_lea.vmem %s1196_s4, %s918_s20 }
  0x19   : > { %297 = vrot.lane.b32.xlu1 %v1036_v2, %s1066_s22  ;;  %295 = vrot.lane.b32.xlu0 %v1038_v3, %s1066_s22 }
  0x1d   : > { %482 = vrot.lane.b32.xlu1 %v1036_v2, %s1065_s21  ;;  %480 = vrot.lane.b32.xlu0 %v1038_v3, %s1065_s21 }
  0x21   : > { %301 = vrot.lane.b32.xlu1 %v1039_v4, %s1066_s22  ;;  %299 = vrot.lane.b32.xlu0 %v1041_v5, %s1066_s22 }
  0x25   : > { %486 = vrot.lane.b32.xlu1 %v1039_v4, %s1065_s21  ;;  %484 = vrot.lane.b32.xlu0 %v1041_v5, %s1065_s21 }
  0x29   : > { %305 = vrot.lane.b32.xlu1 %v1042_v8, %s1066_s22  ;;  %303 = vrot.lane.b32.xlu0 %v1044_v9, %s1066_s22 }
  0x2d   : > { %490 = vrot.lane.b32.xlu1 %v1042_v8, %s1065_s21  ;;  %488 = vrot.lane.b32.xlu0 %v1044_v9, %s1065_s21 }
  0x31   : > { %577 = vrot.lane.b32.xlu1 %v1035_v1, %s1067_s27  ;;  %575 = vrot.lane.b32.xlu0 %v1033_v0, %s1067_s27  ;;  %v696_v0 = vsel %vm694_vm6, %v695_v63, %v689_v62 }
  0x32   : > { %vm697_vm7 = vcmp.lt.s32.totalorder %v696_v0, 8 }
  0x33   : > { %vm699_vm9 = vmand %vm697_vm7, %vm698_vm8 }
  0x34   : > { %v913_v7 = vsel %vm699_vm9, 1.0, %v1068_v6 }
  0x35   : > { %581 = vrot.lane.b32.xlu1 %v1036_v2, %s1067_s27  ;;  %579 = vrot.lane.b32.xlu0 %v1038_v3, %s1067_s27 }
  0x39   : > { %585 = vrot.lane.b32.xlu1 %v1039_v4, %s1067_s27  ;;  %583 = vrot.lane.b32.xlu0 %v1041_v5, %s1067_s27 }
  0x3d   : > { %589 = vrot.lane.b32.xlu1 %v1042_v8, %s1067_s27  ;;  %587 = vrot.lane.b32.xlu0 %v1044_v9, %s1067_s27 }
  0x83   : > { %v477_v10 = vpop.permute.xlu1 %476  ;;  %v292_v11 = vpop.permute.xlu0 %291 }
  0x87   : > { %v479_v12 = vpop.permute.xlu1 %478  ;;  %v294_v13 = vpop.permute.xlu0 %293 }
  0x88   : > { %v308_v14 = vsel %vm307_vm1, %v292_v11, %v294_v13  ;;  %v493_v15 = vsel %vm492_vm2, %v477_v10, %v479_v12 }
  0x89   : > { %959 = vmatprep.subr.bf16.mxu1 %v308_v14  ;;  %983 = vmatprep.subr.bf16.mxu0 %v493_v15 }
  0x8a   : > { %960 = vmatpush3.bf16.msra.mxu1 %v308_v14  ;;  %984 = vmatpush3.bf16.msra.mxu0 %v493_v15 }
  0x8b   : > { %v298_v16 = vpop.permute.xlu1 %297  ;;  %v296_v17 = vpop.permute.xlu0 %295 }
  0x8c   : > { %v309_v18 = vsel %vm307_vm1, %v296_v17, %v298_v16 }
  0x8d   : > { %961 = vmatprep.subr.bf16.mxu1 %v309_v18 }
  0x8e   : > { %962 = vmatpush3.bf16.msra.mxu1 %v309_v18 }
  0x8f   : > { %v483_v19 = vpop.permute.xlu1 %482  ;;  %v481_v20 = vpop.permute.xlu0 %480 }
  0x90   : > { %v494_v21 = vsel %vm492_vm2, %v481_v20, %v483_v19 }
  0x91   : > { %985 = vmatprep.subr.bf16.mxu0 %v494_v21 }
  0x92   : > { %986 = vmatpush3.bf16.msra.mxu0 %v494_v21 }
  0x93   : > { %v302_v22 = vpop.permute.xlu1 %301  ;;  %v300_v23 = vpop.permute.xlu0 %299 }
  0x94   : > { %v310_v24 = vsel %vm307_vm1, %v300_v23, %v302_v22 }
  0x95   : > { %963 = vmatprep.subr.bf16.mxu1 %v310_v24 }
  0x96   : > { %964 = vmatpush3.bf16.msra.mxu1 %v310_v24 }
  0x97   : > { %v487_v25 = vpop.permute.xlu1 %486  ;;  %v485_v26 = vpop.permute.xlu0 %484 }
  0x98   : > { %v495_v27 = vsel %vm492_vm2, %v485_v26, %v487_v25 }
  0x99   : > { %987 = vmatprep.subr.bf16.mxu0 %v495_v27 }
  0x9a   : > { %988 = vmatpush3.bf16.msra.mxu0 %v495_v27 }
  0x9b   : > { %v306_v28 = vpop.permute.xlu1 %305  ;;  %v304_v29 = vpop.permute.xlu0 %303 }
  0x9c   : > { %v311_v31 = vsel %vm307_vm1, %v304_v29, %v306_v28 }
  0x9d   : > { %965 = vmatprep.subr.bf16.mxu1 %v311_v31 }
  0x9e   : > { %966 = vmatpush3.bf16.msra.mxu1 %v311_v31 }
  0x9f   : > { %v491_v33 = vpop.permute.xlu1 %490  ;;  %v489_v34 = vpop.permute.xlu0 %488  ;;  %971 = vmatprep.subr.bf16.mxu1 %v1046_v30 }
  0xa0   : > { %v496_v37 = vsel %vm492_vm2, %v489_v34, %v491_v33 }
  0xa1   : > { %989 = vmatprep.subr.bf16.mxu0 %v496_v37  ;;  %968 = vmatmul.mubr.msk.bf16.vlgmr.msra.gmra.mrb[0].mxu1 %vm316_vm0, %v1047_v32 }
  0xa2   : > { %972 = vmatpush3.bf16.msra.mxu1 %v1046_v30  ;;  %990 = vmatpush3.bf16.msra.mxu0 %v496_v37 }
  0xa3   : > { %v578_v39 = vpop.permute.xlu1 %577  ;;  %v576_v40 = vpop.permute.xlu0 %575  ;;  %973 = vmatprep.subr.bf16.mxu1 %v1048_v35  ;;  %979 = vmatprep.mubr.msk.bf16.mxu1 %vm316_vm0, %v1053_v36 }
  0xa4   : > { %v592_v43 = vsel %vm591_vm3, %v576_v40, %v578_v39 }
  0xa5   : > { %995 = vmatprep.subr.bf16.mxu0 %v592_v43  ;;  %992 = vmatmul.mubr.msk.bf16.vlgmr.msra.gmra.mrb[0].mxu0 %vm316_vm0, %v1050_v38 }
  0xa6   : > { %974 = vmatpush3.bf16.msra.mxu1 %v1048_v35  ;;  %996 = vmatpush3.bf16.msra.mxu0 %v592_v43 }
  0xa7   : > { %v582_v44 = vpop.permute.xlu1 %581  ;;  %v580_v45 = vpop.permute.xlu0 %579  ;;  %975 = vmatprep.subr.bf16.mxu1 %v1051_v41  ;;  %1003 = vmatprep.mubr.msk.bf16.mxu0 %vm316_vm0, %v1055_v42 }
  0xa8   : > { %v593_v47 = vsel %vm591_vm3, %v580_v45, %v582_v44 }
  0xa9   : > { %997 = vmatprep.subr.bf16.mxu0 %v593_v47 }
  0xaa   : > { %976 = vmatpush3.bf16.msra.mxu1 %v1051_v41  ;;  %998 = vmatpush3.bf16.msra.mxu0 %v593_v47 }
  0xab   : > { %v586_v48 = vpop.permute.xlu1 %585  ;;  %v584_v49 = vpop.permute.xlu0 %583  ;;  %977 = vmatprep.subr.bf16.mxu1 %v1052_v46 }
  0xac   : > { %v594_v50 = vsel %vm591_vm3, %v584_v49, %v586_v48 }
  0xad   : > { %999 = vmatprep.subr.bf16.mxu0 %v594_v50 }
  0xae   : > { %978 = vmatpush3.bf16.msra.mxu1 %v1052_v46  ;;  %1000 = vmatpush3.bf16.msra.mxu0 %v594_v50 }
  0xaf   : > { %v590_v52 = vpop.permute.xlu1 %589  ;;  %v588_v53 = vpop.permute.xlu0 %587 }
  0xb0   : > { %v595_v54 = vsel %vm591_vm3, %v588_v53, %v590_v52 }
  0xb1   : > { %980 = vmatmul.mubr.msk.bf16.vlgmr.msra.gmra.mrb[0].mxu1 %vm316_vm0, %v1054_v51  ;;  %1001 = vmatprep.subr.bf16.mxu0 %v595_v54 }
  0xb2   : > { %1002 = vmatpush3.bf16.msra.mxu0 %v595_v54 }
  0xb5   : > { %1004 = vmatmul.mubr.msk.bf16.vlgmr.msra.gmra.mrb[0].mxu0 %vm316_vm0, %v1056_v55 }
 0x184   : > { %v981_v1 = vpop.f32.mrb[0].mxu1 }
 0x185   : > { %v446_v2 = vpop.f32.mrb[1].mxu1 }
 0x186   : > { %v982_v3 = vpop.f32.mrb[2].mxu1 }
 0x187   : > { %v449_v4 = vpop.f32.mrb[3].mxu1 }
 0x188   : > { %v1005_v5 = vpop.f32.mrb[0].mxu0 }
 0x189   : > { %v1007_v8 = vadd.f32 %v1005_v5, %v981_v1  ;;  %v640_v9 = vpop.f32.mrb[1].mxu0 }
 0x18a   : > { %v1008_v10 = vadd.f32 %v640_v9, %v446_v2  ;;  %v1006_v11 = vpop.f32.mrb[2].mxu0 }
 0x18b   : > { %v1009_v12 = vadd.f32 %v1006_v11, %v982_v3  ;;  %v643_v13 = vpop.f32.mrb[3].mxu0  ;;  %v704_v14 = vmul.f32 %v1007_v8, %v913_v7 }
 0x18c   : > { %v1010_v15 = vadd.f32 %v643_v13, %v449_v4  ;;  %v702_v19 = vmul.f32 %v1008_v10, %v913_v7 }
 0x18d   : > { %v932_v16 = vpack.c.bf16 %v1009_v12, %v1007_v8  ;;  %710 = vadd.xlane.f32.xlu0 %v704_v14  ;;  %v705_v21 = vmul.f32 %v1009_v12, %v913_v7  ;;  %v721_v22 = vmul.f32 %v1007_v8, %v704_v14 }
 0x18e   : > { %v927_v17 = vpack.c.bf16 %v1010_v15, %v1008_v10  ;;  %v703_v18 = vmul.f32 %v1010_v15, %v913_v7  ;;  %v719_v20 = vmul.f32 %v1008_v10, %v702_v19 }
 0x18f   : > { %934 = vst [vmem:[%s212_s19 + $0x8] sm:$0xff] %v932_v16   ;;  %v722_v24 = vmul.f32 %v1009_v12, %v705_v21 }
 0x190   : > { %928 = vst [vmem:[%s212_s19] sm:$0xff] %v927_v17   ;;  %708 = vadd.xlane.f32.xlu1 %v703_v18  ;;  %v720_v23 = vmul.f32 %v1010_v15, %v703_v18 }
 0x191   : > { %706 = vadd.xlane.f32.xlu0 %v702_v19 }
 0x194   : > { %723 = vadd.xlane.f32.xlu1 %v719_v20 }
 0x195   : > { %712 = vadd.xlane.f32.xlu0 %v705_v21 }
 0x198   : > { %727 = vadd.xlane.f32.xlu1 %v721_v22 }
 0x199   : > { %725 = vadd.xlane.f32.xlu0 %v720_v23 }
 0x19d   : > { %729 = vadd.xlane.f32.xlu0 %v722_v24 }
 0x21a   : > { %v711_v25 = vpop.xlane.xlu0 %710 }
 0x21b   : > { %717 = vst.msk [vmem:[%s217_s23 + $0x10] sm:$0xff] %vm714_vm10, %v711_v25 }
 0x21d   : > { %v709_v26 = vpop.xlane.xlu1 %708 }
 0x21e   : > { %716 = vst.msk [vmem:[%s217_s23 + $0x8] sm:$0xff] %vm714_vm10, %v709_v26  ;;  %v707_v27 = vpop.xlane.xlu0 %706 }
 0x21f   : > { %715 = vst.msk [vmem:[%s217_s23] sm:$0xff] %vm714_vm10, %v707_v27 }
 0x221   : > { %v724_v28 = vpop.xlane.xlu1 %723 }
 0x222   : > { %731 = vst.msk [vmem:[%s222_s26] sm:$0xff] %vm714_vm10, %v724_v28  ;;  %v713_v29 = vpop.xlane.xlu0 %712 }
 0x223   : > { %718 = vst.msk [vmem:[%s217_s23 + $0x18] sm:$0xff] %vm714_vm10, %v713_v29 }
 0x225   : > { %v728_v30 = vpop.xlane.xlu1 %727 }
 0x226   : > { %733 = vst.msk [vmem:[%s222_s26 + $0x10] sm:$0xff] %vm714_vm10, %v728_v30  ;;  %v726_v31 = vpop.xlane.xlu0 %725 }
 0x227   : > { %732 = vst.msk [vmem:[%s222_s26 + $0x8] sm:$0xff] %vm714_vm10, %v726_v31 }
 0x22a   : > { %v730_v32 = vpop.xlane.xlu0 %729 }
 0x22b   : > { %734 = vst.msk [vmem:[%s222_s26 + $0x18] sm:$0xff] %vm714_vm10, %v730_v32 }
 0x22c PF: > { %s15_s15 = sadd.s32 1, %s1063_s15  }
 0x22d   : > { %p12_p4 = scmp.ge.s32.totalorder %s15_s15, 4  }
 0x22f   :  { %14 = sbr.rel (!%p12_p4) target bundleno = 1 (0x1), region = 85 }

// kernel: discriminator_forward.16
= control target key start
LH: loop header
LB: loop body
LE: loop exit
PB: predicated region body
PF: predicated region fallthrough
CT: control target
= control target key end

     0   :  { %s529_s12 = smov 0   ;;  %s611_s0 = inlined_call_operand.vmem [shape: bf16[2,64,128], index: 0, kind: input, shape index: {}]   ;;  %s612_s1 = inlined_call_operand.vmem [shape: f32[64,1], index: 1, kind: input, shape index: {}]   ;;  %s613_s2 = inlined_call_operand.vmem [shape: f32[64,1], index: 2, kind: input, shape index: {}]   ;;  %s614_s3 = inlined_call_operand.vmem [shape: bf16[2,64,128], index: 3, kind: output, shape index: {}]  }
   0x1 LB: > { %s418_s13 = sadd.s32 4294967295, %s506_s12   ;;  %p422_p0 = scmp.ge.s32.totalorder %s506_s12, 1  ;;  %s506_s12 = sphi %s529_s12, %s13_s12  }
   0x2   : > { %p137_p1 = scmp.lt.s32.totalorder %s506_s12, 3 }
   0x4   : > { %p138_p2 = pnand %p422_p0, %p137_p1 }
   0x5   : > { %v189_v0 = vld [vmem:[%s612_s1 + $0x10] sm:$0xff] (!%p138_p2)  ;;  %v187_v1 = vld [vmem:[%s612_s1] sm:$0xff] (!%p138_p2)  ;;  %v508_v2 = vmov (!%p138_p2), 0   ;;  %v190_v3 = vld [vmem:[%s612_s1 + $0x18] sm:$0xff] (!%p138_p2)  ;;  %p161_p3 = scmp.lt.s32.totalorder (!%p138_p2), %s418_s13, 1 }
   0x6   : > { %141 = sbr.rel (%p138_p2) target bundleno = 171 (0xab), region = 32  ;;  %499 = vset.pattern.permute.xlu1 (!%p138_p2), %v508_v2  ;;  %498 = vset.pattern.permute.xlu0 (!%p138_p2), %v508_v2  ;;  %v188_v4 = vld [vmem:[%s612_s1 + $0x8] sm:$0xff] (!%p138_p2)  ;;  %v191_v6 = vld [vmem:[%s612_s1 + $0x20] sm:$0xff] (!%p138_p2)  ;;  %v194_v7 = vld [vmem:[%s612_s1 + $0x38] sm:$0xff] (!%p138_p2) }
   0x7   : > { %207 = vperm.xlu1 (!%p138_p2), %499, %v189_v0   ;;  %197 = vperm.xlu0 (!%p138_p2), %498, %v187_v1   ;;  %v192_v5 = vld [vmem:[%s612_s1 + $0x28] sm:$0xff] (!%p138_p2)  ;;  %v193_v8 = vld [vmem:[%s612_s1 + $0x30] sm:$0xff] (!%p138_p2)  ;;  %v243_v10 = vld [vmem:[%s613_s2] sm:$0xff] (!%p138_p2) }
   0x8   : > { %v244_v9 = vld [vmem:[%s613_s2 + $0x8] sm:$0xff] (!%p138_p2)  ;;  %v246_v11 = vld [vmem:[%s613_s2 + $0x18] sm:$0xff] (!%p138_p2)  ;;  %v245_v12 = vld [vmem:[%s613_s2 + $0x10] sm:$0xff] (!%p138_p2) }
   0x9   : > { %v248_v13 = vld [vmem:[%s613_s2 + $0x28] sm:$0xff] (!%p138_p2)  ;;  %v247_v14 = vld [vmem:[%s613_s2 + $0x20] sm:$0xff] (!%p138_p2)  ;;  %v250_v15 = vld [vmem:[%s613_s2 + $0x38] sm:$0xff] (!%p138_p2) }
   0xa   : > { %v249_v16 = vld [vmem:[%s613_s2 + $0x30] sm:$0xff] (!%p138_p2) }
   0xb   : > { %212 = vperm.xlu1 (!%p138_p2), %499, %v190_v3   ;;  %202 = vperm.xlu0 (!%p138_p2), %498, %v188_v4  }
   0xd   : > { %s616_s13 = smov (!%p161_p3, %s418_s13), 1 }
   0xe   : > { %s437_s21 = sshll.u32 %s616_s13, 5 }
   0xf   : > { %222 = vperm.xlu1 %499, %v192_v5   ;;  %217 = vperm.xlu0 %498, %v191_v6   ;;  %s165_s24 = scalar_lea.vmem %s611_s0, %s437_s21  ;;  %s602_s27 = scalar_lea.vmem %s614_s3, %s437_s21 }
  0x10   : > { %v448_v21 = vld [vmem:[%s165_s24] sm:$0xff]   ;;  %v483_v24 = vld [vmem:[%s165_s24 + $0x8] sm:$0xff]   ;;  %v484_v33 = vld [vmem:[%s165_s24 + $0x10] sm:$0xff]  }
  0x11   : > { %v449_v25 = vunpack.c.l.bf16 %v448_v21  ;;  %v450_v26 = vunpack.c.h.bf16 %v448_v21  ;;  %v453_v29 = vunpack.c.l.bf16 %v483_v24  ;;  %v454_v30 = vunpack.c.h.bf16 %v483_v24  ;;  %v485_v36 = vld [vmem:[%s165_s24 + $0x18] sm:$0xff]  }
  0x12   : > { %v458_v41 = vunpack.c.h.bf16 %v484_v33  ;;  %v457_v42 = vunpack.c.l.bf16 %v484_v33  ;;  %v462_v45 = vunpack.c.h.bf16 %v485_v36  ;;  %v461_v54 = vunpack.c.l.bf16 %v485_v36 }
  0x13   : > { %232 = vperm.xlu1 %499, %v194_v7   ;;  %227 = vperm.xlu0 %498, %v193_v8  }
  0x17   : > { %258 = vperm.xlu1 %499, %v244_v9   ;;  %253 = vperm.xlu0 %498, %v243_v10  }
  0x1b   : > { %268 = vperm.xlu1 %499, %v246_v11   ;;  %263 = vperm.xlu0 %498, %v245_v12  }
  0x1f   : > { %278 = vperm.xlu1 %499, %v248_v13   ;;  %273 = vperm.xlu0 %498, %v247_v14  }
  0x23   : > { %288 = vperm.xlu1 %499, %v250_v15   ;;  %283 = vperm.xlu0 %498, %v249_v16  }
  0x86   : > { %v208_v17 = vpop.permute.xlu1 %207  ;;  %v198_v18 = vpop.permute.xlu0 %197 }
  0x87   : > { %v235_v31 = vmul.f32 %v449_v25, %v198_v18  ;;  %v237_v39 = vmul.f32 %v453_v29, %v208_v17 }
  0x8a   : > { %v213_v19 = vpop.permute.xlu1 %212  ;;  %v203_v20 = vpop.permute.xlu0 %202 }
  0x8b   : > { %v236_v32 = vmul.f32 %v450_v26, %v203_v20  ;;  %v238_v40 = vmul.f32 %v454_v30, %v213_v19 }
  0x8e   : > { %v223_v22 = vpop.permute.xlu1 %222  ;;  %v218_v23 = vpop.permute.xlu0 %217 }
  0x8f   : > { %v240_v52 = vmul.f32 %v458_v41, %v223_v22  ;;  %v239_v53 = vmul.f32 %v457_v42, %v218_v23 }
  0x92   : > { %v233_v27 = vpop.permute.xlu1 %232  ;;  %v228_v28 = vpop.permute.xlu0 %227 }
  0x93   : > { %v242_v0 = vmul.f32 %v462_v45, %v233_v27  ;;  %v241_v1 = vmul.f32 %v461_v54, %v228_v28 }
  0x96   : > { %v259_v34 = vpop.permute.xlu1 %258  ;;  %v254_v35 = vpop.permute.xlu0 %253 }
  0x97   : > { %v292_v37 = vadd.f32 %v259_v34, %v236_v32  ;;  %v291_v38 = vadd.f32 %v254_v35, %v235_v31 }
  0x99   : > { %vm300_vm0 = vcmp.ge.f32.partialorder %v292_v37, 0.0  ;;  %v308_v43 = vmul.f32 0.1, %v292_v37  ;;  %vm299_vm1 = vcmp.ge.f32.partialorder %v291_v38, 0.0  ;;  %v307_v44 = vmul.f32 0.1, %v291_v38 }
  0x9a   : > { %v269_v46 = vpop.permute.xlu1 %268  ;;  %v264_v47 = vpop.permute.xlu0 %263 }
  0x9b   : > { %v316_v48 = vsel %vm300_vm0, %v292_v37, %v308_v43  ;;  %v315_v49 = vsel %vm299_vm1, %v291_v38, %v307_v44  ;;  %v294_v50 = vadd.f32 %v269_v46, %v238_v40  ;;  %v293_v51 = vadd.f32 %v264_v47, %v237_v39 }
  0x9c   : > { %v466_v55 = vpack.c.bf16 %v316_v48, %v315_v49 }
  0x9d   : > { %vm302_vm2 = vcmp.ge.f32.partialorder %v294_v50, 0.0  ;;  %v310_v56 = vmul.f32 0.1, %v294_v50  ;;  %vm301_vm3 = vcmp.ge.f32.partialorder %v293_v51, 0.0  ;;  %v309_v57 = vmul.f32 0.1, %v293_v51 }
  0x9e   : > { %467 = vst [vmem:[%s602_s27] sm:$0xff] %v466_v55   ;;  %v279_v58 = vpop.permute.xlu1 %278  ;;  %v274_v59 = vpop.permute.xlu0 %273 }
  0x9f   : > { %v318_v60 = vsel %vm302_vm2, %v294_v50, %v310_v56  ;;  %v317_v61 = vsel %vm301_vm3, %v293_v51, %v309_v57  ;;  %v296_v62 = vadd.f32 %v279_v58, %v240_v52  ;;  %v295_v63 = vadd.f32 %v274_v59, %v239_v53 }
  0xa0   : > { %v471_v2 = vpack.c.bf16 %v318_v60, %v317_v61 }
  0xa1   : > { %vm304_vm4 = vcmp.ge.f32.partialorder %v296_v62, 0.0  ;;  %v312_v3 = vmul.f32 0.1, %v296_v62  ;;  %vm303_vm5 = vcmp.ge.f32.partialorder %v295_v63, 0.0  ;;  %v311_v4 = vmul.f32 0.1, %v295_v63 }
  0xa2   : > { %486 = vst [vmem:[%s602_s27 + $0x8] sm:$0xff] %v471_v2   ;;  %v289_v5 = vpop.permute.xlu1 %288  ;;  %v284_v6 = vpop.permute.xlu0 %283 }
  0xa3   : > { %v320_v7 = vsel %vm304_vm4, %v296_v62, %v312_v3  ;;  %v319_v8 = vsel %vm303_vm5, %v295_v63, %v311_v4  ;;  %v298_v9 = vadd.f32 %v289_v5, %v242_v0  ;;  %v297_v10 = vadd.f32 %v284_v6, %v241_v1 }
  0xa4   : > { %v476_v11 = vpack.c.bf16 %v320_v7, %v319_v8 }
  0xa5   : > { %vm306_vm6 = vcmp.ge.f32.partialorder %v298_v9, 0.0  ;;  %v314_v12 = vmul.f32 0.1, %v298_v9  ;;  %vm305_vm7 = vcmp.ge.f32.partialorder %v297_v10, 0.0  ;;  %v313_v13 = vmul.f32 0.1, %v297_v10 }
  0xa6   : > { %487 = vst [vmem:[%s602_s27 + $0x10] sm:$0xff] %v476_v11  }
  0xa7   : > { %v322_v14 = vsel %vm306_vm6, %v298_v9, %v314_v12  ;;  %v321_v15 = vsel %vm305_vm7, %v297_v10, %v313_v13 }
  0xa8   : > { %v481_v16 = vpack.c.bf16 %v322_v14, %v321_v15 }
  0xaa   : > { %488 = vst [vmem:[%s602_s27 + $0x18] sm:$0xff] %v481_v16  }
  0xab PF: > { %s13_s12 = sadd.s32 1, %s506_s12  }
  0xac   : > { %p10_p4 = scmp.ge.s32.totalorder %s13_s12, 4  }
  0xae   :  { %12 = sbr.rel (!%p10_p4) target bundleno = 1 (0x1), region = 62 }

// kernel: discriminator_forward.15
= control target key start
LH: loop header
LB: loop body
LE: loop exit
PB: predicated region body
PF: predicated region fallthrough
CT: control target
= control target key end

     0   :  { %s1561_s15 = smov 0   ;;  %s1755_s0 = inlined_call_operand.vmem [shape: bf16[2,128,256], index: 0, kind: input, shape index: {}]   ;;  %s1756_s1 = inlined_call_operand.vmem [shape: bf16[4,64,128], index: 1, kind: input, shape index: {}]   ;;  %s1757_s2 = inlined_call_operand.vmem [shape: bf16[2,64,128], index: 2, kind: output, shape index: {0}]   ;;  %s1758_s3 = inlined_call_operand.vmem [shape: f32[2,64,1], index: 3, kind: output, shape index: {1}]   ;;  %s1759_s4 = inlined_call_operand.vmem [shape: f32[2,64,1], index: 4, kind: output, shape index: {2}]  }
   0x1 LB: > { %s1171_s16 = sadd.s32 4294967295, %s1530_s15   ;;  %p1175_p0 = scmp.ge.s32.totalorder %s1530_s15, 1  ;;  %s1530_s15 = sphi %s1561_s15, %s15_s15  }
   0x2   : > { %p167_p1 = scmp.lt.s32.totalorder %s1530_s15, 3 }
   0x4   : > { %p168_p2 = pnand %p1175_p0, %p167_p1 }
   0x5   : > { %p203_p3 = scmp.lt.s32.totalorder (!%p168_p2), %s1171_s16, 1  ;;  %s1532_s21 = smov (!%p168_p2), 123   ;;  %v1500_v14 = vld [vmem:[%s1756_s1 + $0x20] sm:$0xff] (!%p168_p2)   ;;  %vm393_vm0 = vcmask (!%p168_p2), 1039360   ;;  %vm677_vm1 = vcmask (!%p168_p2), 1006592   ;;  %vm832_vm2 = vcmask (!%p168_p2), 998400  }
   0x6   : > { %171 = sbr.rel (%p168_p2) target bundleno = 620 (0x26c), region = 28  ;;  %s1533_s22 = smov (!%p168_p2), 127   ;;  %1358 = vmatprep.mubr.bf16.mxu1 (!%p168_p2), %v1500_v14  ;;  %v1504_v15 = vld [vmem:[%s1756_s1 + $0x40] sm:$0xff] (!%p168_p2)   ;;  %vm1009_vm9 = vcmask (!%p168_p2), 7168  }
   0x7   : > { %1406 = vmatprep.mubr.bf16.mxu0 (!%p168_p2), %v1504_v15  ;;  %s1534_s27 = smov (!%p168_p2), 122  }
   0xd   : > { %s1761_s16 = smov (!%p203_p3, %s1171_s16), 1 }
   0xe   : > { %s1259_s17 = sshll.u32 %s1761_s16, 7  ;;  %s1260_s6 = sshll.u32 %s1761_s16, 5 }
   0xf   : > { %s1575_s20 = scalar_lea.vmem %s1755_s0, %s1259_s17  ;;  %s1713_s9 = scalar_lea.vmem %s1757_s2, %s1260_s6 }
  0x10   : > { %v1476_v0 = vld [vmem:[%s1575_s20] ss:$8 sps:$4 sm:$0xff]   ;;  %v1478_v1 = vld [vmem:[%s1575_s20 + $0x4] ss:$8 sps:$4 sm:$0xff]   ;;  %v1479_v2 = vld [vmem:[%s1575_s20 + $0x14] ss:$8 sps:$4 sm:$0xff]  }
  0x11   : > { %645 = vrot.lane.b32.xlu1 %v1476_v0, %s1532_s21  ;;  %361 = vrot.lane.b32.xlu0 %v1476_v0, %s1533_s22  ;;  %v1481_v3 = vld [vmem:[%s1575_s20 + $0x10] ss:$8 sps:$4 sm:$0xff]   ;;  %v1482_v4 = vld [vmem:[%s1575_s20 + $0x24] ss:$8 sps:$4 sm:$0xff]   ;;  %s1261_s10 = sshll.u32 %s1761_s16, 6 }
  0x12   : > { %v1484_v5 = vld [vmem:[%s1575_s20 + $0x20] ss:$8 sps:$4 sm:$0xff]   ;;  %v1485_v6 = vld [vmem:[%s1575_s20 + $0x34] ss:$8 sps:$4 sm:$0xff]   ;;  %v1487_v7 = vld [vmem:[%s1575_s20 + $0x30] ss:$8 sps:$4 sm:$0xff]   ;;  %s217_s13 = scalar_lea.vmem %s1758_s3, %s1261_s10  ;;  %s1726_s18 = scalar_lea.vmem %s1759_s4, %s1261_s10 }
  0x13   : > { %v1488_v8 = vld [vmem:[%s1575_s20 + $0x44] ss:$8 sps:$4 sm:$0xff]   ;;  %v1490_v9 = vld [vmem:[%s1575_s20 + $0x40] ss:$8 sps:$4 sm:$0xff]   ;;  %v1491_v10 = vld [vmem:[%s1575_s20 + $0x54] ss:$8 sps:$4 sm:$0xff]  }
  0x14   : > { %v1493_v11 = vld [vmem:[%s1575_s20 + $0x50] ss:$8 sps:$4 sm:$0xff]   ;;  %v1494_v12 = vld [vmem:[%s1575_s20 + $0x64] ss:$8 sps:$4 sm:$0xff]   ;;  %v1496_v13 = vld [vmem:[%s1575_s20 + $0x60] ss:$8 sps:$4 sm:$0xff]  }
  0x15   : > { %647 = vrot.lane.b32.xlu1 %v1478_v1, %s1532_s21  ;;  %363 = vrot.lane.b32.xlu0 %v1478_v1, %s1533_s22  ;;  %v1497_v16 = vld [vmem:[%s1575_s20 + $0x74] ss:$8 sps:$4 sm:$0xff]   ;;  %v1499_v17 = vld [vmem:[%s1575_s20 + $0x70] ss:$8 sps:$4 sm:$0xff]  }
  0x16   : > { %v1501_v62 = vld [vmem:[%s1575_s20] ss:$8 sps:$4 sm:$0xff]   ;;  %v1507_v15 = vld [vmem:[%s1575_s20 + $0x30] ss:$8 sps:$4 sm:$0xff]  }
  0x19   : > { %367 = vrot.lane.b32.xlu1 %v1479_v2, %s1533_s22  ;;  %365 = vrot.lane.b32.xlu0 %v1481_v3, %s1533_s22 }
  0x1d   : > { %651 = vrot.lane.b32.xlu1 %v1479_v2, %s1532_s21  ;;  %649 = vrot.lane.b32.xlu0 %v1481_v3, %s1532_s21 }
  0x21   : > { %371 = vrot.lane.b32.xlu1 %v1482_v4, %s1533_s22  ;;  %369 = vrot.lane.b32.xlu0 %v1484_v5, %s1533_s22 }
  0x25   : > { %655 = vrot.lane.b32.xlu1 %v1482_v4, %s1532_s21  ;;  %653 = vrot.lane.b32.xlu0 %v1484_v5, %s1532_s21 }
  0x29   : > { %375 = vrot.lane.b32.xlu1 %v1485_v6, %s1533_s22  ;;  %373 = vrot.lane.b32.xlu0 %v1487_v7, %s1533_s22 }
  0x2d   : > { %659 = vrot.lane.b32.xlu1 %v1485_v6, %s1532_s21  ;;  %657 = vrot.lane.b32.xlu0 %v1487_v7, %s1532_s21 }
  0x31   : > { %379 = vrot.lane.b32.xlu1 %v1488_v8, %s1533_s22  ;;  %377 = vrot.lane.b32.xlu0 %v1490_v9, %s1533_s22 }
  0x35   : > { %663 = vrot.lane.b32.xlu1 %v1488_v8, %s1532_s21  ;;  %661 = vrot.lane.b32.xlu0 %v1490_v9, %s1532_s21 }
  0x39   : > { %383 = vrot.lane.b32.xlu1 %v1491_v10, %s1533_s22  ;;  %381 = vrot.lane.b32.xlu0 %v1493_v11, %s1533_s22 }
  0x3d   : > { %667 = vrot.lane.b32.xlu1 %v1491_v10, %s1532_s21  ;;  %665 = vrot.lane.b32.xlu0 %v1493_v11, %s1532_s21 }
  0x41   : > { %387 = vrot.lane.b32.xlu1 %v1494_v12, %s1533_s22  ;;  %385 = vrot.lane.b32.xlu0 %v1496_v13, %s1533_s22 }
  0x45   : > { %671 = vrot.lane.b32.xlu1 %v1494_v12, %s1532_s21  ;;  %669 = vrot.lane.b32.xlu0 %v1496_v13, %s1532_s21 }
  0x49   : > { %391 = vrot.lane.b32.xlu1 %v1497_v16, %s1533_s22  ;;  %389 = vrot.lane.b32.xlu0 %v1499_v17, %s1533_s22 }
  0x4d   : > { %675 = vrot.lane.b32.xlu1 %v1497_v16, %s1532_s21  ;;  %673 = vrot.lane.b32.xlu0 %v1499_v17, %s1532_s21 }
  0x51   : > { %802 = vrot.lane.b32.xlu1 %v1478_v1, %s1534_s27  ;;  %800 = vrot.lane.b32.xlu0 %v1476_v0, %s1534_s27  ;;  %v1502_v0 = vld [vmem:[%s1756_s1 + $0x28] sm:$0xff]  }
  0x55   : > { %806 = vrot.lane.b32.xlu1 %v1479_v2, %s1534_s27  ;;  %804 = vrot.lane.b32.xlu0 %v1481_v3, %s1534_s27  ;;  %v1503_v3 = vld [vmem:[%s1575_s20 + $0x10] ss:$8 sps:$4 sm:$0xff]  }
  0x59   : > { %810 = vrot.lane.b32.xlu1 %v1482_v4, %s1534_s27  ;;  %808 = vrot.lane.b32.xlu0 %v1484_v5, %s1534_s27  ;;  %v1510_v4 = vld [vmem:[%s1756_s1 + $0x30] sm:$0xff]  }
  0x5d   : > { %814 = vrot.lane.b32.xlu1 %v1485_v6, %s1534_s27  ;;  %812 = vrot.lane.b32.xlu0 %v1487_v7, %s1534_s27  ;;  %v1505_v6 = vld [vmem:[%s1756_s1 + $0x48] sm:$0xff]  }
  0x61   : > { %818 = vrot.lane.b32.xlu1 %v1488_v8, %s1534_s27  ;;  %816 = vrot.lane.b32.xlu0 %v1490_v9, %s1534_s27  ;;  %v1506_v9 = vld [vmem:[%s1575_s20 + $0x20] ss:$8 sps:$4 sm:$0xff]  }
  0x65   : > { %822 = vrot.lane.b32.xlu1 %v1491_v10, %s1534_s27  ;;  %820 = vrot.lane.b32.xlu0 %v1493_v11, %s1534_s27  ;;  %v1513_v10 = vld [vmem:[%s1756_s1 + $0x50] sm:$0xff]  }
  0x69   : > { %826 = vrot.lane.b32.xlu1 %v1494_v12, %s1534_s27  ;;  %824 = vrot.lane.b32.xlu0 %v1496_v13, %s1534_s27  ;;  %v1511_v12 = vld [vmem:[%s1756_s1 + $0x38] sm:$0xff]  }
  0x6d   : > { %830 = vrot.lane.b32.xlu1 %v1497_v16, %s1534_s27  ;;  %828 = vrot.lane.b32.xlu0 %v1499_v17, %s1534_s27  ;;  %v1516_v16 = vld [vmem:[%s1756_s1] sm:$0xff]  }
  0x83   : > { %v646_v18 = vpop.permute.xlu1 %645  ;;  %v362_v19 = vpop.permute.xlu0 %361 }
  0x87   : > { %v648_v20 = vpop.permute.xlu1 %647  ;;  %v364_v21 = vpop.permute.xlu0 %363 }
  0x88   : > { %v394_v22 = vsel %vm393_vm0, %v362_v19, %v364_v21  ;;  %v678_v23 = vsel %vm677_vm1, %v646_v18, %v648_v20  ;;  %v1515_v18 = vld [vmem:[%s1756_s1 + $0x58] sm:$0xff]   ;;  %v1508_v21 = vld [vmem:[%s1575_s20 + $0x40] ss:$8 sps:$4 sm:$0xff]  }
  0x89   : > { %1342 = vmatprep.subr.bf16.mxu1 %v394_v22  ;;  %1390 = vmatprep.subr.bf16.mxu0 %v678_v23 }
  0x8a   : > { %1343 = vmatpush3.bf16.msra.mxu1 %v394_v22  ;;  %1391 = vmatpush3.bf16.msra.mxu0 %v678_v23  ;;  %v1518_v22 = vld [vmem:[%s1756_s1 + $0x60] sm:$0xff]  }
  0x8b   : > { %v368_v24 = vpop.permute.xlu1 %367  ;;  %v366_v25 = vpop.permute.xlu0 %365 }
  0x8c   : > { %v395_v26 = vsel %vm393_vm0, %v366_v25, %v368_v24 }
  0x8d   : > { %1344 = vmatprep.subr.bf16.mxu1 %v395_v26 }
  0x8e   : > { %1345 = vmatpush3.bf16.msra.mxu1 %v395_v26  ;;  %v1509_v26 = vld [vmem:[%s1575_s20 + $0x50] ss:$8 sps:$4 sm:$0xff]  }
  0x8f   : > { %v652_v27 = vpop.permute.xlu1 %651  ;;  %v650_v28 = vpop.permute.xlu0 %649 }
  0x90   : > { %v679_v29 = vsel %vm677_vm1, %v650_v28, %v652_v27 }
  0x91   : > { %1392 = vmatprep.subr.bf16.mxu0 %v679_v29 }
  0x92   : > { %1393 = vmatpush3.bf16.msra.mxu0 %v679_v29 }
  0x93   : > { %v372_v30 = vpop.permute.xlu1 %371  ;;  %v370_v31 = vpop.permute.xlu0 %369 }
  0x94   : > { %v396_v32 = vsel %vm393_vm0, %v370_v31, %v372_v30  ;;  %v1512_v30 = vld [vmem:[%s1575_s20 + $0x60] ss:$8 sps:$4 sm:$0xff]  }
  0x95   : > { %1346 = vmatprep.subr.bf16.mxu1 %v396_v32 }
  0x96   : > { %1347 = vmatpush3.bf16.msra.mxu1 %v396_v32 }
  0x97   : > { %v656_v33 = vpop.permute.xlu1 %655  ;;  %v654_v34 = vpop.permute.xlu0 %653 }
  0x98   : > { %v680_v35 = vsel %vm677_vm1, %v654_v34, %v656_v33  ;;  %v1514_v34 = vld [vmem:[%s1575_s20 + $0x70] ss:$8 sps:$4 sm:$0xff]  }
  0x99   : > { %1394 = vmatprep.subr.bf16.mxu0 %v680_v35 }
  0x9a   : > { %1395 = vmatpush3.bf16.msra.mxu0 %v680_v35 }
  0x9b   : > { %v376_v36 = vpop.permute.xlu1 %375  ;;  %v374_v37 = vpop.permute.xlu0 %373 }
  0x9c   : > { %v397_v38 = vsel %vm393_vm0, %v374_v37, %v376_v36 }
  0x9d   : > { %1348 = vmatprep.subr.bf16.mxu1 %v397_v38 }
  0x9e   : > { %1349 = vmatpush3.bf16.msra.mxu1 %v397_v38 }
  0x9f   : > { %v660_v39 = vpop.permute.xlu1 %659  ;;  %v658_v40 = vpop.permute.xlu0 %657 }
  0xa0   : > { %v681_v41 = vsel %vm677_vm1, %v658_v40, %v660_v39  ;;  %v1517_v39 = vld [vmem:[%s1756_s1 + $0x8] sm:$0xff]   ;;  %v1520_v40 = vld [vmem:[%s1756_s1 + $0x10] sm:$0xff]  }
  0xa1   : > { %1396 = vmatprep.subr.bf16.mxu0 %v681_v41 }
  0xa2   : > { %1397 = vmatpush3.bf16.msra.mxu0 %v681_v41 }
  0xa3   : > { %v380_v42 = vpop.permute.xlu1 %379  ;;  %v378_v43 = vpop.permute.xlu0 %377 }
  0xa4   : > { %v398_v44 = vsel %vm393_vm0, %v378_v43, %v380_v42 }
  0xa5   : > { %1350 = vmatprep.subr.bf16.mxu1 %v398_v44 }
  0xa6   : > { %1351 = vmatpush3.bf16.msra.mxu1 %v398_v44  ;;  %v1519_v44 = vld [vmem:[%s1756_s1 + $0x68] sm:$0xff]  }
  0xa7   : > { %v664_v45 = vpop.permute.xlu1 %663  ;;  %v662_v46 = vpop.permute.xlu0 %661 }
  0xa8   : > { %v682_v47 = vsel %vm677_vm1, %v662_v46, %v664_v45  ;;  %v1522_v45 = vld [vmem:[%s1756_s1 + $0x70] sm:$0xff]   ;;  %v1521_v46 = vld [vmem:[%s1756_s1 + $0x18] sm:$0xff]  }
  0xa9   : > { %1398 = vmatprep.subr.bf16.mxu0 %v682_v47 }
  0xaa   : > { %1399 = vmatpush3.bf16.msra.mxu0 %v682_v47  ;;  %v1523_v47 = vld [vmem:[%s1756_s1 + $0x78] sm:$0xff]  }
  0xab   : > { %v384_v48 = vpop.permute.xlu1 %383  ;;  %v382_v49 = vpop.permute.xlu0 %381 }
  0xac   : > { %v399_v50 = vsel %vm393_vm0, %v382_v49, %v384_v48  ;;  %v962_v48 = vlaneseq }
  0xad   : > { %1352 = vmatprep.subr.bf16.mxu1 %v399_v50 }
  0xae   : > { %1353 = vmatpush3.bf16.msra.mxu1 %v399_v50  ;;  %v963_v49 = vand.u32 127, %v962_v48 }
  0xaf   : > { %v668_v51 = vpop.permute.xlu1 %667  ;;  %v666_v52 = vpop.permute.xlu0 %665 }
  0xb0   : > { %v683_v53 = vsel %vm677_vm1, %v666_v52, %v668_v51  ;;  %v1705_v50 = vmul.u32.u64.low 3435973837, %v963_v49  ;;  %v1706_v51 = vmul.u32.u64.high 3435973837, %v963_v49, %v1705_v50  ;;  %vm981_vm7 = vcmp.lt.s32.totalorder %v963_v49, 20 }
  0xb1   : > { %1400 = vmatprep.subr.bf16.mxu0 %v683_v53 }
  0xb2   : > { %1401 = vmatpush3.bf16.msra.mxu0 %v683_v53  ;;  %v970_v52 = vshrl.u32 %v1706_v51, 2 }
  0xb3   : > { %v388_v54 = vpop.permute.xlu1 %387  ;;  %v386_v55 = vpop.permute.xlu0 %385 }
  0xb4   : > { %v400_v56 = vsel %vm393_vm0, %v386_v55, %v388_v54  ;;  %v971_v53 = vmul.u32 5, %v970_v52 }
  0xb5   : > { %1354 = vmatprep.subr.bf16.mxu1 %v400_v56 }
  0xb6   : > { %1355 = vmatpush3.bf16.msra.mxu1 %v400_v56  ;;  %v972_v54 = vsub.s32 %v963_v49, %v971_v53 }
  0xb7   : > { %v672_v57 = vpop.permute.xlu1 %671  ;;  %v670_v58 = vpop.permute.xlu0 %669 }
  0xb8   : > { %v684_v59 = vsel %vm677_vm1, %v670_v58, %v672_v57  ;;  %vm975_vm3 = vcmp.ne.s32.totalorder %v972_v54, 0  ;;  %vm976_vm4 = vcmp.lt.s32.totalorder %v972_v54, 0  ;;  %v978_v55 = vadd.s32 5, %v972_v54 }
  0xb9   : > { %1402 = vmatprep.subr.bf16.mxu0 %v684_v59  ;;  %vm977_vm5 = vmand %vm976_vm4, %vm975_vm3 }
  0xba   : > { %1403 = vmatpush3.bf16.msra.mxu0 %v684_v59  ;;  %v979_v56 = vsel %vm977_vm5, %v978_v55, %v972_v54 }
  0xbb   : > { %v392_v60 = vpop.permute.xlu1 %391  ;;  %v390_v61 = vpop.permute.xlu0 %389  ;;  %vm980_vm6 = vcmp.lt.s32.totalorder %v979_v56, 4 }
  0xbc   : > { %v401_v63 = vsel %vm393_vm0, %v390_v61, %v392_v60  ;;  %vm982_vm8 = vmand %vm980_vm6, %vm981_vm7 }
  0xbd   : > { %1356 = vmatprep.subr.bf16.mxu1 %v401_v63 }
  0xbe   : > { %1357 = vmatpush3.bf16.msra.mxu1 %v401_v63 }
  0xbf   : > { %v676_v1 = vpop.permute.xlu1 %675  ;;  %v674_v2 = vpop.permute.xlu0 %673  ;;  %1366 = vmatprep.subr.bf16.mxu1 %v1501_v62 }
  0xc0   : > { %v685_v5 = vsel %vm677_vm1, %v674_v2, %v676_v1 }
  0xc1   : > { %1404 = vmatprep.subr.bf16.mxu0 %v685_v5  ;;  %1359 = vmatmul.mubr.bf16.vlgmr.msra.gmra.mrb[0].mxu1 %v1502_v0 }
  0xc2   : > { %1367 = vmatpush3.bf16.msra.mxu1 %v1501_v62  ;;  %1405 = vmatpush3.bf16.msra.mxu0 %v685_v5  ;;  %v1535_v62 = vmov 0.0  }
  0xc3   : > { %v803_v7 = vpop.permute.xlu1 %802  ;;  %v801_v8 = vpop.permute.xlu0 %800  ;;  %1368 = vmatprep.subr.bf16.mxu1 %v1503_v3  ;;  %1362 = vmatprep.mubr.bf16.mxu1 %v1510_v4  ;;  %v1256_v63 = vsel %vm982_vm8, 1.0, %v1535_v62 }
  0xc4   : > { %v833_v11 = vsel %vm832_vm2, %v801_v8, %v803_v7 }
  0xc5   : > { %1414 = vmatprep.subr.bf16.mxu0 %v833_v11  ;;  %1407 = vmatmul.mubr.bf16.vlgmr.msra.gmra.mrb[0].mxu0 %v1505_v6 }
  0xc6   : > { %1369 = vmatpush3.bf16.msra.mxu1 %v1503_v3  ;;  %1415 = vmatpush3.bf16.msra.mxu0 %v833_v11 }
  0xc7   : > { %v807_v13 = vpop.permute.xlu1 %806  ;;  %v805_v14 = vpop.permute.xlu0 %804  ;;  %1370 = vmatprep.subr.bf16.mxu1 %v1506_v9  ;;  %1410 = vmatprep.mubr.bf16.mxu0 %v1513_v10 }
  0xc8   : > { %v834_v17 = vsel %vm832_vm2, %v805_v14, %v807_v13 }
  0xc9   : > { %1416 = vmatprep.subr.bf16.mxu0 %v834_v17  ;;  %1363 = vmatmul.mubr.bf16.gmra.mrb[4].mxu1 %v1511_v12 }
  0xca   : > { %1371 = vmatpush3.bf16.msra.mxu1 %v1506_v9  ;;  %1417 = vmatpush3.bf16.msra.mxu0 %v834_v17 }
  0xcb   : > { %v811_v19 = vpop.permute.xlu1 %810  ;;  %v809_v20 = vpop.permute.xlu0 %808  ;;  %1372 = vmatprep.subr.bf16.mxu1 %v1507_v15  ;;  %1382 = vmatprep.mubr.bf16.mxu1 %v1516_v16 }
  0xcc   : > { %v835_v23 = vsel %vm832_vm2, %v809_v20, %v811_v19 }
  0xcd   : > { %1418 = vmatprep.subr.bf16.mxu0 %v835_v23  ;;  %1411 = vmatmul.mubr.bf16.gmra.mrb[4].mxu0 %v1515_v18 }
  0xce   : > { %1373 = vmatpush3.bf16.msra.mxu1 %v1507_v15  ;;  %1419 = vmatpush3.bf16.msra.mxu0 %v835_v23 }
  0xcf   : > { %v815_v24 = vpop.permute.xlu1 %814  ;;  %v813_v25 = vpop.permute.xlu0 %812  ;;  %1374 = vmatprep.subr.bf16.mxu1 %v1508_v21  ;;  %1430 = vmatprep.mubr.bf16.mxu0 %v1518_v22 }
  0xd0   : > { %v836_v27 = vsel %vm832_vm2, %v813_v25, %v815_v24 }
  0xd1   : > { %1420 = vmatprep.subr.bf16.mxu0 %v836_v27 }
  0xd2   : > { %1375 = vmatpush3.bf16.msra.mxu1 %v1508_v21  ;;  %1421 = vmatpush3.bf16.msra.mxu0 %v836_v27 }
  0xd3   : > { %v819_v28 = vpop.permute.xlu1 %818  ;;  %v817_v29 = vpop.permute.xlu0 %816  ;;  %1376 = vmatprep.subr.bf16.mxu1 %v1509_v26 }
  0xd4   : > { %v837_v31 = vsel %vm832_vm2, %v817_v29, %v819_v28 }
  0xd5   : > { %1422 = vmatprep.subr.bf16.mxu0 %v837_v31 }
  0xd6   : > { %1377 = vmatpush3.bf16.msra.mxu1 %v1509_v26  ;;  %1423 = vmatpush3.bf16.msra.mxu0 %v837_v31 }
  0xd7   : > { %v823_v32 = vpop.permute.xlu1 %822  ;;  %v821_v33 = vpop.permute.xlu0 %820  ;;  %1378 = vmatprep.subr.bf16.mxu1 %v1512_v30 }
  0xd8   : > { %v838_v35 = vsel %vm832_vm2, %v821_v33, %v823_v32 }
  0xd9   : > { %1424 = vmatprep.subr.bf16.mxu0 %v838_v35 }
  0xda   : > { %1379 = vmatpush3.bf16.msra.mxu1 %v1512_v30  ;;  %1425 = vmatpush3.bf16.msra.mxu0 %v838_v35 }
  0xdb   : > { %v827_v36 = vpop.permute.xlu1 %826  ;;  %v825_v37 = vpop.permute.xlu0 %824  ;;  %1380 = vmatprep.subr.bf16.mxu1 %v1514_v34 }
  0xdc   : > { %v839_v38 = vsel %vm832_vm2, %v825_v37, %v827_v36 }
  0xdd   : > { %1426 = vmatprep.subr.bf16.mxu0 %v839_v38 }
  0xde   : > { %1381 = vmatpush3.bf16.msra.mxu1 %v1514_v34  ;;  %1427 = vmatpush3.bf16.msra.mxu0 %v839_v38 }
  0xdf   : > { %v831_v41 = vpop.permute.xlu1 %830  ;;  %v829_v42 = vpop.permute.xlu0 %828 }
  0xe0   : > { %v840_v43 = vsel %vm832_vm2, %v829_v42, %v831_v41 }
  0xe1   : > { %1383 = vmatmul.mubr.bf16.vlgmr.msra.gmra.mrb[0].mxu1 %v1517_v39  ;;  %1428 = vmatprep.subr.bf16.mxu0 %v840_v43 }
  0xe2   : > { %1429 = vmatpush3.bf16.msra.mxu0 %v840_v43  ;;  %1386 = vmatprep.mubr.bf16.mxu1 %v1520_v40 }
  0xe5   : > { %1431 = vmatmul.mubr.bf16.vlgmr.msra.gmra.mrb[0].mxu0 %v1519_v44 }
  0xe6   : > { %1434 = vmatprep.mubr.bf16.mxu0 %v1522_v45 }
  0xe9   : > { %1387 = vmatmul.mubr.bf16.gmra.mrb[4].mxu1 %v1521_v46 }
  0xed   : > { %1435 = vmatmul.mubr.bf16.gmra.mrb[4].mxu0 %v1523_v47 }
 0x1b4   : > { %v1384_v57 = vpop.f32.mrb[0].mxu1 }
 0x1b5   : > { %v581_v58 = vpop.f32.mrb[1].mxu1 }
 0x1b6   : > { %v1385_v59 = vpop.f32.mrb[2].mxu1 }
 0x1b7   : > { %v584_v60 = vpop.f32.mrb[3].mxu1 }
 0x1b8   : > { %v1432_v61 = vpop.f32.mrb[0].mxu0 }
 0x1b9   : > { %v1438_v0 = vadd.f32 %v1432_v61, %v1384_v57  ;;  %v883_v1 = vpop.f32.mrb[1].mxu0 }
 0x1ba   : > { %v1439_v2 = vadd.f32 %v883_v1, %v581_v58  ;;  %v1433_v3 = vpop.f32.mrb[2].mxu0 }
 0x1bb   : > { %v1440_v4 = vadd.f32 %v1433_v3, %v1385_v59  ;;  %v886_v5 = vpop.f32.mrb[3].mxu0  ;;  %v987_v6 = vmul.f32 %v1438_v0, %v1256_v63 }
 0x1bc   : > { %v1441_v7 = vadd.f32 %v886_v5, %v584_v60  ;;  %v1388_v8 = vpop.f32.mrb[4].mxu1  ;;  %v985_v15 = vmul.f32 %v1439_v2, %v1256_v63 }
 0x1bd   : > { %v1279_v9 = vpack.c.bf16 %v1440_v4, %v1438_v0  ;;  %997 = vadd.xlane.f32.xlu0 %v987_v6  ;;  %v597_v10 = vpop.f32.mrb[5].mxu1  ;;  %v1020_v11 = vmul.f32 %v1438_v0, %v987_v6  ;;  %v988_v24 = vmul.f32 %v1440_v4, %v1256_v63 }
 0x1be   : > { %v1274_v12 = vpack.c.bf16 %v1441_v7, %v1439_v2  ;;  %v1389_v13 = vpop.f32.mrb[6].mxu1  ;;  %v986_v19 = vmul.f32 %v1441_v7, %v1256_v63  ;;  %v1018_v27 = vmul.f32 %v1439_v2, %v985_v15 }
 0x1bf   : > { %1291 = vst [vmem:[%s1713_s9 + $0x8] sm:$0xff] %v1279_v9   ;;  %1030 = vadd.xlane.f32.xlu1 %v1020_v11  ;;  %v600_v14 = vpop.f32.mrb[7].mxu1  ;;  %v1021_v29 = vmul.f32 %v1440_v4, %v988_v24 }
 0x1c0   : > { %1275 = vst [vmem:[%s1713_s9] sm:$0xff] %v1274_v12   ;;  %v1436_v16 = vpop.f32.mrb[4].mxu0  ;;  %v1019_v31 = vmul.f32 %v1441_v7, %v986_v19 }
 0x1c1   : > { %v1442_v17 = vadd.f32 %v1436_v16, %v1388_v8  ;;  %v899_v18 = vpop.f32.mrb[5].mxu0  ;;  %993 = vadd.xlane.f32.xlu0 %v985_v15 }
 0x1c2   : > { %v1443_v20 = vadd.f32 %v899_v18, %v597_v10  ;;  %v1437_v21 = vpop.f32.mrb[6].mxu0 }
 0x1c3   : > { %v1444_v22 = vadd.f32 %v1437_v21, %v1389_v13  ;;  %v902_v23 = vpop.f32.mrb[7].mxu0  ;;  %995 = vadd.xlane.f32.xlu1 %v986_v19  ;;  %v991_v30 = vmul.f32 %v1442_v17, %v1256_v63 }
 0x1c4   : > { %v1445_v25 = vadd.f32 %v902_v23, %v600_v14  ;;  %v989_v32 = vmul.f32 %v1443_v20, %v1256_v63 }
 0x1c5   : > { %v1289_v26 = vpack.c.bf16 %v1444_v22, %v1442_v17  ;;  %999 = vadd.xlane.f32.xlu0 %v988_v24  ;;  %v992_v33 = vmul.f32 %v1444_v22, %v1256_v63  ;;  %v1024_v36 = vmul.f32 %v1442_v17, %v991_v30 }
 0x1c6   : > { %v1284_v28 = vpack.c.bf16 %v1445_v25, %v1443_v20  ;;  %v1022_v34 = vmul.f32 %v1443_v20, %v989_v32  ;;  %v990_v35 = vmul.f32 %v1445_v25, %v1256_v63 }
 0x1c7   : > { %1293 = vst [vmem:[%s1713_s9 + $0x18] sm:$0xff] %v1289_v26   ;;  %1026 = vadd.xlane.f32.xlu1 %v1018_v27  ;;  %v1025_v38 = vmul.f32 %v1444_v22, %v992_v33 }
 0x1c8   : > { %1292 = vst [vmem:[%s1713_s9 + $0x10] sm:$0xff] %v1284_v28   ;;  %v1023_v37 = vmul.f32 %v1445_v25, %v990_v35 }
 0x1c9   : > { %1032 = vadd.xlane.f32.xlu0 %v1021_v29 }
 0x1cb   : > { %1005 = vadd.xlane.f32.xlu1 %v991_v30 }
 0x1cd   : > { %1028 = vadd.xlane.f32.xlu0 %v1019_v31 }
 0x1cf   : > { %1001 = vadd.xlane.f32.xlu1 %v989_v32 }
 0x1d1   : > { %1007 = vadd.xlane.f32.xlu0 %v992_v33 }
 0x1d3   : > { %1034 = vadd.xlane.f32.xlu1 %v1022_v34 }
 0x1d5   : > { %1003 = vadd.xlane.f32.xlu0 %v990_v35 }
 0x1d7   : > { %1038 = vadd.xlane.f32.xlu1 %v1024_v36 }
 0x1d9   : > { %1036 = vadd.xlane.f32.xlu0 %v1023_v37 }
 0x1dd   : > { %1040 = vadd.xlane.f32.xlu0 %v1025_v38 }
 0x24a   : > { %v998_v39 = vpop.xlane.xlu0 %997 }
 0x24b   : > { %1012 = vst.msk [vmem:[%s217_s13 + $0x10] sm:$0xff] %vm1009_vm9, %v998_v39 }
 0x24c   : > { %v1031_v40 = vpop.xlane.xlu1 %1030 }
 0x24d   : > { %1044 = vst.msk [vmem:[%s1726_s18 + $0x10] sm:$0xff] %vm1009_vm9, %v1031_v40 }
 0x24e   : > { %v994_v41 = vpop.xlane.xlu0 %993 }
 0x24f   : > { %1010 = vst.msk [vmem:[%s217_s13] sm:$0xff] %vm1009_vm9, %v994_v41 }
 0x250   : > { %v996_v42 = vpop.xlane.xlu1 %995 }
 0x251   : > { %1011 = vst.msk [vmem:[%s217_s13 + $0x8] sm:$0xff] %vm1009_vm9, %v996_v42 }
 0x252   : > { %v1000_v43 = vpop.xlane.xlu0 %999 }
 0x253   : > { %1013 = vst.msk [vmem:[%s217_s13 + $0x18] sm:$0xff] %vm1009_vm9, %v1000_v43 }
 0x254   : > { %v1027_v44 = vpop.xlane.xlu1 %1026 }
 0x255   : > { %1042 = vst.msk [vmem:[%s1726_s18] sm:$0xff] %vm1009_vm9, %v1027_v44 }
 0x256   : > { %v1033_v45 = vpop.xlane.xlu0 %1032 }
 0x257   : > { %1045 = vst.msk [vmem:[%s1726_s18 + $0x18] sm:$0xff] %vm1009_vm9, %v1033_v45 }
 0x258   : > { %v1006_v46 = vpop.xlane.xlu1 %1005 }
 0x259   : > { %1016 = vst.msk [vmem:[%s217_s13 + $0x30] sm:$0xff] %vm1009_vm9, %v1006_v46 }
 0x25a   : > { %v1029_v47 = vpop.xlane.xlu0 %1028 }
 0x25b   : > { %1043 = vst.msk [vmem:[%s1726_s18 + $0x8] sm:$0xff] %vm1009_vm9, %v1029_v47 }
 0x25c   : > { %v1002_v48 = vpop.xlane.xlu1 %1001 }
 0x25d   : > { %1014 = vst.msk [vmem:[%s217_s13 + $0x20] sm:$0xff] %vm1009_vm9, %v1002_v48 }
 0x25e   : > { %v1008_v49 = vpop.xlane.xlu0 %1007 }
 0x25f   : > { %1017 = vst.msk [vmem:[%s217_s13 + $0x38] sm:$0xff] %vm1009_vm9, %v1008_v49 }
 0x260   : > { %v1035_v50 = vpop.xlane.xlu1 %1034 }
 0x261   : > { %1046 = vst.msk [vmem:[%s1726_s18 + $0x20] sm:$0xff] %vm1009_vm9, %v1035_v50 }
 0x262   : > { %v1004_v51 = vpop.xlane.xlu0 %1003 }
 0x263   : > { %1015 = vst.msk [vmem:[%s217_s13 + $0x28] sm:$0xff] %vm1009_vm9, %v1004_v51 }
 0x264   : > { %v1039_v52 = vpop.xlane.xlu1 %1038 }
 0x265   : > { %1048 = vst.msk [vmem:[%s1726_s18 + $0x30] sm:$0xff] %vm1009_vm9, %v1039_v52 }
 0x266   : > { %v1037_v53 = vpop.xlane.xlu0 %1036 }
 0x267   : > { %1047 = vst.msk [vmem:[%s1726_s18 + $0x28] sm:$0xff] %vm1009_vm9, %v1037_v53 }
 0x26a   : > { %v1041_v54 = vpop.xlane.xlu0 %1040 }
 0x26b   : > { %1049 = vst.msk [vmem:[%s1726_s18 + $0x38] sm:$0xff] %vm1009_vm9, %v1041_v54 }
 0x26c PF: > { %s15_s15 = sadd.s32 1, %s1530_s15  }
 0x26d   : > { %p12_p4 = scmp.ge.s32.totalorder %s15_s15, 4  }
 0x26f   :  { %14 = sbr.rel (!%p12_p4) target bundleno = 1 (0x1), region = 85 }

// kernel: discriminator_forward.18
= control target key start
LH: loop header
LB: loop body
LE: loop exit
PB: predicated region body
PF: predicated region fallthrough
CT: control target
= control target key end

     0   :  { %s781_s12 = smov 0   ;;  %s949_s0 = inlined_call_operand.vmem [shape: bf16[2,128,128], index: 0, kind: input, shape index: {}]   ;;  %s950_s1 = inlined_call_operand.vmem [shape: f32[128,1], index: 1, kind: input, shape index: {}]   ;;  %s951_s2 = inlined_call_operand.vmem [shape: f32[128,1], index: 2, kind: input, shape index: {}]   ;;  %s952_s3 = inlined_call_operand.vmem [shape: bf16[2,128,128], index: 3, kind: output, shape index: {}]  }
   0x1 LB: > { %s610_s13 = sadd.s32 4294967295, %s758_s12   ;;  %p614_p0 = scmp.ge.s32.totalorder %s758_s12, 1  ;;  %s758_s12 = sphi %s781_s12, %s13_s12  }
   0x2   : > { %p137_p1 = scmp.lt.s32.totalorder %s758_s12, 3 }
   0x4   : > { %p138_p2 = pnand %p614_p0, %p137_p1 }
   0x5   : > { %v205_v0 = vld [vmem:[%s950_s1 + $0x10] sm:$0xff] (!%p138_p2)  ;;  %v203_v1 = vld [vmem:[%s950_s1] sm:$0xff] (!%p138_p2)  ;;  %v760_v2 = vmov (!%p138_p2), 0   ;;  %v206_v3 = vld [vmem:[%s950_s1 + $0x18] sm:$0xff] (!%p138_p2)  ;;  %p161_p3 = scmp.lt.s32.totalorder (!%p138_p2), %s610_s13, 1 }
   0x6   : > { %141 = sbr.rel (%p138_p2) target bundleno = 203 (0xcb), region = 32  ;;  %751 = vset.pattern.permute.xlu1 (!%p138_p2), %v760_v2  ;;  %750 = vset.pattern.permute.xlu0 (!%p138_p2), %v760_v2  ;;  %v204_v4 = vld [vmem:[%s950_s1 + $0x8] sm:$0xff] (!%p138_p2)  ;;  %v207_v6 = vld [vmem:[%s950_s1 + $0x20] sm:$0xff] (!%p138_p2)  ;;  %v210_v7 = vld [vmem:[%s950_s1 + $0x38] sm:$0xff] (!%p138_p2) }
   0x7   : > { %231 = vperm.xlu1 (!%p138_p2), %751, %v205_v0   ;;  %221 = vperm.xlu0 (!%p138_p2), %750, %v203_v1   ;;  %v208_v5 = vld [vmem:[%s950_s1 + $0x28] sm:$0xff] (!%p138_p2)  ;;  %v209_v8 = vld [vmem:[%s950_s1 + $0x30] sm:$0xff] (!%p138_p2)  ;;  %v211_v10 = vld [vmem:[%s950_s1 + $0x40] sm:$0xff] (!%p138_p2) }
   0x8   : > { %v212_v9 = vld [vmem:[%s950_s1 + $0x48] sm:$0xff] (!%p138_p2)  ;;  %v214_v11 = vld [vmem:[%s950_s1 + $0x58] sm:$0xff] (!%p138_p2)  ;;  %v213_v12 = vld [vmem:[%s950_s1 + $0x50] sm:$0xff] (!%p138_p2) }
   0x9   : > { %v216_v13 = vld [vmem:[%s950_s1 + $0x68] sm:$0xff] (!%p138_p2)  ;;  %v215_v14 = vld [vmem:[%s950_s1 + $0x60] sm:$0xff] (!%p138_p2)  ;;  %v218_v15 = vld [vmem:[%s950_s1 + $0x78] sm:$0xff] (!%p138_p2) }
   0xa   : > { %v217_v16 = vld [vmem:[%s950_s1 + $0x70] sm:$0xff] (!%p138_p2)  ;;  %v316_v17 = vld [vmem:[%s951_s2 + $0x8] sm:$0xff] (!%p138_p2)  ;;  %v315_v18 = vld [vmem:[%s951_s2] sm:$0xff] (!%p138_p2) }
   0xb   : > { %236 = vperm.xlu1 (!%p138_p2), %751, %v206_v3   ;;  %226 = vperm.xlu0 (!%p138_p2), %750, %v204_v4   ;;  %v318_v19 = vld [vmem:[%s951_s2 + $0x18] sm:$0xff] (!%p138_p2)  ;;  %v317_v20 = vld [vmem:[%s951_s2 + $0x10] sm:$0xff] (!%p138_p2)  ;;  %v320_v21 = vld [vmem:[%s951_s2 + $0x28] sm:$0xff] (!%p138_p2) }
   0xc   : > { %v319_v22 = vld [vmem:[%s951_s2 + $0x20] sm:$0xff] (!%p138_p2)  ;;  %v322_v23 = vld [vmem:[%s951_s2 + $0x38] sm:$0xff] (!%p138_p2)  ;;  %v321_v24 = vld [vmem:[%s951_s2 + $0x30] sm:$0xff] (!%p138_p2) }
   0xd   : > { %v324_v25 = vld [vmem:[%s951_s2 + $0x48] sm:$0xff]  ;;  %v323_v26 = vld [vmem:[%s951_s2 + $0x40] sm:$0xff]  ;;  %v326_v27 = vld [vmem:[%s951_s2 + $0x58] sm:$0xff]  ;;  %s954_s13 = smov (!%p161_p3, %s610_s13), 1 }
   0xe   : > { %v325_v28 = vld [vmem:[%s951_s2 + $0x50] sm:$0xff]  ;;  %v328_v29 = vld [vmem:[%s951_s2 + $0x68] sm:$0xff]  ;;  %v327_v30 = vld [vmem:[%s951_s2 + $0x60] sm:$0xff]  ;;  %s637_s28 = sshll.u32 %s954_s13, 6 }
   0xf   : > { %246 = vperm.xlu1 %751, %v208_v5   ;;  %241 = vperm.xlu0 %750, %v207_v6   ;;  %v330_v31 = vld [vmem:[%s951_s2 + $0x78] sm:$0xff]  ;;  %v329_v32 = vld [vmem:[%s951_s2 + $0x70] sm:$0xff]  ;;  %s905_s4 = scalar_lea.vmem %s949_s0, %s637_s28  ;;  %s924_s7 = scalar_lea.vmem %s952_s3, %s637_s28 }
  0x10   : > { %v656_v45 = vld [vmem:[%s905_s4] sm:$0xff]   ;;  %v727_v48 = vld [vmem:[%s905_s4 + $0x8] sm:$0xff]   ;;  %v728_v57 = vld [vmem:[%s905_s4 + $0x10] sm:$0xff]  }
  0x11   : > { %v657_v49 = vunpack.c.l.bf16 %v656_v45  ;;  %v658_v50 = vunpack.c.h.bf16 %v656_v45  ;;  %v661_v53 = vunpack.c.l.bf16 %v727_v48  ;;  %v662_v54 = vunpack.c.h.bf16 %v727_v48  ;;  %v729_v60 = vld [vmem:[%s905_s4 + $0x18] sm:$0xff]  }
  0x12   : > { %v666_v1 = vunpack.c.h.bf16 %v728_v57  ;;  %v665_v2 = vunpack.c.l.bf16 %v728_v57  ;;  %v670_v5 = vunpack.c.h.bf16 %v729_v60 }
  0x13   : > { %256 = vperm.xlu1 %751, %v210_v7   ;;  %251 = vperm.xlu0 %750, %v209_v8   ;;  %v730_v8 = vld [vmem:[%s905_s4 + $0x20] sm:$0xff]  }
  0x17   : > { %266 = vperm.xlu1 %751, %v212_v9   ;;  %261 = vperm.xlu0 %750, %v211_v10  }
  0x1b   : > { %276 = vperm.xlu1 %751, %v214_v11   ;;  %271 = vperm.xlu0 %750, %v213_v12  }
  0x1f   : > { %286 = vperm.xlu1 %751, %v216_v13   ;;  %281 = vperm.xlu0 %750, %v215_v14  }
  0x23   : > { %296 = vperm.xlu1 %751, %v218_v15   ;;  %291 = vperm.xlu0 %750, %v217_v16   ;;  %v669_v15 = vunpack.c.l.bf16 %v729_v60 }
  0x27   : > { %338 = vperm.xlu1 %751, %v316_v17   ;;  %333 = vperm.xlu0 %750, %v315_v18  }
  0x2b   : > { %348 = vperm.xlu1 %751, %v318_v19   ;;  %343 = vperm.xlu0 %750, %v317_v20   ;;  %v674_v19 = vunpack.c.h.bf16 %v730_v8 }
  0x2f   : > { %358 = vperm.xlu1 %751, %v320_v21   ;;  %353 = vperm.xlu0 %750, %v319_v22   ;;  %v731_v22 = vld [vmem:[%s905_s4 + $0x28] sm:$0xff]  }
  0x33   : > { %368 = vperm.xlu1 %751, %v322_v23   ;;  %363 = vperm.xlu0 %750, %v321_v24  }
  0x37   : > { %378 = vperm.xlu1 %751, %v324_v25   ;;  %373 = vperm.xlu0 %750, %v323_v26  }
  0x3b   : > { %388 = vperm.xlu1 %751, %v326_v27   ;;  %383 = vperm.xlu0 %750, %v325_v28  }
  0x3f   : > { %398 = vperm.xlu1 %751, %v328_v29   ;;  %393 = vperm.xlu0 %750, %v327_v30   ;;  %v673_v29 = vunpack.c.l.bf16 %v730_v8 }
  0x43   : > { %408 = vperm.xlu1 %751, %v330_v31   ;;  %403 = vperm.xlu0 %750, %v329_v32  }
  0x86   : > { %v232_v33 = vpop.permute.xlu1 %231  ;;  %v222_v34 = vpop.permute.xlu0 %221 }
  0x87   : > { %v299_v55 = vmul.f32 %v657_v49, %v222_v34  ;;  %v301_v63 = vmul.f32 %v661_v53, %v232_v33  ;;  %v678_v33 = vunpack.c.h.bf16 %v731_v22  ;;  %v677_v49 = vunpack.c.l.bf16 %v731_v22 }
  0x8a   : > { %v237_v35 = vpop.permute.xlu1 %236  ;;  %v227_v36 = vpop.permute.xlu0 %226 }
  0x8b   : > { %v300_v56 = vmul.f32 %v658_v50, %v227_v36  ;;  %v302_v0 = vmul.f32 %v662_v54, %v237_v35  ;;  %v732_v36 = vld [vmem:[%s905_s4 + $0x30] sm:$0xff]  }
  0x8e   : > { %v247_v37 = vpop.permute.xlu1 %246  ;;  %v242_v38 = vpop.permute.xlu0 %241 }
  0x8f   : > { %v304_v13 = vmul.f32 %v666_v1, %v247_v37  ;;  %v303_v14 = vmul.f32 %v665_v2, %v242_v38 }
  0x92   : > { %v257_v39 = vpop.permute.xlu1 %256  ;;  %v252_v40 = vpop.permute.xlu0 %251 }
  0x93   : > { %v306_v27 = vmul.f32 %v670_v5, %v257_v39  ;;  %v305_v28 = vmul.f32 %v669_v15, %v252_v40 }
  0x96   : > { %v891_v41 = vpop.permute.xlu1 %266  ;;  %v893_v42 = vpop.permute.xlu0 %261 }
  0x97   : > { %v308_v39 = vmul.f32 %v674_v19, %v891_v41  ;;  %v307_v40 = vmul.f32 %v673_v29, %v893_v42 }
  0x9a   : > { %v896_v43 = vpop.permute.xlu1 %276  ;;  %v898_v44 = vpop.permute.xlu0 %271 }
  0x9b   : > { %v310_v41 = vmul.f32 %v678_v33, %v896_v43  ;;  %v309_v42 = vmul.f32 %v677_v49, %v898_v44 }
  0x9e   : > { %v908_v46 = vpop.permute.xlu1 %286  ;;  %v910_v47 = vpop.permute.xlu0 %281 }
  0xa2   : > { %v913_v51 = vpop.permute.xlu1 %296  ;;  %v915_v52 = vpop.permute.xlu0 %291 }
  0xa6   : > { %v339_v58 = vpop.permute.xlu1 %338  ;;  %v334_v59 = vpop.permute.xlu0 %333 }
  0xa7   : > { %v412_v61 = vadd.f32 %v339_v58, %v300_v56  ;;  %v411_v62 = vadd.f32 %v334_v59, %v299_v55  ;;  %v682_v55 = vunpack.c.h.bf16 %v732_v36  ;;  %v733_v58 = vld [vmem:[%s905_s4 + $0x38] sm:$0xff]  }
  0xa8   : > { %v685_v44 = vunpack.c.l.bf16 %v733_v58 }
  0xa9   : > { %vm428_vm0 = vcmp.ge.f32.partialorder %v412_v61, 0.0  ;;  %v444_v3 = vmul.f32 0.1, %v412_v61  ;;  %vm427_vm1 = vcmp.ge.f32.partialorder %v411_v62, 0.0  ;;  %v443_v4 = vmul.f32 0.1, %v411_v62 }
  0xaa   : > { %v349_v6 = vpop.permute.xlu1 %348  ;;  %v344_v7 = vpop.permute.xlu0 %343 }
  0xab   : > { %v460_v9 = vsel %vm428_vm0, %v412_v61, %v444_v3  ;;  %v459_v10 = vsel %vm427_vm1, %v411_v62, %v443_v4  ;;  %v414_v11 = vadd.f32 %v349_v6, %v302_v0  ;;  %v413_v12 = vadd.f32 %v344_v7, %v301_v63 }
  0xac   : > { %v690_v16 = vpack.c.bf16 %v460_v9, %v459_v10  ;;  %v681_v63 = vunpack.c.l.bf16 %v732_v36  ;;  %v686_v3 = vunpack.c.h.bf16 %v733_v58  ;;  %v312_v10 = vmul.f32 %v682_v55, %v908_v46 }
  0xad   : > { %vm430_vm2 = vcmp.ge.f32.partialorder %v414_v11, 0.0  ;;  %v446_v17 = vmul.f32 0.1, %v414_v11  ;;  %vm429_vm3 = vcmp.ge.f32.partialorder %v413_v12, 0.0  ;;  %v445_v18 = vmul.f32 0.1, %v413_v12 }
  0xae   : > { %691 = vst [vmem:[%s924_s7] sm:$0xff] %v690_v16   ;;  %v359_v20 = vpop.permute.xlu1 %358  ;;  %v354_v21 = vpop.permute.xlu0 %353  ;;  %v311_v43 = vmul.f32 %v681_v63, %v910_v47  ;;  %v313_v46 = vmul.f32 %v685_v44, %v915_v52 }
  0xaf   : > { %v462_v23 = vsel %vm430_vm2, %v414_v11, %v446_v17  ;;  %v461_v24 = vsel %vm429_vm3, %v413_v12, %v445_v18  ;;  %v416_v25 = vadd.f32 %v359_v20, %v304_v13  ;;  %v415_v26 = vadd.f32 %v354_v21, %v303_v14 }
  0xb0   : > { %v695_v30 = vpack.c.bf16 %v462_v23, %v461_v24  ;;  %v314_v20 = vmul.f32 %v686_v3, %v913_v51 }
  0xb1   : > { %vm432_vm4 = vcmp.ge.f32.partialorder %v416_v25, 0.0  ;;  %v448_v31 = vmul.f32 0.1, %v416_v25  ;;  %vm431_vm5 = vcmp.ge.f32.partialorder %v415_v26, 0.0  ;;  %v447_v32 = vmul.f32 0.1, %v415_v26 }
  0xb2   : > { %734 = vst [vmem:[%s924_s7 + $0x8] sm:$0xff] %v695_v30   ;;  %v369_v34 = vpop.permute.xlu1 %368  ;;  %v364_v35 = vpop.permute.xlu0 %363 }
  0xb3   : > { %v464_v37 = vsel %vm432_vm4, %v416_v25, %v448_v31  ;;  %v463_v38 = vsel %vm431_vm5, %v415_v26, %v447_v32  ;;  %v418_v45 = vadd.f32 %v369_v34, %v306_v27  ;;  %v417_v48 = vadd.f32 %v364_v35, %v305_v28 }
  0xb4   : > { %v700_v50 = vpack.c.bf16 %v464_v37, %v463_v38 }
  0xb5   : > { %vm434_vm6 = vcmp.ge.f32.partialorder %v418_v45, 0.0  ;;  %v450_v53 = vmul.f32 0.1, %v418_v45  ;;  %vm433_vm7 = vcmp.ge.f32.partialorder %v417_v48, 0.0  ;;  %v449_v54 = vmul.f32 0.1, %v417_v48 }
  0xb6   : > { %735 = vst [vmem:[%s924_s7 + $0x10] sm:$0xff] %v700_v50   ;;  %v379_v56 = vpop.permute.xlu1 %378  ;;  %v374_v57 = vpop.permute.xlu0 %373 }
  0xb7   : > { %v466_v59 = vsel %vm434_vm6, %v418_v45, %v450_v53  ;;  %v465_v60 = vsel %vm433_vm7, %v417_v48, %v449_v54  ;;  %v420_v61 = vadd.f32 %v379_v56, %v308_v39  ;;  %v419_v62 = vadd.f32 %v374_v57, %v307_v40 }
  0xb8   : > { %v705_v0 = vpack.c.bf16 %v466_v59, %v465_v60 }
  0xb9   : > { %vm436_vm8 = vcmp.ge.f32.partialorder %v420_v61, 0.0  ;;  %v452_v1 = vmul.f32 0.1, %v420_v61  ;;  %vm435_vm9 = vcmp.ge.f32.partialorder %v419_v62, 0.0  ;;  %v451_v2 = vmul.f32 0.1, %v419_v62 }
  0xba   : > { %736 = vst [vmem:[%s924_s7 + $0x18] sm:$0xff] %v705_v0   ;;  %v389_v4 = vpop.permute.xlu1 %388  ;;  %v384_v5 = vpop.permute.xlu0 %383 }
  0xbb   : > { %v468_v6 = vsel %vm436_vm8, %v420_v61, %v452_v1  ;;  %v467_v7 = vsel %vm435_vm9, %v419_v62, %v451_v2  ;;  %v422_v8 = vadd.f32 %v389_v4, %v310_v41  ;;  %v421_v9 = vadd.f32 %v384_v5, %v309_v42 }
  0xbc   : > { %v710_v11 = vpack.c.bf16 %v468_v6, %v467_v7 }
  0xbd   : > { %vm438_vm10 = vcmp.ge.f32.partialorder %v422_v8, 0.0  ;;  %v454_v12 = vmul.f32 0.1, %v422_v8  ;;  %vm437_vm11 = vcmp.ge.f32.partialorder %v421_v9, 0.0  ;;  %v453_v13 = vmul.f32 0.1, %v421_v9 }
  0xbe   : > { %737 = vst [vmem:[%s924_s7 + $0x20] sm:$0xff] %v710_v11   ;;  %v399_v14 = vpop.permute.xlu1 %398  ;;  %v394_v15 = vpop.permute.xlu0 %393 }
  0xbf   : > { %v470_v16 = vsel %vm438_vm10, %v422_v8, %v454_v12  ;;  %v469_v17 = vsel %vm437_vm11, %v421_v9, %v453_v13  ;;  %v424_v18 = vadd.f32 %v399_v14, %v312_v10  ;;  %v423_v19 = vadd.f32 %v394_v15, %v311_v43 }
  0xc0   : > { %v715_v21 = vpack.c.bf16 %v470_v16, %v469_v17 }
  0xc1   : > { %vm440_vm12 = vcmp.ge.f32.partialorder %v424_v18, 0.0  ;;  %v456_v47 = vmul.f32 0.1, %v424_v18  ;;  %vm439_vm13 = vcmp.ge.f32.partialorder %v423_v19, 0.0  ;;  %v455_v22 = vmul.f32 0.1, %v423_v19 }
  0xc2   : > { %738 = vst [vmem:[%s924_s7 + $0x28] sm:$0xff] %v715_v21   ;;  %v409_v23 = vpop.permute.xlu1 %408  ;;  %v404_v24 = vpop.permute.xlu0 %403 }
  0xc3   : > { %v472_v25 = vsel %vm440_vm12, %v424_v18, %v456_v47  ;;  %v471_v26 = vsel %vm439_vm13, %v423_v19, %v455_v22  ;;  %v426_v27 = vadd.f32 %v409_v23, %v314_v20  ;;  %v425_v28 = vadd.f32 %v404_v24, %v313_v46 }
  0xc4   : > { %v720_v29 = vpack.c.bf16 %v472_v25, %v471_v26 }
  0xc5   : > { %vm442_vm14 = vcmp.ge.f32.partialorder %v426_v27, 0.0  ;;  %v458_v30 = vmul.f32 0.1, %v426_v27  ;;  %vm441_vm15 = vcmp.ge.f32.partialorder %v425_v28, 0.0  ;;  %v457_v51 = vmul.f32 0.1, %v425_v28 }
  0xc6   : > { %739 = vst [vmem:[%s924_s7 + $0x30] sm:$0xff] %v720_v29  }
  0xc7   : > { %v474_v52 = vsel %vm442_vm14, %v426_v27, %v458_v30  ;;  %v473_v31 = vsel %vm441_vm15, %v425_v28, %v457_v51 }
  0xc8   : > { %v725_v32 = vpack.c.bf16 %v474_v52, %v473_v31 }
  0xca   : > { %740 = vst [vmem:[%s924_s7 + $0x38] sm:$0xff] %v725_v32  }
  0xcb PF: > { %s13_s12 = sadd.s32 1, %s758_s12  }
  0xcc   : > { %p10_p4 = scmp.ge.s32.totalorder %s13_s12, 4  }
  0xce   :  { %12 = sbr.rel (!%p10_p4) target bundleno = 1 (0x1), region = 62 }

// kernel: discriminator_forward.17
= control target key start
LH: loop header
LB: loop body
LE: loop exit
PB: predicated region body
PF: predicated region fallthrough
CT: control target
= control target key end

     0   :  { %s2689_s15 = smov 0   ;;  %s3444_s0 = inlined_call_operand.vmem [shape: bf16[2,256,256], index: 0, kind: input, shape index: {}]   ;;  %s3445_s1 = inlined_call_operand.vmem [shape: bf16[4,128,256], index: 1, kind: input, shape index: {}]   ;;  %s3446_s2 = inlined_call_operand.vmem [shape: bf16[2,128,128], index: 2, kind: output, shape index: {0}]   ;;  %s3447_s3 = inlined_call_operand.vmem [shape: f32[2,128,1], index: 3, kind: output, shape index: {1}]   ;;  %s3448_s4 = inlined_call_operand.vmem [shape: f32[2,128,1], index: 4, kind: output, shape index: {2}]  }
   0x1 LB: > { %s1963_s16 = sadd.s32 4294967295, %s2658_s15   ;;  %p1967_p0 = scmp.ge.s32.totalorder %s2658_s15, 1  ;;  %s2658_s15 = sphi %s2689_s15, %s15_s15  }
   0x2   : > { %p167_p1 = scmp.lt.s32.totalorder %s2658_s15, 3 }
   0x4   : > { %p168_p2 = pnand %p1967_p0, %p167_p1 }
   0x5   : > { %p203_p3 = scmp.lt.s32.totalorder (!%p168_p2), %s1963_s16, 1  ;;  %s2660_s21 = smov (!%p168_p2), 127   ;;  %v2555_v43 = vld [vmem:[%s3445_s1 + $0x84] ss:$8 sps:$4 sm:$0xff] (!%p168_p2)   ;;  %v2559_v50 = vld [vmem:[%s3445_s1] ss:$8 sps:$4 sm:$0xff] (!%p168_p2)  }
   0x6   : > { %171 = sbr.rel (%p168_p2) target bundleno = 751 (0x2ef), region = 28  ;;  %658 = vmatprep.mubr.bf16.mxu0 (!%p168_p2), %v2555_v43  ;;  %v2561_v49 = vld [vmem:[%s3445_s1 + $0x4] ss:$8 sps:$4 sm:$0xff] (!%p168_p2)   ;;  %s2661_s28 = smov (!%p168_p2), 125   ;;  %vm593_vm0 = vcmask (!%p168_p2), 1039360   ;;  %vm1157_vm1 = vcmask (!%p168_p2), 1022976  }
   0x7   : > { %931 = vmatprep.mubr.bf16.mxu1 (!%p168_p2), %v2561_v49  ;;  %s2662_s29 = smov (!%p168_p2), 124   ;;  %v2567_v53 = vld [vmem:[%s3445_s1 + $0x14] ss:$8 sps:$4 sm:$0xff] (!%p168_p2)   ;;  %v2570_v54 = vld [vmem:[%s3445_s1 + $0x10] ss:$8 sps:$4 sm:$0xff] (!%p168_p2)   ;;  %vm1464_vm2 = vcmask (!%p168_p2), 1014784  }
   0x8   : > { %v2573_v62 = vld [vmem:[%s3445_s1 + $0x24] ss:$8 sps:$4 sm:$0xff] (!%p168_p2)   ;;  %v2576_v63 = vld [vmem:[%s3445_s1 + $0x20] ss:$8 sps:$4 sm:$0xff] (!%p168_p2)   ;;  %vm1761_vm9 = vcmask (!%p168_p2), 7168  }
   0xd   : > { %s3450_s16 = smov (!%p203_p3, %s1963_s16), 1 }
   0xe   : > { %s2155_s17 = sshll.u32 %s3450_s16, 8  ;;  %s2156_s8 = sshll.u32 %s3450_s16, 6 }
   0xf   : > { %s2703_s20 = scalar_lea.vmem %s3444_s0, %s2155_s17  ;;  %s3329_s11 = scalar_lea.vmem %s3446_s2, %s2156_s8 }
  0x10   : > { %v2706_v0 = vld [vmem:[%s2703_s20 + $0x80] ss:$8 sps:$4 sm:$0xff]   ;;  %v2714_v2 = vld [vmem:[%s2703_s20 + $0x84] ss:$8 sps:$4 sm:$0xff]   ;;  %v2724_v4 = vld [vmem:[%s2703_s20 + $0x90] ss:$8 sps:$4 sm:$0xff]  }
  0x11   : > { %v2709_v1 = vld [vmem:[%s2703_s20] ss:$8 sps:$4 sm:$0xff]   ;;  %561 = vrot.lane.b32.xlu0 %v2706_v0, %s2660_s21  ;;  %v2719_v3 = vld [vmem:[%s2703_s20 + $0x4] ss:$8 sps:$4 sm:$0xff]   ;;  %v2729_v5 = vld [vmem:[%s2703_s20 + $0x94] ss:$8 sps:$4 sm:$0xff]  }
  0x12   : > { %529 = vrot.lane.b32.xlu1 %v2709_v1, %s2660_s21  ;;  %v2734_v6 = vld [vmem:[%s2703_s20 + $0x10] ss:$8 sps:$4 sm:$0xff]   ;;  %v2739_v7 = vld [vmem:[%s2703_s20 + $0x14] ss:$8 sps:$4 sm:$0xff]   ;;  %v2744_v8 = vld [vmem:[%s2703_s20 + $0xa0] ss:$8 sps:$4 sm:$0xff]  }
  0x13   : > { %v2749_v9 = vld [vmem:[%s2703_s20 + $0xa4] ss:$8 sps:$4 sm:$0xff]   ;;  %v2754_v10 = vld [vmem:[%s2703_s20 + $0x20] ss:$8 sps:$4 sm:$0xff]   ;;  %v2762_v12 = vld [vmem:[%s2703_s20 + $0xb0] ss:$8 sps:$4 sm:$0xff]  }
  0x14   : > { %v2759_v11 = vld [vmem:[%s2703_s20 + $0x24] ss:$8 sps:$4 sm:$0xff]   ;;  %v2765_v13 = vld [vmem:[%s2703_s20 + $0xb4] ss:$8 sps:$4 sm:$0xff]   ;;  %v2772_v14 = vld [vmem:[%s2703_s20 + $0x30] ss:$8 sps:$4 sm:$0xff]  }
  0x15   : > { %563 = vrot.lane.b32.xlu0 %v2714_v2, %s2660_s21  ;;  %v2775_v15 = vld [vmem:[%s2703_s20 + $0x34] ss:$8 sps:$4 sm:$0xff]   ;;  %v2782_v16 = vld [vmem:[%s2703_s20 + $0xc0] ss:$8 sps:$4 sm:$0xff]   ;;  %v2785_v17 = vld [vmem:[%s2703_s20 + $0xc4] ss:$8 sps:$4 sm:$0xff]  }
  0x16   : > { %531 = vrot.lane.b32.xlu1 %v2719_v3, %s2660_s21  ;;  %v2540_v18 = vld [vmem:[%s2703_s20 + $0x80] ss:$8 sps:$4 sm:$0xff]   ;;  %v2797_v21 = vld [vmem:[%s2703_s20 + $0x44] ss:$8 sps:$4 sm:$0xff]   ;;  %v2542_v22 = vld [vmem:[%s2703_s20 + $0x90] ss:$8 sps:$4 sm:$0xff]  }
  0x17   : > { %v2793_v19 = vld [vmem:[%s2703_s20 + $0x40] ss:$8 sps:$4 sm:$0xff]   ;;  %2286 = vmatprep.subr.bf16.mxu1 %v2540_v18  ;;  %v2805_v23 = vld [vmem:[%s2703_s20 + $0xd0] ss:$8 sps:$4 sm:$0xff]   ;;  %v2809_v25 = vld [vmem:[%s2703_s20 + $0xd4] ss:$8 sps:$4 sm:$0xff]  }
  0x18   : > { %v2541_v20 = vld [vmem:[%s2703_s20] ss:$8 sps:$4 sm:$0xff]   ;;  %v2543_v24 = vld [vmem:[%s2703_s20 + $0x10] ss:$8 sps:$4 sm:$0xff]   ;;  %v2821_v29 = vld [vmem:[%s2703_s20 + $0x54] ss:$8 sps:$4 sm:$0xff]  }
  0x19   : > { %565 = vrot.lane.b32.xlu0 %v2724_v4, %s2660_s21  ;;  %2287 = vmatpush3.bf16.msra.mxu1 %v2541_v20  ;;  %v2544_v26 = vld [vmem:[%s2703_s20 + $0xa0] ss:$8 sps:$4 sm:$0xff]   ;;  %v2817_v27 = vld [vmem:[%s2703_s20 + $0x50] ss:$8 sps:$4 sm:$0xff]   ;;  %v2833_v33 = vld [vmem:[%s2703_s20 + $0xe4] ss:$8 sps:$4 sm:$0xff]  }
  0x1a   : > { %567 = vrot.lane.b32.xlu1 %v2729_v5, %s2660_s21  ;;  %2288 = vmatprep.subr.bf16.mxu1 %v2542_v22  ;;  %v2545_v28 = vld [vmem:[%s2703_s20 + $0x20] ss:$8 sps:$4 sm:$0xff]   ;;  %v2546_v30 = vld [vmem:[%s2703_s20 + $0xb0] ss:$8 sps:$4 sm:$0xff]   ;;  %v2849_v37 = vld [vmem:[%s2703_s20 + $0x64] ss:$8 sps:$4 sm:$0xff]  }
  0x1b   : > { %v2829_v31 = vld [vmem:[%s2703_s20 + $0xe0] ss:$8 sps:$4 sm:$0xff]   ;;  %v2547_v32 = vld [vmem:[%s2703_s20 + $0x30] ss:$8 sps:$4 sm:$0xff]   ;;  %v2861_v41 = vld [vmem:[%s2703_s20 + $0xf4] ss:$8 sps:$4 sm:$0xff]  }
  0x1c   : > { %v2548_v34 = vld [vmem:[%s2703_s20 + $0xc0] ss:$8 sps:$4 sm:$0xff]   ;;  %v2550_v38 = vld [vmem:[%s2703_s20 + $0xd0] ss:$8 sps:$4 sm:$0xff]   ;;  %v2876_v46 = vld [vmem:[%s2703_s20 + $0x74] ss:$8 sps:$4 sm:$0xff]  }
  0x1d   : > { %533 = vrot.lane.b32.xlu0 %v2734_v6, %s2660_s21  ;;  %2289 = vmatpush3.bf16.msra.mxu1 %v2543_v24  ;;  %v2549_v35 = vld [vmem:[%s2703_s20 + $0x40] ss:$8 sps:$4 sm:$0xff]   ;;  %v2551_v39 = vld [vmem:[%s2703_s20 + $0x50] ss:$8 sps:$4 sm:$0xff]   ;;  %v2591_v22 = vld [vmem:[%s3445_s1 + $0x54] ss:$8 sps:$4 sm:$0xff]  }
  0x1e   : > { %535 = vrot.lane.b32.xlu1 %v2739_v7, %s2660_s21  ;;  %2290 = vmatprep.subr.bf16.mxu1 %v2544_v26  ;;  %v2844_v36 = vld [vmem:[%s2703_s20 + $0x60] ss:$8 sps:$4 sm:$0xff]   ;;  %v2856_v40 = vld [vmem:[%s2703_s20 + $0xf0] ss:$8 sps:$4 sm:$0xff]   ;;  %s2157_s12 = sshll.u32 %s3450_s16, 7 }
  0x1f   : > { %v2552_v42 = vld [vmem:[%s2703_s20 + $0xe0] ss:$8 sps:$4 sm:$0xff]   ;;  %v2871_v45 = vld [vmem:[%s2703_s20 + $0x70] ss:$8 sps:$4 sm:$0xff]   ;;  %s3370_s17 = scalar_lea.vmem %s3447_s3, %s2157_s12 }
  0x20   : > { %v2556_v44 = vld [vmem:[%s2703_s20 + $0x60] ss:$8 sps:$4 sm:$0xff]   ;;  %v2557_v47 = vld [vmem:[%s2703_s20 + $0xf0] ss:$8 sps:$4 sm:$0xff]  }
  0x21   : > { %569 = vrot.lane.b32.xlu0 %v2744_v8, %s2660_s21  ;;  %2291 = vmatpush3.bf16.msra.mxu1 %v2545_v28  ;;  %v2558_v48 = vld [vmem:[%s2703_s20 + $0x70] ss:$8 sps:$4 sm:$0xff]  }
  0x22   : > { %571 = vrot.lane.b32.xlu1 %v2749_v9, %s2660_s21  ;;  %2292 = vmatprep.subr.bf16.mxu1 %v2546_v30  ;;  %v2594_v24 = vld [vmem:[%s3445_s1 + $0x50] ss:$8 sps:$4 sm:$0xff]  }
  0x25   : > { %537 = vrot.lane.b32.xlu0 %v2754_v10, %s2660_s21  ;;  %2293 = vmatpush3.bf16.msra.mxu1 %v2547_v32 }
  0x26   : > { %539 = vrot.lane.b32.xlu1 %v2759_v11, %s2660_s21  ;;  %2294 = vmatprep.subr.bf16.mxu1 %v2548_v34 }
  0x29   : > { %573 = vrot.lane.b32.xlu0 %v2762_v12, %s2660_s21  ;;  %2295 = vmatpush3.bf16.msra.mxu1 %v2549_v35 }
  0x2a   : > { %575 = vrot.lane.b32.xlu1 %v2765_v13, %s2660_s21  ;;  %2296 = vmatprep.subr.bf16.mxu1 %v2550_v38  ;;  %v2597_v38 = vld [vmem:[%s3445_s1 + $0x64] ss:$8 sps:$4 sm:$0xff]  }
  0x2d   : > { %541 = vrot.lane.b32.xlu0 %v2772_v14, %s2660_s21  ;;  %2297 = vmatpush3.bf16.msra.mxu1 %v2551_v39 }
  0x2e   : > { %543 = vrot.lane.b32.xlu1 %v2775_v15, %s2660_s21  ;;  %2298 = vmatprep.subr.bf16.mxu1 %v2552_v42 }
  0x31   : > { %577 = vrot.lane.b32.xlu0 %v2782_v16, %s2660_s21  ;;  %2299 = vmatpush3.bf16.msra.mxu1 %v2556_v44  ;;  %v2604_v44 = vld [vmem:[%s3445_s1 + $0x74] ss:$8 sps:$4 sm:$0xff]  }
  0x32   : > { %579 = vrot.lane.b32.xlu1 %v2785_v17, %s2660_s21  ;;  %2300 = vmatprep.subr.bf16.mxu1 %v2557_v47  ;;  %v2606_v47 = vld [vmem:[%s3445_s1 + $0x70] ss:$8 sps:$4 sm:$0xff]  }
  0x35   : > { %545 = vrot.lane.b32.xlu0 %v2793_v19, %s2660_s21  ;;  %2301 = vmatpush3.bf16.msra.mxu1 %v2558_v48 }
  0x36   : > { %547 = vrot.lane.b32.xlu1 %v2797_v21, %s2660_s21 }
  0x38   : > { %932 = vmatmul.mubr.bf16.vlgmr.msra.gmra.mrb[0].mxu1 %v2559_v50 }
  0x39   : > { %581 = vrot.lane.b32.xlu0 %v2805_v23, %s2660_s21  ;;  %939 = vmatprep.mubr.bf16.mxu1 %v2567_v53 }
  0x3a   : > { %583 = vrot.lane.b32.xlu1 %v2809_v25, %s2660_s21 }
  0x3d   : > { %549 = vrot.lane.b32.xlu0 %v2817_v27, %s2660_s21 }
  0x3e   : > { %551 = vrot.lane.b32.xlu1 %v2821_v29, %s2660_s21 }
  0x40   : > { %940 = vmatmul.mubr.bf16.gmra.mrb[4].mxu1 %v2570_v54 }
  0x41   : > { %585 = vrot.lane.b32.xlu0 %v2829_v31, %s2660_s21  ;;  %947 = vmatprep.mubr.bf16.mxu1 %v2573_v62  ;;  %v2564_v62 = vld [vmem:[%s3445_s1 + $0x90] ss:$8 sps:$4 sm:$0xff]  }
  0x42   : > { %587 = vrot.lane.b32.xlu1 %v2833_v33, %s2660_s21 }
  0x45   : > { %553 = vrot.lane.b32.xlu0 %v2844_v36, %s2660_s21 }
  0x46   : > { %555 = vrot.lane.b32.xlu1 %v2849_v37, %s2660_s21 }
  0x48   : > { %948 = vmatmul.mubr.bf16.gmra.mrb[8].mxu1 %v2576_v63 }
  0x49   : > { %589 = vrot.lane.b32.xlu0 %v2856_v40, %s2660_s21 }
  0x4a   : > { %591 = vrot.lane.b32.xlu1 %v2861_v41, %s2660_s21 }
  0x4d   : > { %557 = vrot.lane.b32.xlu0 %v2871_v45, %s2660_s21 }
  0x4e   : > { %559 = vrot.lane.b32.xlu1 %v2876_v46, %s2660_s21 }
  0x51   : > { %1125 = vrot.lane.b32.xlu0 %v2706_v0, %s2661_s28 }
  0x52   : > { %1127 = vrot.lane.b32.xlu1 %v2714_v2, %s2661_s28 }
  0x55   : > { %1093 = vrot.lane.b32.xlu0 %v2709_v1, %s2661_s28 }
  0x56   : > { %1095 = vrot.lane.b32.xlu1 %v2719_v3, %s2661_s28 }
  0x59   : > { %1432 = vrot.lane.b32.xlu0 %v2706_v0, %s2662_s29 }
  0x5a   : > { %1434 = vrot.lane.b32.xlu1 %v2714_v2, %s2662_s29 }
  0x5d   : > { %1400 = vrot.lane.b32.xlu0 %v2709_v1, %s2662_s29 }
  0x5e   : > { %1402 = vrot.lane.b32.xlu1 %v2719_v3, %s2662_s29 }
  0x61   : > { %1129 = vrot.lane.b32.xlu0 %v2724_v4, %s2661_s28 }
  0x62   : > { %1131 = vrot.lane.b32.xlu1 %v2729_v5, %s2661_s28 }
  0x65   : > { %1097 = vrot.lane.b32.xlu0 %v2734_v6, %s2661_s28 }
  0x66   : > { %1099 = vrot.lane.b32.xlu1 %v2739_v7, %s2661_s28 }
  0x69   : > { %1436 = vrot.lane.b32.xlu0 %v2724_v4, %s2662_s29 }
  0x6a   : > { %1438 = vrot.lane.b32.xlu1 %v2729_v5, %s2662_s29 }
  0x6d   : > { %1404 = vrot.lane.b32.xlu0 %v2734_v6, %s2662_s29  ;;  %v2579_v6 = vld [vmem:[%s3445_s1 + $0x34] ss:$8 sps:$4 sm:$0xff]  }
  0x6e   : > { %1406 = vrot.lane.b32.xlu1 %v2739_v7, %s2662_s29  ;;  %v2582_v7 = vld [vmem:[%s3445_s1 + $0x30] ss:$8 sps:$4 sm:$0xff]   ;;  %955 = vmatprep.mubr.bf16.mxu1 %v2579_v6 }
  0x6f   : > { %956 = vmatmul.mubr.bf16.gmra.mrb[12].mxu1 %v2582_v7 }
  0x71   : > { %1133 = vrot.lane.b32.xlu0 %v2744_v8, %s2661_s28 }
  0x72   : > { %1135 = vrot.lane.b32.xlu1 %v2749_v9, %s2661_s28 }
  0x75   : > { %1101 = vrot.lane.b32.xlu0 %v2754_v10, %s2661_s28 }
  0x76   : > { %1103 = vrot.lane.b32.xlu1 %v2759_v11, %s2661_s28 }
  0x79   : > { %1440 = vrot.lane.b32.xlu0 %v2744_v8, %s2662_s29 }
  0x7a   : > { %1442 = vrot.lane.b32.xlu1 %v2749_v9, %s2662_s29 }
  0x7d   : > { %1408 = vrot.lane.b32.xlu0 %v2754_v10, %s2662_s29 }
  0x7e   : > { %1410 = vrot.lane.b32.xlu1 %v2759_v11, %s2662_s29 }
  0x81   : > { %1137 = vrot.lane.b32.xlu0 %v2762_v12, %s2661_s28 }
  0x82   : > { %1139 = vrot.lane.b32.xlu1 %v2765_v13, %s2661_s28 }
  0x83   : > { %v562_v51 = vpop.permute.xlu0 %561 }
  0x84   : > { %v530_v52 = vpop.permute.xlu1 %529 }
  0x85   : > { %1105 = vrot.lane.b32.xlu0 %v2772_v14, %s2661_s28 }
  0x86   : > { %1107 = vrot.lane.b32.xlu1 %v2775_v15, %s2661_s28 }
  0x87   : > { %v564_v55 = vpop.permute.xlu0 %563 }
  0x88   : > { %v532_v56 = vpop.permute.xlu1 %531  ;;  %v602_v57 = vsel %vm593_vm0, %v562_v51, %v564_v55 }
  0x89   : > { %2222 = vmatprep.subr.bf16.mxu0 %v602_v57  ;;  %1444 = vrot.lane.b32.xlu0 %v2762_v12, %s2662_s29  ;;  %v594_v58 = vsel %vm593_vm0, %v530_v52, %v532_v56  ;;  %v2562_v56 = vld [vmem:[%s3445_s1 + $0x94] ss:$8 sps:$4 sm:$0xff]  }
  0x8a   : > { %1446 = vrot.lane.b32.xlu1 %v2765_v13, %s2662_s29  ;;  %2223 = vmatpush3.bf16.msra.mxu0 %v594_v58 }
  0x8b   : > { %v566_v59 = vpop.permute.xlu0 %565 }
  0x8c   : > { %v568_v60 = vpop.permute.xlu1 %567 }
  0x8d   : > { %1412 = vrot.lane.b32.xlu0 %v2772_v14, %s2662_s29  ;;  %v603_v61 = vsel %vm593_vm0, %v566_v59, %v568_v60  ;;  %v2585_v14 = vld [vmem:[%s3445_s1 + $0x44] ss:$8 sps:$4 sm:$0xff]  }
  0x8e   : > { %1414 = vrot.lane.b32.xlu1 %v2775_v15, %s2662_s29  ;;  %2224 = vmatprep.subr.bf16.mxu0 %v603_v61  ;;  %v2588_v15 = vld [vmem:[%s3445_s1 + $0x40] ss:$8 sps:$4 sm:$0xff]  }
  0x8f   : > { %v534_v0 = vpop.permute.xlu0 %533  ;;  %963 = vmatprep.mubr.bf16.mxu1 %v2585_v14 }
  0x90   : > { %v536_v1 = vpop.permute.xlu1 %535  ;;  %964 = vmatmul.mubr.bf16.gmra.mrb[16].mxu1 %v2588_v15 }
  0x91   : > { %1141 = vrot.lane.b32.xlu0 %v2782_v16, %s2661_s28  ;;  %v595_v2 = vsel %vm593_vm0, %v534_v0, %v536_v1  ;;  %971 = vmatprep.mubr.bf16.mxu1 %v2591_v22  ;;  %v2565_v0 = vld [vmem:[%s3445_s1 + $0xa4] ss:$8 sps:$4 sm:$0xff]  }
  0x92   : > { %1143 = vrot.lane.b32.xlu1 %v2785_v17, %s2661_s28  ;;  %2225 = vmatpush3.bf16.msra.mxu0 %v595_v2 }
  0x93   : > { %v570_v3 = vpop.permute.xlu0 %569 }
  0x94   : > { %v572_v4 = vpop.permute.xlu1 %571 }
  0x95   : > { %1109 = vrot.lane.b32.xlu0 %v2793_v19, %s2661_s28  ;;  %v604_v5 = vsel %vm593_vm0, %v570_v3, %v572_v4  ;;  %v2569_v4 = vld [vmem:[%s3445_s1 + $0xa0] ss:$8 sps:$4 sm:$0xff]  }
  0x96   : > { %1111 = vrot.lane.b32.xlu1 %v2797_v21, %s2661_s28  ;;  %2226 = vmatprep.subr.bf16.mxu0 %v604_v5 }
  0x97   : > { %v538_v8 = vpop.permute.xlu0 %537 }
  0x98   : > { %v540_v9 = vpop.permute.xlu1 %539  ;;  %972 = vmatmul.mubr.bf16.gmra.mrb[20].mxu1 %v2594_v24 }
  0x99   : > { %1448 = vrot.lane.b32.xlu0 %v2782_v16, %s2662_s29  ;;  %v596_v10 = vsel %vm593_vm0, %v538_v8, %v540_v9  ;;  %979 = vmatprep.mubr.bf16.mxu1 %v2597_v38 }
  0x9a   : > { %1450 = vrot.lane.b32.xlu1 %v2785_v17, %s2662_s29  ;;  %2227 = vmatpush3.bf16.msra.mxu0 %v596_v10  ;;  %v2575_v10 = vld [vmem:[%s3445_s1 + $0xb0] ss:$8 sps:$4 sm:$0xff]  }
  0x9b   : > { %v574_v11 = vpop.permute.xlu0 %573 }
  0x9c   : > { %v576_v12 = vpop.permute.xlu1 %575 }
  0x9d   : > { %1416 = vrot.lane.b32.xlu0 %v2793_v19, %s2662_s29  ;;  %v605_v13 = vsel %vm593_vm0, %v574_v11, %v576_v12  ;;  %v2577_v11 = vld [vmem:[%s3445_s1 + $0xc4] ss:$8 sps:$4 sm:$0xff]  }
  0x9e   : > { %1418 = vrot.lane.b32.xlu1 %v2797_v21, %s2662_s29  ;;  %2228 = vmatprep.subr.bf16.mxu0 %v605_v13 }
  0x9f   : > { %v542_v16 = vpop.permute.xlu0 %541 }
  0xa0   : > { %v544_v17 = vpop.permute.xlu1 %543 }
  0xa1   : > { %1145 = vrot.lane.b32.xlu0 %v2805_v23, %s2661_s28  ;;  %v597_v18 = vsel %vm593_vm0, %v542_v16, %v544_v17 }
  0xa2   : > { %1147 = vrot.lane.b32.xlu1 %v2809_v25, %s2661_s28  ;;  %2229 = vmatpush3.bf16.msra.mxu0 %v597_v18  ;;  %v2581_v18 = vld [vmem:[%s3445_s1 + $0xc0] ss:$8 sps:$4 sm:$0xff]  }
  0xa3   : > { %v578_v19 = vpop.permute.xlu0 %577 }
  0xa4   : > { %v580_v20 = vpop.permute.xlu1 %579 }
  0xa5   : > { %1113 = vrot.lane.b32.xlu0 %v2817_v27, %s2661_s28  ;;  %v606_v21 = vsel %vm593_vm0, %v578_v19, %v580_v20  ;;  %v2583_v19 = vld [vmem:[%s3445_s1 + $0xd4] ss:$8 sps:$4 sm:$0xff]  }
  0xa6   : > { %1115 = vrot.lane.b32.xlu1 %v2821_v29, %s2661_s28  ;;  %2230 = vmatprep.subr.bf16.mxu0 %v606_v21 }
  0xa7   : > { %v546_v26 = vpop.permute.xlu0 %545 }
  0xa8   : > { %v548_v28 = vpop.permute.xlu1 %547 }
  0xa9   : > { %1452 = vrot.lane.b32.xlu0 %v2805_v23, %s2662_s29  ;;  %v598_v30 = vsel %vm593_vm0, %v546_v26, %v548_v28  ;;  %v2600_v23 = vld [vmem:[%s3445_s1 + $0x60] ss:$8 sps:$4 sm:$0xff]  }
  0xaa   : > { %1454 = vrot.lane.b32.xlu1 %v2809_v25, %s2662_s29  ;;  %2231 = vmatpush3.bf16.msra.mxu0 %v598_v30  ;;  %v2587_v30 = vld [vmem:[%s3445_s1 + $0xd0] ss:$8 sps:$4 sm:$0xff]  }
  0xab   : > { %v582_v32 = vpop.permute.xlu0 %581  ;;  %980 = vmatmul.mubr.bf16.gmra.mrb[24].mxu1 %v2600_v23 }
  0xac   : > { %v584_v34 = vpop.permute.xlu1 %583  ;;  %987 = vmatprep.mubr.bf16.mxu1 %v2604_v44 }
  0xad   : > { %1420 = vrot.lane.b32.xlu0 %v2817_v27, %s2662_s29  ;;  %v607_v35 = vsel %vm593_vm0, %v582_v32, %v584_v34  ;;  %v2589_v32 = vld [vmem:[%s3445_s1 + $0xe4] ss:$8 sps:$4 sm:$0xff]  }
  0xae   : > { %1422 = vrot.lane.b32.xlu1 %v2821_v29, %s2662_s29  ;;  %2232 = vmatprep.subr.bf16.mxu0 %v607_v35 }
  0xaf   : > { %v550_v25 = vpop.permute.xlu0 %549 }
  0xb0   : > { %v552_v39 = vpop.permute.xlu1 %551 }
  0xb1   : > { %1149 = vrot.lane.b32.xlu0 %v2829_v31, %s2661_s28  ;;  %v599_v27 = vsel %vm593_vm0, %v550_v25, %v552_v39 }
  0xb2   : > { %1151 = vrot.lane.b32.xlu1 %v2833_v33, %s2661_s28  ;;  %2233 = vmatpush3.bf16.msra.mxu0 %v599_v27  ;;  %v2593_v27 = vld [vmem:[%s3445_s1 + $0xe0] ss:$8 sps:$4 sm:$0xff]  }
  0xb3   : > { %v586_v42 = vpop.permute.xlu0 %585  ;;  %988 = vmatmul.mubr.bf16.gmra.mrb[28].mxu1 %v2606_v47 }
  0xb4   : > { %v588_v29 = vpop.permute.xlu1 %587 }
  0xb5   : > { %1117 = vrot.lane.b32.xlu0 %v2844_v36, %s2661_s28  ;;  %v608_v43 = vsel %vm593_vm0, %v586_v42, %v588_v29  ;;  %v2595_v42 = vld [vmem:[%s3445_s1 + $0xf4] ss:$8 sps:$4 sm:$0xff]  }
  0xb6   : > { %1119 = vrot.lane.b32.xlu1 %v2849_v37, %s2661_s28  ;;  %2234 = vmatprep.subr.bf16.mxu0 %v608_v43 }
  0xb7   : > { %v554_v48 = vpop.permute.xlu0 %553 }
  0xb8   : > { %v556_v49 = vpop.permute.xlu1 %555 }
  0xb9   : > { %1456 = vrot.lane.b32.xlu0 %v2829_v31, %s2662_s29  ;;  %v600_v50 = vsel %vm593_vm0, %v554_v48, %v556_v49 }
  0xba   : > { %1458 = vrot.lane.b32.xlu1 %v2833_v33, %s2662_s29  ;;  %2235 = vmatpush3.bf16.msra.mxu0 %v600_v50  ;;  %v2553_v33 = vld [vmem:[%s3445_s1 + $0x80] ss:$8 sps:$4 sm:$0xff]   ;;  %v2599_v50 = vld [vmem:[%s3445_s1 + $0xf0] ss:$8 sps:$4 sm:$0xff]  }
  0xbb   : > { %v590_v51 = vpop.permute.xlu0 %589 }
  0xbc   : > { %v592_v52 = vpop.permute.xlu1 %591 }
  0xbd   : > { %1424 = vrot.lane.b32.xlu0 %v2844_v36, %s2662_s29  ;;  %v609_v53 = vsel %vm593_vm0, %v590_v51, %v592_v52  ;;  %v2611_v36 = vld [vmem:[%s3445_s1 + $0x184] ss:$8 sps:$4 sm:$0xff]  }
  0xbe   : > { %1426 = vrot.lane.b32.xlu1 %v2849_v37, %s2662_s29  ;;  %2236 = vmatprep.subr.bf16.mxu0 %v609_v53  ;;  %v2603_v51 = vld [vmem:[%s3445_s1 + $0x104] ss:$8 sps:$4 sm:$0xff]  }
  0xbf   : > { %v558_v54 = vpop.permute.xlu0 %557  ;;  %1529 = vmatprep.mubr.bf16.mxu1 %v2611_v36 }
  0xc0   : > { %v560_v55 = vpop.permute.xlu1 %559 }
  0xc1   : > { %1153 = vrot.lane.b32.xlu0 %v2856_v40, %s2661_s28  ;;  %v601_v31 = vsel %vm593_vm0, %v558_v54, %v560_v55 }
  0xc2   : > { %1155 = vrot.lane.b32.xlu1 %v2861_v41, %s2661_s28  ;;  %2237 = vmatpush3.bf16.msra.mxu0 %v601_v31 }
  0xc3   : > { %v1126_v37 = vpop.permute.xlu0 %1125 }
  0xc4   : > { %v1128_v57 = vpop.permute.xlu1 %1127 }
  0xc5   : > { %1121 = vrot.lane.b32.xlu0 %v2871_v45, %s2661_s28  ;;  %v1166_v58 = vsel %vm1157_vm1, %v1126_v37, %v1128_v57  ;;  %659 = vmatmul.mubr.bf16.vlgmr.msra.gmra.mrb[0].mxu0 %v2553_v33 }
  0xc6   : > { %1123 = vrot.lane.b32.xlu1 %v2876_v46, %s2661_s28  ;;  %2350 = vmatprep.subr.bf16.mxu0 %v1166_v58  ;;  %s3377_s28 = scalar_lea.vmem %s3448_s4, %s2157_s12 }
  0xc7   : > { %v1094_v59 = vpop.permute.xlu0 %1093  ;;  %666 = vmatprep.mubr.bf16.mxu0 %v2562_v56 }
  0xc8   : > { %v1096_v60 = vpop.permute.xlu1 %1095 }
  0xc9   : > { %v1158_v61 = vsel %vm1157_vm1, %v1094_v59, %v1096_v60  ;;  %1460 = vrot.lane.b32.xlu0 %v2856_v40, %s2662_s29 }
  0xca   : > { %1462 = vrot.lane.b32.xlu1 %v2861_v41, %s2662_s29  ;;  %2351 = vmatpush3.bf16.msra.mxu0 %v1158_v61 }
  0xcb   : > { %v1433_v63 = vpop.permute.xlu0 %1432 }
  0xcc   : > { %v1435_v1 = vpop.permute.xlu1 %1434 }
  0xcd   : > { %1428 = vrot.lane.b32.xlu0 %v2871_v45, %s2662_s29  ;;  %v1473_v40 = vsel %vm1464_vm2, %v1433_v63, %v1435_v1  ;;  %667 = vmatmul.mubr.bf16.gmra.mrb[4].mxu0 %v2564_v62  ;;  %v2571_v45 = vld [vmem:[%s3445_s1 + $0xb4] ss:$8 sps:$4 sm:$0xff]  }
  0xce   : > { %1430 = vrot.lane.b32.xlu1 %v2876_v46, %s2662_s29  ;;  %2414 = vmatprep.subr.bf16.mxu1 %v1473_v40 }
  0xcf   : > { %v1401_v2 = vpop.permute.xlu0 %1400  ;;  %674 = vmatprep.mubr.bf16.mxu0 %v2565_v0 }
  0xd0   : > { %v1403_v41 = vpop.permute.xlu1 %1402 }
  0xd1   : > { %v1465_v3 = vsel %vm1464_vm2, %v1401_v2, %v1403_v41 }
  0xd2   : > { %2415 = vmatpush3.bf16.msra.mxu1 %v1465_v3 }
  0xd3   : > { %v1130_v5 = vpop.permute.xlu0 %1129 }
  0xd4   : > { %v1132_v6 = vpop.permute.xlu1 %1131 }
  0xd5   : > { %v1167_v7 = vsel %vm1157_vm1, %v1130_v5, %v1132_v6  ;;  %675 = vmatmul.mubr.bf16.gmra.mrb[8].mxu0 %v2569_v4 }
  0xd6   : > { %2352 = vmatprep.subr.bf16.mxu0 %v1167_v7  ;;  %682 = vmatprep.mubr.bf16.mxu0 %v2571_v45 }
  0xd7   : > { %v1098_v46 = vpop.permute.xlu0 %1097 }
  0xd8   : > { %v1100_v8 = vpop.permute.xlu1 %1099 }
  0xd9   : > { %v1159_v9 = vsel %vm1157_vm1, %v1098_v46, %v1100_v8 }
  0xda   : > { %2353 = vmatpush3.bf16.msra.mxu0 %v1159_v9 }
  0xdb   : > { %v1437_v12 = vpop.permute.xlu0 %1436 }
  0xdc   : > { %v1439_v13 = vpop.permute.xlu1 %1438 }
  0xdd   : > { %v1474_v14 = vsel %vm1464_vm2, %v1437_v12, %v1439_v13  ;;  %683 = vmatmul.mubr.bf16.gmra.mrb[12].mxu0 %v2575_v10 }
  0xde   : > { %2416 = vmatprep.subr.bf16.mxu1 %v1474_v14  ;;  %690 = vmatprep.mubr.bf16.mxu0 %v2577_v11 }
  0xdf   : > { %v1405_v15 = vpop.permute.xlu0 %1404 }
  0xe0   : > { %v1407_v16 = vpop.permute.xlu1 %1406 }
  0xe1   : > { %v1466_v17 = vsel %vm1464_vm2, %v1405_v15, %v1407_v16 }
  0xe2   : > { %2417 = vmatpush3.bf16.msra.mxu1 %v1466_v17 }
  0xe3   : > { %v1134_v20 = vpop.permute.xlu0 %1133 }
  0xe4   : > { %v1136_v21 = vpop.permute.xlu1 %1135 }
  0xe5   : > { %v1168_v22 = vsel %vm1157_vm1, %v1134_v20, %v1136_v21  ;;  %691 = vmatmul.mubr.bf16.gmra.mrb[16].mxu0 %v2581_v18 }
  0xe6   : > { %2354 = vmatprep.subr.bf16.mxu0 %v1168_v22  ;;  %698 = vmatprep.mubr.bf16.mxu0 %v2583_v19 }
  0xe7   : > { %v1102_v24 = vpop.permute.xlu0 %1101 }
  0xe8   : > { %v1104_v26 = vpop.permute.xlu1 %1103 }
  0xe9   : > { %v1160_v28 = vsel %vm1157_vm1, %v1102_v24, %v1104_v26 }
  0xea   : > { %2355 = vmatpush3.bf16.msra.mxu0 %v1160_v28 }
  0xeb   : > { %v1441_v34 = vpop.permute.xlu0 %1440 }
  0xec   : > { %v1443_v35 = vpop.permute.xlu1 %1442 }
  0xed   : > { %v1475_v38 = vsel %vm1464_vm2, %v1441_v34, %v1443_v35  ;;  %699 = vmatmul.mubr.bf16.gmra.mrb[20].mxu0 %v2587_v30 }
  0xee   : > { %2418 = vmatprep.subr.bf16.mxu1 %v1475_v38  ;;  %706 = vmatprep.mubr.bf16.mxu0 %v2589_v32 }
  0xef   : > { %v1409_v23 = vpop.permute.xlu0 %1408 }
  0xf0   : > { %v1411_v25 = vpop.permute.xlu1 %1410 }
  0xf1   : > { %v1467_v39 = vsel %vm1464_vm2, %v1409_v23, %v1411_v25 }
  0xf2   : > { %2419 = vmatpush3.bf16.msra.mxu1 %v1467_v39 }
  0xf3   : > { %v1138_v29 = vpop.permute.xlu0 %1137 }
  0xf4   : > { %v1140_v43 = vpop.permute.xlu1 %1139 }
  0xf5   : > { %v1169_v44 = vsel %vm1157_vm1, %v1138_v29, %v1140_v43  ;;  %707 = vmatmul.mubr.bf16.gmra.mrb[24].mxu0 %v2593_v27  ;;  %v2601_v27 = vld [vmem:[%s3445_s1 + $0x100] ss:$8 sps:$4 sm:$0xff]  }
  0xf6   : > { %2356 = vmatprep.subr.bf16.mxu0 %v1169_v44  ;;  %714 = vmatprep.mubr.bf16.mxu0 %v2595_v42  ;;  %v2607_v42 = vld [vmem:[%s3445_s1 + $0x114] ss:$8 sps:$4 sm:$0xff]  }
  0xf7   : > { %v1106_v47 = vpop.permute.xlu0 %1105 }
  0xf8   : > { %v1108_v48 = vpop.permute.xlu1 %1107 }
  0xf9   : > { %v1161_v49 = vsel %vm1157_vm1, %v1106_v47, %v1108_v48 }
  0xfa   : > { %2357 = vmatpush3.bf16.msra.mxu0 %v1161_v49 }
  0xfb   : > { %v1445_v52 = vpop.permute.xlu0 %1444 }
  0xfc   : > { %v1447_v53 = vpop.permute.xlu1 %1446 }
  0xfd   : > { %v1476_v54 = vsel %vm1464_vm2, %v1445_v52, %v1447_v53  ;;  %715 = vmatmul.mubr.bf16.gmra.mrb[28].mxu0 %v2599_v50  ;;  %v2609_v50 = vld [vmem:[%s3445_s1 + $0x180] ss:$8 sps:$4 sm:$0xff]   ;;  %v2613_v52 = vld [vmem:[%s3445_s1 + $0x124] ss:$8 sps:$4 sm:$0xff]   ;;  %v2615_v53 = vld [vmem:[%s3445_s1 + $0x194] ss:$8 sps:$4 sm:$0xff]  }
  0xfe   : > { %2420 = vmatprep.subr.bf16.mxu1 %v1476_v54  ;;  %1222 = vmatprep.mubr.bf16.mxu0 %v2603_v51  ;;  %v2612_v51 = vld [vmem:[%s3445_s1 + $0x110] ss:$8 sps:$4 sm:$0xff]   ;;  %v2617_v54 = vld [vmem:[%s3445_s1 + $0x120] ss:$8 sps:$4 sm:$0xff]  }
  0xff   : > { %v1413_v55 = vpop.permute.xlu0 %1412 }
 0x100   : > { %v1415_v31 = vpop.permute.xlu1 %1414 }
 0x101   : > { %v1468_v33 = vsel %vm1464_vm2, %v1413_v55, %v1415_v31  ;;  %v2618_v55 = vld [vmem:[%s3445_s1 + $0x190] ss:$8 sps:$4 sm:$0xff]   ;;  %v2619_v31 = vld [vmem:[%s3445_s1 + $0x134] ss:$8 sps:$4 sm:$0xff]  }
 0x102   : > { %2421 = vmatpush3.bf16.msra.mxu1 %v1468_v33  ;;  %v2621_v33 = vld [vmem:[%s3445_s1 + $0x1a4] ss:$8 sps:$4 sm:$0xff]  }
 0x103   : > { %v1142_v36 = vpop.permute.xlu0 %1141 }
 0x104   : > { %v1144_v37 = vpop.permute.xlu1 %1143 }
 0x105   : > { %v1170_v56 = vsel %vm1157_vm1, %v1142_v36, %v1144_v37  ;;  %v2623_v36 = vld [vmem:[%s3445_s1 + $0x130] ss:$8 sps:$4 sm:$0xff]   ;;  %v2624_v37 = vld [vmem:[%s3445_s1 + $0x1a0] ss:$8 sps:$4 sm:$0xff]  }
 0x106   : > { %2358 = vmatprep.subr.bf16.mxu0 %v1170_v56  ;;  %v2625_v56 = vld [vmem:[%s3445_s1 + $0x144] ss:$8 sps:$4 sm:$0xff]  }
 0x107   : > { %v1110_v57 = vpop.permute.xlu0 %1109 }
 0x108   : > { %v1112_v58 = vpop.permute.xlu1 %1111 }
 0x109   : > { %v1162_v59 = vsel %vm1157_vm1, %v1110_v57, %v1112_v58  ;;  %v2627_v57 = vld [vmem:[%s3445_s1 + $0x1b4] ss:$8 sps:$4 sm:$0xff]   ;;  %v2629_v58 = vld [vmem:[%s3445_s1 + $0x140] ss:$8 sps:$4 sm:$0xff]  }
 0x10a   : > { %2359 = vmatpush3.bf16.msra.mxu0 %v1162_v59  ;;  %v2630_v59 = vld [vmem:[%s3445_s1 + $0x1b0] ss:$8 sps:$4 sm:$0xff]  }
 0x10b   : > { %v1449_v60 = vpop.permute.xlu0 %1448  ;;  %v2302_v13 = vpop.f32.mrb[0].mxu1 }
 0x10c   : > { %v1451_v61 = vpop.permute.xlu1 %1450  ;;  %v2303_v14 = vpop.f32.mrb[1].mxu1 }
 0x10d   : > { %v1477_v62 = vsel %vm1464_vm2, %v1449_v60, %v1451_v61  ;;  %v3152_v16 = vadd.f32 %v2303_v14, %v2302_v13  ;;  %v2305_v17 = vpop.f32.mrb[2].mxu1  ;;  %v2631_v60 = vld [vmem:[%s3445_s1 + $0x154] ss:$8 sps:$4 sm:$0xff]   ;;  %v2633_v61 = vld [vmem:[%s3445_s1 + $0x1c4] ss:$8 sps:$4 sm:$0xff]  }
 0x10e   : > { %2422 = vmatprep.subr.bf16.mxu1 %v1477_v62  ;;  %v2306_v19 = vpop.f32.mrb[3].mxu1  ;;  %v2645_v13 = vld [vmem:[%s3445_s1 + $0x1e4] ss:$8 sps:$4 sm:$0xff]  }
 0x10f   : > { %v1417_v63 = vpop.permute.xlu0 %1416  ;;  %v3155_v21 = vadd.f32 %v2306_v19, %v2305_v17 }
 0x110   : > { %v1419_v0 = vpop.permute.xlu1 %1418 }
 0x111   : > { %v1469_v1 = vsel %vm1464_vm2, %v1417_v63, %v1419_v0 }
 0x112   : > { %2423 = vmatpush3.bf16.msra.mxu1 %v1469_v1 }
 0x113   : > { %v1146_v40 = vpop.permute.xlu0 %1145  ;;  %v2308_v62 = vpop.f32.mrb[4].mxu1 }
 0x114   : > { %v1148_v2 = vpop.permute.xlu1 %1147  ;;  %v2309_v63 = vpop.f32.mrb[5].mxu1 }
 0x115   : > { %v1171_v41 = vsel %vm1157_vm1, %v1146_v40, %v1148_v2  ;;  %v3217_v0 = vadd.f32 %v2309_v63, %v2308_v62  ;;  %v2311_v1 = vpop.f32.mrb[6].mxu1 }
 0x116   : > { %2360 = vmatprep.subr.bf16.mxu0 %v1171_v41  ;;  %v2312_v40 = vpop.f32.mrb[7].mxu1  ;;  %v2635_v41 = vld [vmem:[%s3445_s1 + $0x150] ss:$8 sps:$4 sm:$0xff]  }
 0x117   : > { %v1114_v3 = vpop.permute.xlu0 %1113  ;;  %v3219_v2 = vadd.f32 %v2312_v40, %v2311_v1 }
 0x118   : > { %v1116_v4 = vpop.permute.xlu1 %1115 }
 0x119   : > { %v1163_v45 = vsel %vm1157_vm1, %v1114_v3, %v1116_v4  ;;  %v2636_v3 = vld [vmem:[%s3445_s1 + $0x1c0] ss:$8 sps:$4 sm:$0xff]   ;;  %v2637_v4 = vld [vmem:[%s3445_s1 + $0x164] ss:$8 sps:$4 sm:$0xff]  }
 0x11a   : > { %2361 = vmatpush3.bf16.msra.mxu0 %v1163_v45  ;;  %v2639_v45 = vld [vmem:[%s3445_s1 + $0x1d4] ss:$8 sps:$4 sm:$0xff]  }
 0x11b   : > { %v1453_v5 = vpop.permute.xlu0 %1452 }
 0x11c   : > { %v1455_v6 = vpop.permute.xlu1 %1454 }
 0x11d   : > { %v1478_v7 = vsel %vm1464_vm2, %v1453_v5, %v1455_v6  ;;  %v2314_v5 = vpop.f32.mrb[8].mxu1 }
 0x11e   : > { %2424 = vmatprep.subr.bf16.mxu1 %v1478_v7  ;;  %v2315_v6 = vpop.f32.mrb[9].mxu1 }
 0x11f   : > { %v1421_v46 = vpop.permute.xlu0 %1420  ;;  %v3233_v7 = vadd.f32 %v2315_v6, %v2314_v5 }
 0x120   : > { %v1423_v8 = vpop.permute.xlu1 %1422 }
 0x121   : > { %v1470_v9 = vsel %vm1464_vm2, %v1421_v46, %v1423_v8  ;;  %v2317_v46 = vpop.f32.mrb[10].mxu1 }
 0x122   : > { %2425 = vmatpush3.bf16.msra.mxu1 %v1470_v9  ;;  %v2318_v8 = vpop.f32.mrb[11].mxu1 }
 0x123   : > { %v1150_v10 = vpop.permute.xlu0 %1149  ;;  %v3235_v9 = vadd.f32 %v2318_v8, %v2317_v46 }
 0x124   : > { %v1152_v11 = vpop.permute.xlu1 %1151 }
 0x125   : > { %v1172_v12 = vsel %vm1157_vm1, %v1150_v10, %v1152_v11  ;;  %v2641_v10 = vld [vmem:[%s3445_s1 + $0x160] ss:$8 sps:$4 sm:$0xff]   ;;  %v2642_v11 = vld [vmem:[%s3445_s1 + $0x1d0] ss:$8 sps:$4 sm:$0xff]  }
 0x126   : > { %2362 = vmatprep.subr.bf16.mxu0 %v1172_v12  ;;  %v2643_v12 = vld [vmem:[%s3445_s1 + $0x174] ss:$8 sps:$4 sm:$0xff]  }
 0x127   : > { %v1118_v15 = vpop.permute.xlu0 %1117 }
 0x128   : > { %v1120_v18 = vpop.permute.xlu1 %1119 }
 0x129   : > { %v1164_v20 = vsel %vm1157_vm1, %v1118_v15, %v1120_v18 }
 0x12a   : > { %2363 = vmatpush3.bf16.msra.mxu0 %v1164_v20 }
 0x12b   : > { %v1457_v22 = vpop.permute.xlu0 %1456 }
 0x12c   : > { %v1459_v24 = vpop.permute.xlu1 %1458 }
 0x12d   : > { %v1479_v26 = vsel %vm1464_vm2, %v1457_v22, %v1459_v24  ;;  %v2647_v22 = vld [vmem:[%s3445_s1 + $0x170] ss:$8 sps:$4 sm:$0xff]   ;;  %v2648_v24 = vld [vmem:[%s3445_s1 + $0x1e0] ss:$8 sps:$4 sm:$0xff]  }
 0x12e   : > { %2426 = vmatprep.subr.bf16.mxu1 %v1479_v26  ;;  %v2649_v26 = vld [vmem:[%s3445_s1 + $0x1f4] ss:$8 sps:$4 sm:$0xff]  }
 0x12f   : > { %v1425_v28 = vpop.permute.xlu0 %1424 }
 0x130   : > { %v1427_v30 = vpop.permute.xlu1 %1426 }
 0x131   : > { %v1471_v32 = vsel %vm1464_vm2, %v1425_v28, %v1427_v30 }
 0x132   : > { %2427 = vmatpush3.bf16.msra.mxu1 %v1471_v32 }
 0x133   : > { %v1154_v34 = vpop.permute.xlu0 %1153 }
 0x134   : > { %v1156_v35 = vpop.permute.xlu1 %1155 }
 0x135   : > { %v1173_v38 = vsel %vm1157_vm1, %v1154_v34, %v1156_v35 }
 0x136   : > { %2364 = vmatprep.subr.bf16.mxu0 %v1173_v38 }
 0x137   : > { %v1122_v23 = vpop.permute.xlu0 %1121 }
 0x138   : > { %v1124_v25 = vpop.permute.xlu1 %1123 }
 0x139   : > { %v1165_v39 = vsel %vm1157_vm1, %v1122_v23, %v1124_v25  ;;  %v2651_v23 = vld [vmem:[%s3445_s1 + $0x1f0] ss:$8 sps:$4 sm:$0xff]  }
 0x13a   : > { %2365 = vmatpush3.bf16.msra.mxu0 %v1165_v39 }
 0x13b   : > { %v1461_v29 = vpop.permute.xlu0 %1460 }
 0x13c   : > { %v1463_v43 = vpop.permute.xlu1 %1462 }
 0x13d   : > { %1223 = vmatmul.mubr.bf16.vlgmr.msra.gmra.mrb[32].mxu0 %v2601_v27  ;;  %v1480_v44 = vsel %vm1464_vm2, %v1461_v29, %v1463_v43 }
 0x13e   : > { %2428 = vmatprep.subr.bf16.mxu1 %v1480_v44  ;;  %1230 = vmatprep.mubr.bf16.mxu0 %v2607_v42 }
 0x13f   : > { %v1429_v47 = vpop.permute.xlu0 %1428 }
 0x140   : > { %v1431_v48 = vpop.permute.xlu1 %1430 }
 0x141   : > { %v1472_v49 = vsel %vm1464_vm2, %v1429_v47, %v1431_v48 }
 0x142   : > { %2429 = vmatpush3.bf16.msra.mxu1 %v1472_v49  ;;  %v2320_v14 = vpop.f32.mrb[12].mxu1 }
 0x143   : > { %v2321_v15 = vpop.f32.mrb[13].mxu1 }
 0x144   : > { %v3249_v17 = vadd.f32 %v2321_v15, %v2320_v14  ;;  %v2323_v18 = vpop.f32.mrb[14].mxu1 }
 0x145   : > { %1231 = vmatmul.mubr.bf16.gmra.mrb[36].mxu0 %v2612_v51  ;;  %1530 = vmatmul.mubr.bf16.vlgmr.msra.gmra.mrb[32].mxu1 %v2609_v50  ;;  %v2324_v19 = vpop.f32.mrb[15].mxu1 }
 0x146   : > { %1238 = vmatprep.mubr.bf16.mxu0 %v2613_v52  ;;  %1537 = vmatprep.mubr.bf16.mxu1 %v2615_v53  ;;  %v3251_v20 = vadd.f32 %v2324_v19, %v2323_v18 }
 0x14d   : > { %1239 = vmatmul.mubr.bf16.gmra.mrb[40].mxu0 %v2617_v54  ;;  %1538 = vmatmul.mubr.bf16.gmra.mrb[36].mxu1 %v2618_v55 }
 0x14e   : > { %1246 = vmatprep.mubr.bf16.mxu0 %v2619_v31  ;;  %1545 = vmatprep.mubr.bf16.mxu1 %v2621_v33 }
 0x155   : > { %1247 = vmatmul.mubr.bf16.gmra.mrb[44].mxu0 %v2623_v36  ;;  %1546 = vmatmul.mubr.bf16.gmra.mrb[40].mxu1 %v2624_v37 }
 0x156   : > { %1254 = vmatprep.mubr.bf16.mxu0 %v2625_v56  ;;  %1553 = vmatprep.mubr.bf16.mxu1 %v2627_v57 }
 0x15d   : > { %1255 = vmatmul.mubr.bf16.gmra.mrb[48].mxu0 %v2629_v58  ;;  %1554 = vmatmul.mubr.bf16.gmra.mrb[44].mxu1 %v2630_v59 }
 0x15e   : > { %1262 = vmatprep.mubr.bf16.mxu0 %v2631_v60  ;;  %1561 = vmatprep.mubr.bf16.mxu1 %v2633_v61 }
 0x163   : > { %v2326_v28 = vpop.f32.mrb[16].mxu1 }
 0x164   : > { %v2327_v30 = vpop.f32.mrb[17].mxu1 }
 0x165   : > { %1263 = vmatmul.mubr.bf16.gmra.mrb[52].mxu0 %v2635_v41  ;;  %1562 = vmatmul.mubr.bf16.gmra.mrb[48].mxu1 %v2636_v3  ;;  %v2328_v32 = vadd.f32 %v2327_v30, %v2326_v28  ;;  %v2329_v34 = vpop.f32.mrb[18].mxu1 }
 0x166   : > { %1270 = vmatprep.mubr.bf16.mxu0 %v2637_v4  ;;  %1569 = vmatprep.mubr.bf16.mxu1 %v2639_v45  ;;  %v2330_v35 = vpop.f32.mrb[19].mxu1 }
 0x167   : > { %v2331_v38 = vadd.f32 %v2330_v35, %v2329_v34 }
 0x16b   : > { %v2332_v25 = vpop.f32.mrb[20].mxu1 }
 0x16c   : > { %v2333_v39 = vpop.f32.mrb[21].mxu1 }
 0x16d   : > { %1271 = vmatmul.mubr.bf16.gmra.mrb[56].mxu0 %v2641_v10  ;;  %1570 = vmatmul.mubr.bf16.gmra.mrb[52].mxu1 %v2642_v11  ;;  %v2334_v27 = vadd.f32 %v2333_v39, %v2332_v25  ;;  %v2335_v42 = vpop.f32.mrb[22].mxu1 }
 0x16e   : > { %1278 = vmatprep.mubr.bf16.mxu0 %v2643_v12  ;;  %1577 = vmatprep.mubr.bf16.mxu1 %v2645_v13  ;;  %v2336_v29 = vpop.f32.mrb[23].mxu1 }
 0x16f   : > { %v2337_v43 = vadd.f32 %v2336_v29, %v2335_v42 }
 0x175   : > { %1279 = vmatmul.mubr.bf16.gmra.mrb[60].mxu0 %v2647_v22  ;;  %1578 = vmatmul.mubr.bf16.gmra.mrb[56].mxu1 %v2648_v24 }
 0x176   : > { %1585 = vmatprep.mubr.bf16.mxu1 %v2649_v26 }
 0x17d   : > { %1586 = vmatmul.mubr.bf16.gmra.mrb[60].mxu1 %v2651_v23 }
 0x17e   : > { %v2338_v44 = vpop.f32.mrb[24].mxu1 }
 0x17f   : > { %v2339_v47 = vpop.f32.mrb[25].mxu1 }
 0x180   : > { %v3265_v48 = vadd.f32 %v2339_v47, %v2338_v44  ;;  %v2341_v49 = vpop.f32.mrb[26].mxu1 }
 0x181   : > { %v2342_v50 = vpop.f32.mrb[27].mxu1 }
 0x182   : > { %v2343_v51 = vadd.f32 %v2342_v50, %v2341_v49 }
 0x186   : > { %v2344_v52 = vpop.f32.mrb[28].mxu1 }
 0x187   : > { %v2345_v53 = vpop.f32.mrb[29].mxu1 }
 0x188   : > { %v2347_v54 = vpop.f32.mrb[30].mxu1  ;;  %v3267_v31 = vadd.f32 %v2345_v53, %v2344_v52 }
 0x189   : > { %v2348_v55 = vpop.f32.mrb[31].mxu1 }
 0x18a   : > { %v3269_v33 = vadd.f32 %v2348_v55, %v2347_v54 }
 0x198   : > { %v2238_v36 = vpop.f32.mrb[0].mxu0 }
 0x199   : > { %v2239_v37 = vpop.f32.mrb[1].mxu0 }
 0x19a   : > { %v2240_v56 = vadd.f32 %v2239_v37, %v2238_v36  ;;  %v2241_v57 = vpop.f32.mrb[2].mxu0 }
 0x19b   : > { %v2242_v58 = vpop.f32.mrb[3].mxu0 }
 0x19c   : > { %v3272_v59 = vadd.f32 %v3152_v16, %v2240_v56  ;;  %v2243_v60 = vadd.f32 %v2242_v58, %v2241_v57  ;;  %v1690_v58 = vlaneseq }
 0x19e   : > { %v3275_v61 = vadd.f32 %v3155_v21, %v2243_v60  ;;  %v1691_v60 = vand.u32 127, %v1690_v58 }
 0x1a0   : > { %v2244_v62 = vpop.f32.mrb[4].mxu0  ;;  %vm1709_vm7 = vcmp.lt.s32.totalorder %v1691_v60, 6 }
 0x1a1   : > { %v2245_v63 = vpop.f32.mrb[5].mxu0 }
 0x1a2   : > { %v2246_v1 = vadd.f32 %v2245_v63, %v2244_v62  ;;  %v2247_v40 = vpop.f32.mrb[6].mxu0 }
 0x1a3   : > { %v2248_v41 = vpop.f32.mrb[7].mxu0 }
 0x1a4   : > { %v3278_v3 = vadd.f32 %v3217_v0, %v2246_v1  ;;  %v2249_v4 = vadd.f32 %v2248_v41, %v2247_v40 }
 0x1a6   : > { %v3281_v45 = vadd.f32 %v3219_v2, %v2249_v4 }
 0x1a8   : > { %v2250_v5 = vpop.f32.mrb[8].mxu0 }
 0x1a9   : > { %v2251_v6 = vpop.f32.mrb[9].mxu0 }
 0x1aa   : > { %v2252_v16 = vadd.f32 %v2251_v6, %v2250_v5  ;;  %v2253_v46 = vpop.f32.mrb[10].mxu0 }
 0x1ab   : > { %v2254_v8 = vpop.f32.mrb[11].mxu0 }
 0x1ac   : > { %v3284_v21 = vadd.f32 %v3233_v7, %v2252_v16  ;;  %v2255_v10 = vadd.f32 %v2254_v8, %v2253_v46 }
 0x1ae   : > { %v3287_v11 = vadd.f32 %v3235_v9, %v2255_v10 }
 0x1b0   : > { %v2256_v12 = vpop.f32.mrb[12].mxu0 }
 0x1b1   : > { %v2257_v13 = vpop.f32.mrb[13].mxu0 }
 0x1b2   : > { %v2258_v0 = vadd.f32 %v2257_v13, %v2256_v12  ;;  %v2259_v14 = vpop.f32.mrb[14].mxu0 }
 0x1b3   : > { %v2260_v15 = vpop.f32.mrb[15].mxu0 }
 0x1b4   : > { %v3290_v2 = vadd.f32 %v3249_v17, %v2258_v0  ;;  %v2261_v18 = vadd.f32 %v2260_v15, %v2259_v14 }
 0x1b6   : > { %v3293_v19 = vadd.f32 %v3251_v20, %v2261_v18 }
 0x1b8   : > { %v2262_v22 = vpop.f32.mrb[16].mxu0 }
 0x1b9   : > { %v2263_v24 = vpop.f32.mrb[17].mxu0 }
 0x1ba   : > { %v2264_v7 = vadd.f32 %v2263_v24, %v2262_v22  ;;  %v2265_v26 = vpop.f32.mrb[18].mxu0 }
 0x1bb   : > { %v2266_v28 = vpop.f32.mrb[19].mxu0 }
 0x1bc   : > { %v3295_v30 = vadd.f32 %v2328_v32, %v2264_v7  ;;  %v2267_v9 = vadd.f32 %v2266_v28, %v2265_v26  ;;  %v2663_v26 = vmov 0.0  }
 0x1be   : > { %v3297_v34 = vadd.f32 %v2331_v38, %v2267_v9 }
 0x1c0   : > { %v2268_v35 = vpop.f32.mrb[20].mxu0 }
 0x1c1   : > { %v2269_v23 = vpop.f32.mrb[21].mxu0 }
 0x1c2   : > { %v2270_v25 = vadd.f32 %v2269_v23, %v2268_v35  ;;  %v2271_v39 = vpop.f32.mrb[22].mxu0 }
 0x1c3   : > { %v2272_v17 = vpop.f32.mrb[23].mxu0 }
 0x1c4   : > { %v3299_v42 = vadd.f32 %v2334_v27, %v2270_v25  ;;  %v2273_v29 = vadd.f32 %v2272_v17, %v2271_v39 }
 0x1c6   : > { %v3301_v20 = vadd.f32 %v2337_v43, %v2273_v29 }
 0x1c8   : > { %v2274_v44 = vpop.f32.mrb[24].mxu0 }
 0x1c9   : > { %v2275_v47 = vpop.f32.mrb[25].mxu0 }
 0x1ca   : > { %v2276_v49 = vadd.f32 %v2275_v47, %v2274_v44  ;;  %v2277_v50 = vpop.f32.mrb[26].mxu0 }
 0x1cb   : > { %v2278_v52 = vpop.f32.mrb[27].mxu0 }
 0x1cc   : > { %v3304_v32 = vadd.f32 %v3265_v48, %v2276_v49  ;;  %v2279_v38 = vadd.f32 %v2278_v52, %v2277_v50  ;;  %v3314_v62 = vmul.u32.u64.low 2863311531, %v1691_v60  ;;  %v3315_v48 = vmul.u32.u64.high 2863311531, %v1691_v60, %v3314_v62 }
 0x1ce   : > { %v3306_v53 = vadd.f32 %v2343_v51, %v2279_v38  ;;  %v1698_v51 = vshrl.u32 %v3315_v48, 1 }
 0x1d0   : > { %v2280_v54 = vpop.f32.mrb[28].mxu0  ;;  %v1699_v63 = vmul.u32 3, %v1698_v51 }
 0x1d1   : > { %v2281_v55 = vpop.f32.mrb[29].mxu0 }
 0x1d2   : > { %v2282_v36 = vadd.f32 %v2281_v55, %v2280_v54  ;;  %v2283_v37 = vpop.f32.mrb[30].mxu0  ;;  %v1700_v1 = vsub.s32 %v1691_v60, %v1699_v63 }
 0x1d3   : > { %v2284_v27 = vpop.f32.mrb[31].mxu0 }
 0x1d4   : > { %v2285_v56 = vadd.f32 %v2284_v27, %v2283_v37  ;;  %v3309_v43 = vadd.f32 %v3267_v31, %v2282_v36  ;;  %vm1703_vm3 = vcmp.ne.s32.totalorder %v1700_v1, 0  ;;  %vm1704_vm4 = vcmp.lt.s32.totalorder %v1700_v1, 0 }
 0x1d5   : > { %v1706_v40 = vadd.s32 3, %v1700_v1  ;;  %vm1705_vm5 = vmand %vm1704_vm4, %vm1703_vm3 }
 0x1d6   : > { %v3312_v57 = vadd.f32 %v3269_v33, %v2285_v56 }
 0x1d7   : > { %v1707_v6 = vsel %vm1705_vm5, %v1706_v40, %v1700_v1 }
 0x1d8   : > { %vm1708_vm6 = vcmp.lt.s32.totalorder %v1707_v6, 2 }
 0x1d9   : > { %vm1710_vm8 = vmand %vm1708_vm6, %vm1709_vm7 }
 0x1da   : > { %v3320_v28 = vsel %vm1710_vm8, 1.0, %v2663_v26 }
 0x210   : > { %v2366_v41 = vpop.f32.mrb[32].mxu0 }
 0x211   : > { %v2367_v4 = vpop.f32.mrb[33].mxu0 }
 0x212   : > { %v2368_v31 = vadd.f32 %v2367_v4, %v2366_v41  ;;  %v2369_v5 = vpop.f32.mrb[34].mxu0 }
 0x213   : > { %v2370_v33 = vpop.f32.mrb[35].mxu0 }
 0x214   : > { %v1287_v16 = vadd.f32 %v2368_v31, %v3272_v59  ;;  %v2371_v46 = vadd.f32 %v2370_v33, %v2369_v5 }
 0x216   : > { %v1288_v8 = vadd.f32 %v2371_v46, %v3275_v61 }
 0x218   : > { %v2372_v10 = vpop.f32.mrb[36].mxu0  ;;  %v2430_v12 = vpop.f32.mrb[32].mxu1 }
 0x219   : > { %v2373_v13 = vpop.f32.mrb[37].mxu0  ;;  %v2431_v0 = vpop.f32.mrb[33].mxu1 }
 0x21a   : > { %v2374_v14 = vadd.f32 %v2373_v13, %v2372_v10  ;;  %v2432_v15 = vadd.f32 %v2431_v0, %v2430_v12  ;;  %v2375_v18 = vpop.f32.mrb[38].mxu0  ;;  %v2433_v22 = vpop.f32.mrb[34].mxu1 }
 0x21b   : > { %v2376_v24 = vpop.f32.mrb[39].mxu0  ;;  %v2434_v7 = vpop.f32.mrb[35].mxu1 }
 0x21c   : > { %v1289_v59 = vadd.f32 %v2374_v14, %v3278_v3  ;;  %v1594_v9 = vadd.f32 %v2432_v15, %v1287_v16  ;;  %v2377_v35 = vadd.f32 %v2376_v24, %v2375_v18  ;;  %v2435_v61 = vadd.f32 %v2434_v7, %v2433_v22 }
 0x21e   : > { %v1290_v23 = vadd.f32 %v2377_v35, %v3281_v45  ;;  %v1595_v25 = vadd.f32 %v2435_v61, %v1288_v8  ;;  %v1713_v39 = vmul.f32 %v3320_v28, %v1594_v9 }
 0x220   : > { %v2178_v17 = vpack.c.bf16 %v1595_v25, %v1594_v9  ;;  %v2378_v29 = vpop.f32.mrb[40].mxu0  ;;  %v2436_v44 = vpop.f32.mrb[36].mxu1  ;;  %1729 = vadd.xlane.f32.xlu0 %v1713_v39  ;;  %v1714_v3 = vmul.f32 %v3320_v28, %v1595_v25  ;;  %v1778_v55 = vmul.f32 %v1713_v39, %v1594_v9 }
 0x221   : > { %v2379_v47 = vpop.f32.mrb[41].mxu0  ;;  %v2437_v49 = vpop.f32.mrb[37].mxu1 }
 0x222   : > { %2179 = vst [vmem:[%s3329_s11] sm:$0xff] %v2178_v17   ;;  %v2380_v50 = vadd.f32 %v2379_v47, %v2378_v29  ;;  %v2438_v45 = vadd.f32 %v2437_v49, %v2436_v44  ;;  %v2381_v52 = vpop.f32.mrb[42].mxu0  ;;  %v2439_v38 = vpop.f32.mrb[38].mxu1  ;;  %1731 = vadd.xlane.f32.xlu1 %v1714_v3  ;;  %v1779_v54 = vmul.f32 %v1714_v3, %v1595_v25 }
 0x223   : > { %v2382_v36 = vpop.f32.mrb[43].mxu0  ;;  %v2440_v37 = vpop.f32.mrb[39].mxu1 }
 0x224   : > { %v1291_v27 = vadd.f32 %v2380_v50, %v3284_v21  ;;  %v1596_v56 = vadd.f32 %v2438_v45, %v1289_v59  ;;  %v2383_v58 = vadd.f32 %v2382_v36, %v2381_v52  ;;  %v2441_v60 = vadd.f32 %v2440_v37, %v2439_v38  ;;  %1796 = vadd.xlane.f32.xlu0 %v1779_v54 }
 0x226   : > { %v1292_v62 = vadd.f32 %v2383_v58, %v3287_v11  ;;  %v1597_v48 = vadd.f32 %v2441_v60, %v1290_v23  ;;  %1794 = vadd.xlane.f32.xlu1 %v1778_v55  ;;  %v1715_v51 = vmul.f32 %v3320_v28, %v1596_v56 }
 0x228   : > { %v2183_v63 = vpack.c.bf16 %v1597_v48, %v1596_v56  ;;  %v2384_v1 = vpop.f32.mrb[44].mxu0  ;;  %v2442_v40 = vpop.f32.mrb[40].mxu1  ;;  %1733 = vadd.xlane.f32.xlu0 %v1715_v51  ;;  %v1780_v41 = vmul.f32 %v1715_v51, %v1596_v56  ;;  %v1716_v16 = vmul.f32 %v3320_v28, %v1597_v48 }
 0x229   : > { %v2385_v4 = vpop.f32.mrb[45].mxu0  ;;  %v2443_v31 = vpop.f32.mrb[41].mxu1 }
 0x22a   : > { %2215 = vst [vmem:[%s3329_s11 + $0x8] sm:$0xff] %v2183_v63   ;;  %v2386_v21 = vadd.f32 %v2385_v4, %v2384_v1  ;;  %v2444_v5 = vadd.f32 %v2443_v31, %v2442_v40  ;;  %v2387_v6 = vpop.f32.mrb[46].mxu0  ;;  %v2445_v33 = vpop.f32.mrb[42].mxu1  ;;  %1798 = vadd.xlane.f32.xlu1 %v1780_v41  ;;  %v1781_v15 = vmul.f32 %v1716_v16, %v1597_v48 }
 0x22b   : > { %v2388_v11 = vpop.f32.mrb[47].mxu0  ;;  %v2446_v46 = vpop.f32.mrb[43].mxu1 }
 0x22c   : > { %v1293_v8 = vadd.f32 %v2386_v21, %v3290_v2  ;;  %v1598_v10 = vadd.f32 %v2444_v5, %v1291_v27  ;;  %v2389_v12 = vadd.f32 %v2388_v11, %v2387_v6  ;;  %v2447_v13 = vadd.f32 %v2446_v46, %v2445_v33  ;;  %1735 = vadd.xlane.f32.xlu0 %v1716_v16 }
 0x22e   : > { %v1294_v0 = vadd.f32 %v2389_v12, %v3293_v19  ;;  %v1599_v14 = vadd.f32 %v2447_v13, %v1292_v62  ;;  %v1717_v18 = vmul.f32 %v3320_v28, %v1598_v10 }
 0x230   : > { %v2188_v22 = vpack.c.bf16 %v1599_v14, %v1598_v10  ;;  %v2390_v24 = vpop.f32.mrb[48].mxu0  ;;  %v2448_v7 = vpop.f32.mrb[44].mxu1  ;;  %1800 = vadd.xlane.f32.xlu0 %v1781_v15  ;;  %1737 = vadd.xlane.f32.xlu1 %v1717_v18  ;;  %v1718_v23 = vmul.f32 %v3320_v28, %v1599_v14  ;;  %v1782_v39 = vmul.f32 %v1717_v18, %v1598_v10 }
 0x231   : > { %v2391_v26 = vpop.f32.mrb[49].mxu0  ;;  %v2449_v59 = vpop.f32.mrb[45].mxu1 }
 0x232   : > { %2216 = vst [vmem:[%s3329_s11 + $0x10] sm:$0xff] %v2188_v22   ;;  %v2392_v2 = vadd.f32 %v2391_v26, %v2390_v24  ;;  %v2450_v9 = vadd.f32 %v2449_v59, %v2448_v7  ;;  %v2393_v35 = vpop.f32.mrb[50].mxu0  ;;  %v2451_v61 = vpop.f32.mrb[46].mxu1  ;;  %v1783_v50 = vmul.f32 %v1718_v23, %v1599_v14 }
 0x233   : > { %v2394_v25 = vpop.f32.mrb[51].mxu0  ;;  %v2452_v19 = vpop.f32.mrb[47].mxu1 }
 0x234   : > { %v1295_v17 = vadd.f32 %v2392_v2, %v3295_v30  ;;  %v1600_v29 = vadd.f32 %v2450_v9, %v1293_v8  ;;  %v2395_v44 = vadd.f32 %v2394_v25, %v2393_v35  ;;  %v2453_v3 = vadd.f32 %v2452_v19, %v2451_v61  ;;  %1739 = vadd.xlane.f32.xlu0 %v1718_v23 }
 0x235   : > { %1802 = vadd.xlane.f32.xlu1 %v1782_v39 }
 0x236   : > { %v1296_v47 = vadd.f32 %v2395_v44, %v3297_v34  ;;  %v1601_v49 = vadd.f32 %v2453_v3, %v1294_v0  ;;  %v1719_v45 = vmul.f32 %v3320_v28, %v1600_v29 }
 0x238   : > { %v2193_v52 = vpack.c.bf16 %v1601_v49, %v1600_v29  ;;  %v2396_v38 = vpop.f32.mrb[52].mxu0  ;;  %v2454_v54 = vpop.f32.mrb[48].mxu1  ;;  %1804 = vadd.xlane.f32.xlu0 %v1783_v50  ;;  %v1720_v58 = vmul.f32 %v3320_v28, %v1601_v49  ;;  %v1784_v62 = vmul.f32 %v1719_v45, %v1600_v29 }
 0x239   : > { %1741 = vadd.xlane.f32.xlu1 %v1719_v45  ;;  %v2397_v55 = vpop.f32.mrb[53].mxu0  ;;  %v2455_v36 = vpop.f32.mrb[49].mxu1 }
 0x23a   : > { %2217 = vst [vmem:[%s3329_s11 + $0x18] sm:$0xff] %v2193_v52   ;;  %v2398_v30 = vadd.f32 %v2397_v55, %v2396_v38  ;;  %v2456_v37 = vadd.f32 %v2455_v36, %v2454_v54  ;;  %v2399_v27 = vpop.f32.mrb[54].mxu0  ;;  %v2457_v56 = vpop.f32.mrb[50].mxu1  ;;  %v1785_v4 = vmul.f32 %v1720_v58, %v1601_v49 }
 0x23b   : > { %v2400_v60 = vpop.f32.mrb[55].mxu0  ;;  %v2458_v34 = vpop.f32.mrb[51].mxu1 }
 0x23c   : > { %v1297_v48 = vadd.f32 %v2398_v30, %v3299_v42  ;;  %v1602_v51 = vadd.f32 %v2456_v37, %v1295_v17  ;;  %v2401_v63 = vadd.f32 %v2400_v60, %v2399_v27  ;;  %v2459_v1 = vadd.f32 %v2458_v34, %v2457_v56  ;;  %1743 = vadd.xlane.f32.xlu0 %v1720_v58 }
 0x23d   : > { %1806 = vadd.xlane.f32.xlu1 %v1784_v62 }
 0x23e   : > { %v1298_v40 = vadd.f32 %v2401_v63, %v3301_v20  ;;  %v1603_v41 = vadd.f32 %v2459_v1, %v1296_v47  ;;  %v1721_v31 = vmul.f32 %v3320_v28, %v1602_v51 }
 0x240   : > { %v2198_v21 = vpack.c.bf16 %v1603_v41, %v1602_v51  ;;  %v2402_v5 = vpop.f32.mrb[56].mxu0  ;;  %v2460_v6 = vpop.f32.mrb[52].mxu1  ;;  %1808 = vadd.xlane.f32.xlu0 %v1785_v4  ;;  %v1722_v10 = vmul.f32 %v3320_v28, %v1603_v41  ;;  %v1786_v13 = vmul.f32 %v1721_v31, %v1602_v51 }
 0x241   : > { %1745 = vadd.xlane.f32.xlu1 %v1721_v31  ;;  %v2403_v33 = vpop.f32.mrb[57].mxu0  ;;  %v2461_v16 = vpop.f32.mrb[53].mxu1 }
 0x242   : > { %2218 = vst [vmem:[%s3329_s11 + $0x20] sm:$0xff] %v2198_v21   ;;  %v2404_v42 = vadd.f32 %v2403_v33, %v2402_v5  ;;  %v2462_v11 = vadd.f32 %v2461_v16, %v2460_v6  ;;  %v2405_v46 = vpop.f32.mrb[58].mxu0  ;;  %v2463_v8 = vpop.f32.mrb[54].mxu1  ;;  %v1787_v7 = vmul.f32 %v1722_v10, %v1603_v41 }
 0x243   : > { %v2406_v12 = vpop.f32.mrb[59].mxu0  ;;  %v2464_v20 = vpop.f32.mrb[55].mxu1 }
 0x244   : > { %v1299_v0 = vadd.f32 %v2404_v42, %v3304_v32  ;;  %v1604_v14 = vadd.f32 %v2462_v11, %v1297_v48  ;;  %v2407_v15 = vadd.f32 %v2406_v12, %v2405_v46  ;;  %v2465_v18 = vadd.f32 %v2464_v20, %v2463_v8  ;;  %1747 = vadd.xlane.f32.xlu0 %v1722_v10 }
 0x245   : > { %1810 = vadd.xlane.f32.xlu1 %v1786_v13 }
 0x246   : > { %v1300_v22 = vadd.f32 %v2407_v15, %v3306_v53  ;;  %v1605_v24 = vadd.f32 %v2465_v18, %v1298_v40  ;;  %v1723_v26 = vmul.f32 %v3320_v28, %v1604_v14 }
 0x248   : > { %v2203_v59 = vpack.c.bf16 %v1605_v24, %v1604_v14  ;;  %v2408_v2 = vpop.f32.mrb[60].mxu0  ;;  %v2466_v9 = vpop.f32.mrb[56].mxu1  ;;  %1812 = vadd.xlane.f32.xlu0 %v1787_v7  ;;  %v1724_v39 = vmul.f32 %v3320_v28, %v1605_v24  ;;  %v1788_v29 = vmul.f32 %v1723_v26, %v1604_v14 }
 0x249   : > { %1749 = vadd.xlane.f32.xlu1 %v1723_v26  ;;  %v2409_v35 = vpop.f32.mrb[61].mxu0  ;;  %v2467_v61 = vpop.f32.mrb[57].mxu1 }
 0x24a   : > { %2219 = vst [vmem:[%s3329_s11 + $0x28] sm:$0xff] %v2203_v59   ;;  %v2410_v32 = vadd.f32 %v2409_v35, %v2408_v2  ;;  %v2468_v23 = vadd.f32 %v2467_v61, %v2466_v9  ;;  %v2411_v25 = vpop.f32.mrb[62].mxu0  ;;  %v2469_v19 = vpop.f32.mrb[58].mxu1  ;;  %v1789_v52 = vmul.f32 %v1724_v39, %v1605_v24 }
 0x24b   : > { %v2412_v17 = vpop.f32.mrb[63].mxu0  ;;  %v2470_v53 = vpop.f32.mrb[59].mxu1 }
 0x24c   : > { %v1301_v44 = vadd.f32 %v2410_v32, %v3309_v43  ;;  %v1606_v3 = vadd.f32 %v2468_v23, %v1299_v0  ;;  %v2413_v47 = vadd.f32 %v2412_v17, %v2411_v25  ;;  %v2471_v49 = vadd.f32 %v2470_v53, %v2469_v19  ;;  %1751 = vadd.xlane.f32.xlu0 %v1724_v39 }
 0x24d   : > { %1814 = vadd.xlane.f32.xlu1 %v1788_v29 }
 0x24e   : > { %v1302_v50 = vadd.f32 %v2413_v47, %v3312_v57  ;;  %v1607_v45 = vadd.f32 %v2471_v49, %v1300_v22  ;;  %v1725_v38 = vmul.f32 %v3320_v28, %v1606_v3 }
 0x250   : > { %v2208_v54 = vpack.c.bf16 %v1607_v45, %v1606_v3  ;;  %v2472_v55 = vpop.f32.mrb[60].mxu1  ;;  %1816 = vadd.xlane.f32.xlu0 %v1789_v52  ;;  %v1726_v37 = vmul.f32 %v3320_v28, %v1607_v45  ;;  %v1790_v56 = vmul.f32 %v1725_v38, %v1606_v3 }
 0x251   : > { %1753 = vadd.xlane.f32.xlu1 %v1725_v38  ;;  %v2473_v36 = vpop.f32.mrb[61].mxu1 }
 0x252   : > { %2220 = vst [vmem:[%s3329_s11 + $0x30] sm:$0xff] %v2208_v54   ;;  %v2474_v30 = vadd.f32 %v2473_v36, %v2472_v55  ;;  %v2475_v43 = vpop.f32.mrb[62].mxu1  ;;  %v1791_v34 = vmul.f32 %v1726_v37, %v1607_v45 }
 0x253   : > { %v2476_v27 = vpop.f32.mrb[63].mxu1 }
 0x254   : > { %v1608_v58 = vadd.f32 %v2474_v30, %v1301_v44  ;;  %v2477_v60 = vadd.f32 %v2476_v27, %v2475_v43  ;;  %1755 = vadd.xlane.f32.xlu0 %v1726_v37 }
 0x255   : > { %1818 = vadd.xlane.f32.xlu1 %v1790_v56 }
 0x256   : > { %v1609_v57 = vadd.f32 %v2477_v60, %v1302_v50  ;;  %v1727_v62 = vmul.f32 %v3320_v28, %v1608_v58 }
 0x258   : > { %v2213_v48 = vpack.c.bf16 %v1609_v57, %v1608_v58  ;;  %1820 = vadd.xlane.f32.xlu0 %v1791_v34  ;;  %v1728_v51 = vmul.f32 %v3320_v28, %v1609_v57  ;;  %v1792_v63 = vmul.f32 %v1727_v62, %v1608_v58 }
 0x259   : > { %1757 = vadd.xlane.f32.xlu1 %v1727_v62 }
 0x25a   : > { %2221 = vst [vmem:[%s3329_s11 + $0x38] sm:$0xff] %v2213_v48   ;;  %v1793_v1 = vmul.f32 %v1728_v51, %v1609_v57 }
 0x25c   : > { %1759 = vadd.xlane.f32.xlu0 %v1728_v51 }
 0x25d   : > { %1822 = vadd.xlane.f32.xlu1 %v1792_v63 }
 0x260   : > { %1824 = vadd.xlane.f32.xlu0 %v1793_v1 }
 0x2ad   : > { %v1730_v40 = vpop.xlane.xlu0 %1729 }
 0x2ae   : > { %1762 = vst.msk [vmem:[%s3370_s17] sm:$0xff] %vm1761_vm9, %v1730_v40 }
 0x2af   : > { %v1732_v28 = vpop.xlane.xlu1 %1731 }
 0x2b0   : > { %1763 = vst.msk [vmem:[%s3370_s17 + $0x8] sm:$0xff] %vm1761_vm9, %v1732_v28 }
 0x2b1   : > { %v1797_v41 = vpop.xlane.xlu0 %1796 }
 0x2b2   : > { %1827 = vst.msk [vmem:[%s3377_s28 + $0x8] sm:$0xff] %vm1761_vm9, %v1797_v41 }
 0x2b3   : > { %v1795_v4 = vpop.xlane.xlu1 %1794 }
 0x2b4   : > { %1826 = vst.msk [vmem:[%s3377_s28] sm:$0xff] %vm1761_vm9, %v1795_v4 }
 0x2b5   : > { %v1734_v31 = vpop.xlane.xlu0 %1733 }
 0x2b6   : > { %1764 = vst.msk [vmem:[%s3370_s17 + $0x10] sm:$0xff] %vm1761_vm9, %v1734_v31 }
 0x2b7   : > { %v1799_v21 = vpop.xlane.xlu1 %1798 }
 0x2b8   : > { %1828 = vst.msk [vmem:[%s3377_s28 + $0x10] sm:$0xff] %vm1761_vm9, %v1799_v21 }
 0x2b9   : > { %v1736_v5 = vpop.xlane.xlu0 %1735 }
 0x2ba   : > { %1765 = vst.msk [vmem:[%s3370_s17 + $0x18] sm:$0xff] %vm1761_vm9, %v1736_v5 }
 0x2bd   : > { %v1801_v6 = vpop.xlane.xlu0 %1800  ;;  %v1738_v33 = vpop.xlane.xlu1 %1737 }
 0x2be   : > { %1829 = vst.msk [vmem:[%s3377_s28 + $0x18] sm:$0xff] %vm1761_vm9, %v1801_v6  ;;  %1766 = vst.msk [vmem:[%s3370_s17 + $0x20] sm:$0xff] %vm1761_vm9, %v1738_v33 }
 0x2c1   : > { %v1740_v16 = vpop.xlane.xlu0 %1739 }
 0x2c2   : > { %1767 = vst.msk [vmem:[%s3370_s17 + $0x28] sm:$0xff] %vm1761_vm9, %v1740_v16  ;;  %v1803_v42 = vpop.xlane.xlu1 %1802 }
 0x2c3   : > { %1830 = vst.msk [vmem:[%s3377_s28 + $0x20] sm:$0xff] %vm1761_vm9, %v1803_v42 }
 0x2c5   : > { %v1805_v11 = vpop.xlane.xlu0 %1804 }
 0x2c6   : > { %1831 = vst.msk [vmem:[%s3377_s28 + $0x28] sm:$0xff] %vm1761_vm9, %v1805_v11  ;;  %v1742_v46 = vpop.xlane.xlu1 %1741 }
 0x2c7   : > { %1768 = vst.msk [vmem:[%s3370_s17 + $0x30] sm:$0xff] %vm1761_vm9, %v1742_v46 }
 0x2c9   : > { %v1744_v8 = vpop.xlane.xlu0 %1743 }
 0x2ca   : > { %1769 = vst.msk [vmem:[%s3370_s17 + $0x38] sm:$0xff] %vm1761_vm9, %v1744_v8  ;;  %v1807_v10 = vpop.xlane.xlu1 %1806 }
 0x2cb   : > { %1832 = vst.msk [vmem:[%s3377_s28 + $0x30] sm:$0xff] %vm1761_vm9, %v1807_v10 }
 0x2cd   : > { %v1809_v12 = vpop.xlane.xlu0 %1808 }
 0x2ce   : > { %1833 = vst.msk [vmem:[%s3377_s28 + $0x38] sm:$0xff] %vm1761_vm9, %v1809_v12  ;;  %v1746_v20 = vpop.xlane.xlu1 %1745 }
 0x2cf   : > { %1770 = vst.msk [vmem:[%s3370_s17 + $0x40] sm:$0xff] %vm1761_vm9, %v1746_v20 }
 0x2d1   : > { %v1748_v13 = vpop.xlane.xlu0 %1747 }
 0x2d2   : > { %1771 = vst.msk [vmem:[%s3370_s17 + $0x48] sm:$0xff] %vm1761_vm9, %v1748_v13  ;;  %v1811_v0 = vpop.xlane.xlu1 %1810 }
 0x2d3   : > { %1834 = vst.msk [vmem:[%s3377_s28 + $0x40] sm:$0xff] %vm1761_vm9, %v1811_v0 }
 0x2d5   : > { %v1813_v14 = vpop.xlane.xlu0 %1812 }
 0x2d6   : > { %1835 = vst.msk [vmem:[%s3377_s28 + $0x48] sm:$0xff] %vm1761_vm9, %v1813_v14  ;;  %v1750_v15 = vpop.xlane.xlu1 %1749 }
 0x2d7   : > { %1772 = vst.msk [vmem:[%s3370_s17 + $0x50] sm:$0xff] %vm1761_vm9, %v1750_v15 }
 0x2d9   : > { %v1752_v18 = vpop.xlane.xlu0 %1751 }
 0x2da   : > { %1773 = vst.msk [vmem:[%s3370_s17 + $0x58] sm:$0xff] %vm1761_vm9, %v1752_v18  ;;  %v1815_v22 = vpop.xlane.xlu1 %1814 }
 0x2db   : > { %1836 = vst.msk [vmem:[%s3377_s28 + $0x50] sm:$0xff] %vm1761_vm9, %v1815_v22 }
 0x2dd   : > { %v1817_v24 = vpop.xlane.xlu0 %1816 }
 0x2de   : > { %1837 = vst.msk [vmem:[%s3377_s28 + $0x58] sm:$0xff] %vm1761_vm9, %v1817_v24  ;;  %v1754_v7 = vpop.xlane.xlu1 %1753 }
 0x2df   : > { %1774 = vst.msk [vmem:[%s3370_s17 + $0x60] sm:$0xff] %vm1761_vm9, %v1754_v7 }
 0x2e1   : > { %v1756_v26 = vpop.xlane.xlu0 %1755 }
 0x2e2   : > { %1775 = vst.msk [vmem:[%s3370_s17 + $0x68] sm:$0xff] %vm1761_vm9, %v1756_v26  ;;  %v1819_v59 = vpop.xlane.xlu1 %1818 }
 0x2e3   : > { %1838 = vst.msk [vmem:[%s3377_s28 + $0x60] sm:$0xff] %vm1761_vm9, %v1819_v59 }
 0x2e5   : > { %v1821_v2 = vpop.xlane.xlu0 %1820 }
 0x2e6   : > { %1839 = vst.msk [vmem:[%s3377_s28 + $0x68] sm:$0xff] %vm1761_vm9, %v1821_v2  ;;  %v1758_v9 = vpop.xlane.xlu1 %1757 }
 0x2e7   : > { %1776 = vst.msk [vmem:[%s3370_s17 + $0x70] sm:$0xff] %vm1761_vm9, %v1758_v9 }
 0x2e9   : > { %v1760_v35 = vpop.xlane.xlu0 %1759 }
 0x2ea   : > { %1777 = vst.msk [vmem:[%s3370_s17 + $0x78] sm:$0xff] %vm1761_vm9, %v1760_v35  ;;  %v1823_v61 = vpop.xlane.xlu1 %1822 }
 0x2eb   : > { %1840 = vst.msk [vmem:[%s3377_s28 + $0x70] sm:$0xff] %vm1761_vm9, %v1823_v61 }
 0x2ed   : > { %v1825_v32 = vpop.xlane.xlu0 %1824 }
 0x2ee   : > { %1841 = vst.msk [vmem:[%s3377_s28 + $0x78] sm:$0xff] %vm1761_vm9, %v1825_v32 }
 0x2ef PF: > { %s15_s15 = sadd.s32 1, %s2658_s15  }
 0x2f0   : > { %p12_p4 = scmp.ge.s32.totalorder %s15_s15, 4  }
 0x2f2   :  { %14 = sbr.rel (!%p12_p4) target bundleno = 1 (0x1), region = 85 }

// kernel: discriminator_forward.19
= control target key start
LH: loop header
LB: loop body
LE: loop exit
PB: predicated region body
PF: predicated region fallthrough
CT: control target
= control target key end

     0   :  { %v16_v0 = vlaneseq  ;;  %v114_v2 = vmov 1983009808   ;;  %vm97_vm0 = vcmask 1041408   ;;  %vm107_vm1 = vcmask 1024   ;;  %s139_s1 = inlined_call_operand.vmem [shape: bf16[1,512], index: 1, kind: input, shape index: {}]   ;;  %s140_s0 = inlined_call_operand.vmem [shape: bf16[2,512], index: 0, kind: input, shape index: {}]   ;;  %s141_s2 = inlined_call_operand.vmem [shape: f32[2,1], index: 2, kind: output, shape index: {}]  }
   0x1   :  { %v13_v1 = vld [vmem:[%s139_s1] sm:$0xf]  ;;  %v59_v3 = vunpack.c.l.s4 %v114_v2 }
   0x2   :  { %v14_v4 = vunpack.c.l.bf16 %v13_v1  ;;  %v17_v5 = vshrl.u32 %v16_v0, 7  ;;  %v11_v20 = vld [vmem:[%s140_s0] sm:$0xf] }
   0x3   :  { %v60_v6 = vunpack.c.0.s8 %v59_v3  ;;  %v12_v23 = vunpack.c.l.bf16 %v11_v20 }
   0x4   :  { %v18_v7 = vsub.s32 0, %v17_v5  ;;  %v22_v8 = vsub.s32 2, %v17_v5  ;;  %v26_v9 = vsub.s32 4, %v17_v5  ;;  %v30_v10 = vsub.s32 6, %v17_v5 }
   0x5   :  { %v63_v15 = vsub.s32 %v60_v6, %v17_v5 }
   0x6   :  { %v19_v11 = vrot.slane %v14_v4, %v18_v7  ;;  %v23_v12 = vrot.slane %v14_v4, %v22_v8  ;;  %v27_v13 = vrot.slane %v14_v4, %v26_v9  ;;  %v31_v14 = vrot.slane %v14_v4, %v30_v10 }
   0x8   :  { %v39_v16 = vrot.slane %v19_v11, %v18_v7  ;;  %v43_v17 = vrot.slane %v23_v12, %v18_v7  ;;  %v47_v18 = vrot.slane %v27_v13, %v18_v7  ;;  %v51_v19 = vrot.slane %v31_v14, %v18_v7 }
   0xa   :  { %v56_v21 = vcombine.low %v39_v16, %v43_v17  ;;  %v57_v22 = vcombine.low %v47_v18, %v51_v19 }
   0xc   :  { %v64_v24 = vrot.slane %v56_v21, %v63_v15  ;;  %v71_v25 = vrot.slane %v57_v22, %v63_v15 }
   0xe   :  { %v72_v26 = vcombine.low %v64_v24, %v71_v25 }
  0x10   :  { %v74_v27 = vmul.f32 %v72_v26, %v12_v23 }
  0x12   :  { %v76_v28 = vcombine.high %v74_v27, %v74_v27  ;;  %v83_v29 = vrot.slane %v74_v27, %v63_v15 }
  0x14   :  { %v90_v30 = vrot.slane %v76_v28, %v63_v15  ;;  %v91_v31 = vcombine.high %v83_v29, %v83_v29  ;;  %v98_v32 = vsel %vm97_vm0, %v83_v29, 0.0 }
  0x16   :  { %v92_v33 = vcombine.high %v90_v30, %v90_v30  ;;  %v99_v34 = vsel %vm97_vm0, %v91_v31, 0.0  ;;  %v101_v35 = vsel %vm97_vm0, %v90_v30, 0.0 }
  0x17   :  { %v100_v36 = vadd.f32 %v99_v34, %v98_v32 }
  0x18   :  { %v103_v37 = vsel %vm97_vm0, %v92_v33, 0.0 }
  0x19   :  { %v102_v38 = vadd.f32 %v101_v35, %v100_v36 }
  0x1b   :  { %v104_v39 = vadd.f32 %v103_v37, %v102_v38 }
  0x1d   :  { %105 = vadd.xlane.f32.xlu0 %v104_v39 }
  0xaa   :  { %v106_v40 = vpop.xlane.xlu0 %105 }
  0xab   :  { %108 = vst.msk [vmem:[%s141_s2] sm:$0x3] %vm107_vm1, %v106_v40 }

</bundles_post_ra>
